<compile_context>
chip_gen: v7x
topology: tpu7x:2x2x1
jax: 0.10.0
libtpu: 0.0.40
codegen_flags: <defaults>
</compile_context>

<pallas_src>
import functools
import math

import jax
import jax.numpy as jnp
from jax.experimental import pallas as pl
from jax.experimental.pallas import tpu as pltpu


# ----------------------------------------------------------------------------
# Fused kernel: MLP + interleaved reshape + R Gram matrices per grid step
# ----------------------------------------------------------------------------
def _kg_fused_kernel(q_ref, k_ref, w1_ref, b1_ref, w2_ref, b2_ref,
                     o_ref, xrel_ref, *, n_len, hidden, relation_num, b_tile):
    in_dtype = q_ref.dtype
    R, H = relation_num, hidden
    inv_sqrt2 = 1.0 / math.sqrt(2.0)

    # ---- Linear1 on the in-kernel concat [q, k]: one K=(Cq+Ck) MXU pass ----
    qk = jnp.concatenate([q_ref[...], k_ref[...]], axis=-1)   # (b_tile*n_len, C)
    act = (jnp.dot(qk, w1_ref[...], preferred_element_type=jnp.float32)
           + b1_ref[...].astype(jnp.float32))

    # ---- exact erf-GELU (torch nn.GELU default), math kept in f32 ----
    act = 0.5 * act * (1.0 + jax.lax.erf(act * inv_sqrt2))
    act = act.astype(in_dtype)        # torch runs the MLP in the input dtype

    # ---- Linear2 ----
    x1 = (jnp.dot(act, w2_ref[...], preferred_element_type=jnp.float32)
          + b2_ref[...].astype(jnp.float32)).astype(in_dtype)  # (b_tile*n_len, H*R)
    # torch upcasts x1 with .float() before the bmm: Gram operands are f32.
    x1 = x1.astype(jnp.float32)

    nb = n_len // R  # rows of x1 feeding one relation (when n_len % R == 0)

    for t in range(b_tile):
        xt = x1[t * n_len:(t + 1) * n_len, :]                  # (n_len, H*R)
        for r in range(R):
            # torch row-major reshape (n_len, H*R) -> (R, n_len, H); relation r:
            #   X_r[m, :] = xt[(r*n_len + m)//R, ((r*n_len + m)%R)*H : +H]
            if n_len % R == 0:
                # R dense (nb, H) blocks placed with a sublane stride of R:
                #   X_r[c::R, :] = xt[r*nb:(r+1)*nb, c*H:(c+1)*H]
                for c in range(R):
                    xrel_ref[pl.ds(c, nb, stride=R), :] = (
                        xt[r * nb:(r + 1) * nb, c * H:(c + 1) * H])
            else:
                # General fallback (per-row chunk copies) — correct for any n_len.
                for m in range(n_len):
                    g = r * n_len + m
                    src, c = g // R, g % R
                    xrel_ref[m:m + 1, :] = xt[src:src + 1, c * H:(c + 1) * H]

            # Gram: contract the minor (lane) dim of both operands — the
            # MXU-native X @ X^T form, f32 accumulation, f32 operands (torch).
            xr = xrel_ref[...]                                  # (n_len, H) f32
            gram = jax.lax.dot_general(
                xr, xr,
                dimension_numbers=(((1,), (1,)), ((), ())),
                preferred_element_type=jnp.float32)             # (n_len, n_len)
            o_ref[t, r] = gram.astype(o_ref.dtype)


# ----------------------------------------------------------------------------
# Wrapper (mirrors KGEmbedding.forward)
# ----------------------------------------------------------------------------
def kg_embedding_forward(query_states, key_states, params, relation_num,
                         *, b_tile=None):
    """query_states/key_states: (bsz, n_len, feat) -> (bsz, R, n_len, n_len)."""
    bsz, n_len, q_feat = query_states.shape
    kb, kn, k_feat = key_states.shape
    assert (kb, kn) == (bsz, n_len)
    w1, b1, w2, b2 = params["w1"], params["b1"], params["w2"], params["b2"]
    channels = q_feat + k_feat
    hidden = w1.shape[1]
    R = relation_num
    assert w1.shape == (channels, hidden)
    assert w2.shape == (hidden, hidden * R)

    dtype = query_states.dtype
    itemsize = query_states.dtype.itemsize

    # ---- batch elements per grid step (keep >= 2 grid steps for v7x 2xTC) ----
    if b_tile is None:
        out_budget = 24 * 2 ** 20          # double-buffered output-block budget
        b_tile = 1
        for d in range(1, bsz + 1):
            if bsz % d != 0:
                continue
            if bsz >= 2 and bsz // d < 2:
                continue                   # keep at least 2 parallel grid steps
            if 2 * d * R * n_len * n_len * itemsize <= out_budget:
                b_tile = max(b_tile, d)
    assert bsz % b_tile == 0
    n_steps = bsz // b_tile

    # q/k flattened to 2-D in the wrapper (free XLA layout op) so the kernel's
    # MLP matmuls see b_tile*n_len rows without any in-kernel reshape.
    q2 = query_states.reshape(bsz * n_len, q_feat)
    k2 = key_states.reshape(bsz * n_len, k_feat)
    b1_2d = b1.reshape(1, hidden)
    b2_2d = b2.reshape(1, hidden * R)

    # ---- VMEM footprint -> explicit scoped limit (don't rely on 32 MiB default) ----
    blk_in = 2 * b_tile * n_len * channels * itemsize                     # q + k, x2 buffers
    blk_w = 2 * (channels * hidden + hidden + hidden * hidden * R + hidden * R) * itemsize
    blk_out = 2 * b_tile * R * n_len * n_len * itemsize
    scratch_b = n_len * hidden * 4
    interm = b_tile * n_len * (channels + 2 * hidden + 2 * hidden * R) * 4
    vmem_limit = int(min(max(1.5 * (blk_in + blk_w + blk_out + scratch_b + interm),
                             32 * 2 ** 20), 110 * 2 ** 20))

    flops = int(2 * bsz * n_len * (channels * hidden + hidden * hidden * R)
                + 2 * bsz * R * n_len * n_len * hidden)
    bytes_accessed = int((q2.size + k2.size + w1.size + b1.size + w2.size
                          + b2.size + bsz * R * n_len * n_len) * itemsize)

    kernel = functools.partial(_kg_fused_kernel, n_len=n_len, hidden=hidden,
                               relation_num=R, b_tile=b_tile)

    return pl.pallas_call(
        kernel,
        out_shape=jax.ShapeDtypeStruct((bsz, R, n_len, n_len), dtype),
        grid=(n_steps,),
        in_specs=[
            pl.BlockSpec((b_tile * n_len, q_feat), lambda i: (i, 0)),
            pl.BlockSpec((b_tile * n_len, k_feat), lambda i: (i, 0)),
            # Weights / biases: constant index_map -> DMA'd once, stay resident.
            pl.BlockSpec((channels, hidden), lambda i: (0, 0)),
            pl.BlockSpec((1, hidden), lambda i: (0, 0)),
            pl.BlockSpec((hidden, hidden * R), lambda i: (0, 0)),
            pl.BlockSpec((1, hidden * R), lambda i: (0, 0)),
        ],
        out_specs=pl.BlockSpec((b_tile, R, n_len, n_len),
                               lambda i: (i, 0, 0, 0)),
        scratch_shapes=[pltpu.VMEM((n_len, hidden), jnp.float32)],
        compiler_params=pltpu.CompilerParams(
            dimension_semantics=("parallel",),
            vmem_limit_bytes=vmem_limit),
        cost_estimate=pl.CostEstimate(flops=flops,
                                      transcendentals=int(bsz * n_len * hidden),
                                      bytes_accessed=bytes_accessed),
    )(q2, k2, w1, b1_2d, w2, b2_2d)


# ----------------------------------------------------------------------------
# Pure-JAX reference (mirrors the torch module exactly) for validation.
# ----------------------------------------------------------------------------
def kg_embedding_reference(query_states, key_states, params, relation_num):
    input_dtype = query_states.dtype
    bsz, n_len, _ = query_states.shape
    x = jnp.concatenate([query_states, key_states], axis=-1)
    h = x @ params["w1"] + params["b1"]
    h = 0.5 * h * (1.0 + jax.lax.erf(h / math.sqrt(2.0)))
    h = h.astype(input_dtype)
    x1 = (h @ params["w2"] + params["b2"]).astype(input_dtype)
    x1 = x1.reshape(bsz * relation_num, n_len, -1).astype(jnp.float32)
    x2 = jnp.einsum("bnh,bmh->bnm", x1, x1)
    return x2.reshape(bsz, relation_num, n_len, n_len).astype(input_dtype)


if __name__ == "__main__":
    # Module config: channels = Linear1 in_features = q_feat + k_feat.
    # Shapes chosen small but (8,128)-tile aligned: n_len multiple of 8*R so
    # the strided copies, MXU tiles and the output stores are all lane/sublane
    # dense; bsz/B_TILE leaves 2 parallel grid steps.
    channels = 64              # q and k contribute 32 features each
    hidden_channels = 128      # MLP hidden = per-relation Gram feature dim H
    relation_num = 4
    bsz, n_len = 4, 128
    dtype = jnp.float32

    key = jax.random.PRNGKey(0)
    kq, kk, k1, k2, k3, k4 = jax.random.split(key, 6)
    q_feat = k_feat = channels // 2

    query_states = jax.random.normal(kq, (bsz, n_len, q_feat), dtype=dtype)
    key_states = jax.random.normal(kk, (bsz, n_len, k_feat), dtype=dtype)

    params = {
        "w1": (jax.random.normal(k1, (channels, hidden_channels), dtype=dtype)
               * (1.0 / math.sqrt(channels))),
        "b1": jax.random.normal(k2, (hidden_channels,), dtype=dtype) * 0.01,
        "w2": (jax.random.normal(k3, (hidden_channels,
                                      hidden_channels * relation_num),
                                 dtype=dtype)
               * (1.0 / math.sqrt(hidden_channels))),
        "b2": (jax.random.normal(k4, (hidden_channels * relation_num,),
                                 dtype=dtype) * 0.01),
    }

    out = kg_embedding_forward(query_states, key_states, params, relation_num)
    out = jax.block_until_ready(out)

    ref = kg_embedding_reference(query_states, key_states, params, relation_num)
    assert out.shape == (bsz, relation_num, n_len, n_len), out.shape
    assert out.dtype == dtype, out.dtype
    max_err = float(jnp.abs(out.astype(jnp.float32)
                            - ref.astype(jnp.float32)).max())
    assert jnp.allclose(out, ref, atol=1e-2, rtol=1e-3), max_err

    print("KERNEL_OK")
</pallas_src>

<mosaic_0001>
module attributes {stable_mosaic.version = 11 : i64} {
  func.func @_kg_fused_kernel(%arg0: i32, %arg1: memref<256x32xf32, #tpu.memory_space<vmem>>, %arg2: memref<256x32xf32, #tpu.memory_space<vmem>>, %arg3: memref<64x128xf32, #tpu.memory_space<vmem>>, %arg4: memref<1x128xf32, #tpu.memory_space<vmem>>, %arg5: memref<128x512xf32, #tpu.memory_space<vmem>>, %arg6: memref<1x512xf32, #tpu.memory_space<vmem>>, %arg7: memref<2x4x128x128xf32, #tpu.memory_space<vmem>>, %arg8: memref<128x128xf32, #tpu.memory_space<vmem>>) attributes {dimension_semantics = [#tpu.dimension_semantics<parallel>], iteration_bounds = array<i64: 2>, scalar_prefetch = 0 : i64, scratch_operands = 1 : i64, tpu.core_type = #tpu.core_type<tc>, window_params = [{transform_indices = @transform_0, window_bounds = array<i64: 256, 32>}, {transform_indices = @transform_1, window_bounds = array<i64: 256, 32>}, {pipeline_mode = #tpu.pipeline_mode<synchronous>, transform_indices = @transform_2, window_bounds = array<i64: 64, 128>}, {pipeline_mode = #tpu.pipeline_mode<synchronous>, transform_indices = @transform_3, window_bounds = array<i64: 1, 128>}, {pipeline_mode = #tpu.pipeline_mode<synchronous>, transform_indices = @transform_4, window_bounds = array<i64: 128, 512>}, {pipeline_mode = #tpu.pipeline_mode<synchronous>, transform_indices = @transform_5, window_bounds = array<i64: 1, 512>}, {transform_indices = @transform_6, window_bounds = array<i64: 2, 4, 128, 128>}]} {
    %c0 = arith.constant 0 : index
    %c0_0 = arith.constant 0 : index
    %0 = vector.load %arg1[%c0, %c0_0] : memref<256x32xf32, #tpu.memory_space<vmem>>, vector<256x32xf32>
    %c0_1 = arith.constant 0 : index
    %c0_2 = arith.constant 0 : index
    %1 = vector.load %arg2[%c0_1, %c0_2] : memref<256x32xf32, #tpu.memory_space<vmem>>, vector<256x32xf32>
    %2 = tpu.concatenate %0, %1 in 1 : vector<256x32xf32>, vector<256x32xf32> -> vector<256x64xf32>
    %c0_3 = arith.constant 0 : index
    %c0_4 = arith.constant 0 : index
    %3 = vector.load %arg3[%c0_3, %c0_4] : memref<64x128xf32, #tpu.memory_space<vmem>>, vector<64x128xf32>
    %cst = arith.constant dense<0.000000e+00> : vector<256x128xf32>
    %4 = tpu.matmul %2, %3, %cst {dimension_numbers = #tpu.dot_dimension_numbers<[1], [0], [0], [1], [0, 0, 1, 1], [], []>} : vector<256x64xf32>, vector<64x128xf32>, vector<256x128xf32> -> vector<256x128xf32>
    %c0_5 = arith.constant 0 : index
    %c0_6 = arith.constant 0 : index
    %5 = vector.load %arg4[%c0_5, %c0_6] : memref<1x128xf32, #tpu.memory_space<vmem>>, vector<1x128xf32>
    %6 = vector.broadcast %5 : vector<1x128xf32> to vector<256x128xf32>
    %7 = arith.addf %4, %6 : vector<256x128xf32>
    %cst_7 = arith.constant 5.000000e-01 : f32
    %8 = vector.broadcast %cst_7 : f32 to vector<256x128xf32>
    %9 = arith.mulf %8, %7 : vector<256x128xf32>
    %cst_8 = arith.constant 0.707106769 : f32
    %10 = vector.broadcast %cst_8 : f32 to vector<256x128xf32>
    %11 = arith.mulf %7, %10 : vector<256x128xf32>
    %12 = math.erf %11 : vector<256x128xf32>
    %cst_9 = arith.constant 1.000000e+00 : f32
    %13 = vector.broadcast %cst_9 : f32 to vector<256x128xf32>
    %14 = arith.addf %13, %12 : vector<256x128xf32>
    %15 = arith.mulf %9, %14 : vector<256x128xf32>
    %c0_10 = arith.constant 0 : index
    %c0_11 = arith.constant 0 : index
    %16 = vector.load %arg5[%c0_10, %c0_11] : memref<128x512xf32, #tpu.memory_space<vmem>>, vector<128x512xf32>
    %cst_12 = arith.constant dense<0.000000e+00> : vector<256x512xf32>
    %17 = tpu.matmul %15, %16, %cst_12 {dimension_numbers = #tpu.dot_dimension_numbers<[1], [0], [0], [1], [0, 0, 1, 1], [], []>} : vector<256x128xf32>, vector<128x512xf32>, vector<256x512xf32> -> vector<256x512xf32>
    %c0_13 = arith.constant 0 : index
    %c0_14 = arith.constant 0 : index
    %18 = vector.load %arg6[%c0_13, %c0_14] : memref<1x512xf32, #tpu.memory_space<vmem>>, vector<1x512xf32>
    %19 = vector.broadcast %18 : vector<1x512xf32> to vector<256x512xf32>
    %20 = arith.addf %17, %19 : vector<256x512xf32>
    %21 = vector.extract_strided_slice %20 {offsets = [0, 0], sizes = [128, 512], strides = [1, 1]} : vector<256x512xf32> to vector<128x512xf32>
    %22 = vector.extract_strided_slice %21 {offsets = [0, 0], sizes = [32, 128], strides = [1, 1]} : vector<128x512xf32> to vector<32x128xf32>
    %c0_15 = arith.constant 0 : index
    %c0_16 = arith.constant 0 : index
    %23 = tpu.strided_load %arg8[%c0_15, %c0_16] {strides = array<i32: 4, 1>} : memref<128x128xf32, #tpu.memory_space<vmem>>, vector<32x128xf32>
    tpu.strided_store %arg8[%c0_15, %c0_16], %22 {strides = array<i32: 4, 1>} : memref<128x128xf32, #tpu.memory_space<vmem>>, vector<32x128xf32>
    %24 = vector.extract_strided_slice %21 {offsets = [0, 128], sizes = [32, 128], strides = [1, 1]} : vector<128x512xf32> to vector<32x128xf32>
    %c1 = arith.constant 1 : index
    %c0_17 = arith.constant 0 : index
    %25 = tpu.strided_load %arg8[%c1, %c0_17] {strides = array<i32: 4, 1>} : memref<128x128xf32, #tpu.memory_space<vmem>>, vector<32x128xf32>
    tpu.strided_store %arg8[%c1, %c0_17], %24 {strides = array<i32: 4, 1>} : memref<128x128xf32, #tpu.memory_space<vmem>>, vector<32x128xf32>
    %26 = vector.extract_strided_slice %21 {offsets = [0, 256], sizes = [32, 128], strides = [1, 1]} : vector<128x512xf32> to vector<32x128xf32>
    %c2 = arith.constant 2 : index
    %c0_18 = arith.constant 0 : index
    %27 = tpu.strided_load %arg8[%c2, %c0_18] {strides = array<i32: 4, 1>} : memref<128x128xf32, #tpu.memory_space<vmem>>, vector<32x128xf32>
    tpu.strided_store %arg8[%c2, %c0_18], %26 {strides = array<i32: 4, 1>} : memref<128x128xf32, #tpu.memory_space<vmem>>, vector<32x128xf32>
    %28 = vector.extract_strided_slice %21 {offsets = [0, 384], sizes = [32, 128], strides = [1, 1]} : vector<128x512xf32> to vector<32x128xf32>
    %c3 = arith.constant 3 : index
    %c0_19 = arith.constant 0 : index
    %29 = tpu.strided_load %arg8[%c3, %c0_19] {strides = array<i32: 4, 1>} : memref<128x128xf32, #tpu.memory_space<vmem>>, vector<32x128xf32>
    tpu.strided_store %arg8[%c3, %c0_19], %28 {strides = array<i32: 4, 1>} : memref<128x128xf32, #tpu.memory_space<vmem>>, vector<32x128xf32>
    %c0_20 = arith.constant 0 : index
    %c0_21 = arith.constant 0 : index
    %30 = vector.load %arg8[%c0_20, %c0_21] : memref<128x128xf32, #tpu.memory_space<vmem>>, vector<128x128xf32>
    %cst_22 = arith.constant dense<0.000000e+00> : vector<128x128xf32>
    %31 = tpu.matmul %30, %30, %cst_22 {dimension_numbers = #tpu.dot_dimension_numbers<[1], [1], [0], [0], [0, 0, 1, 0], [], []>} : vector<128x128xf32>, vector<128x128xf32>, vector<128x128xf32> -> vector<128x128xf32>
    %c0_23 = arith.constant 0 : index
    %c0_24 = arith.constant 0 : index
    %c0_25 = arith.constant 0 : index
    %c0_26 = arith.constant 0 : index
    %32 = vector.load %arg7[%c0_23, %c0_24, %c0_25, %c0_26] : memref<2x4x128x128xf32, #tpu.memory_space<vmem>>, vector<1x1x128x128xf32>
    %33 = vector.shape_cast %32 : vector<1x1x128x128xf32> to vector<128x128xf32>
    %34 = vector.shape_cast %31 : vector<128x128xf32> to vector<1x1x128x128xf32>
    tpu.vector_store %arg7[%c0_23, %c0_24, %c0_25, %c0_26], %34 {strides = array<i32>} : memref<2x4x128x128xf32, #tpu.memory_space<vmem>>, vector<1x1x128x128xf32>,
    %35 = vector.extract_strided_slice %21 {offsets = [32, 0], sizes = [32, 128], strides = [1, 1]} : vector<128x512xf32> to vector<32x128xf32>
    %c0_27 = arith.constant 0 : index
    %c0_28 = arith.constant 0 : index
    %36 = tpu.strided_load %arg8[%c0_27, %c0_28] {strides = array<i32: 4, 1>} : memref<128x128xf32, #tpu.memory_space<vmem>>, vector<32x128xf32>
    tpu.strided_store %arg8[%c0_27, %c0_28], %35 {strides = array<i32: 4, 1>} : memref<128x128xf32, #tpu.memory_space<vmem>>, vector<32x128xf32>
    %37 = vector.extract_strided_slice %21 {offsets = [32, 128], sizes = [32, 128], strides = [1, 1]} : vector<128x512xf32> to vector<32x128xf32>
    %c1_29 = arith.constant 1 : index
    %c0_30 = arith.constant 0 : index
    %38 = tpu.strided_load %arg8[%c1_29, %c0_30] {strides = array<i32: 4, 1>} : memref<128x128xf32, #tpu.memory_space<vmem>>, vector<32x128xf32>
    tpu.strided_store %arg8[%c1_29, %c0_30], %37 {strides = array<i32: 4, 1>} : memref<128x128xf32, #tpu.memory_space<vmem>>, vector<32x128xf32>
    %39 = vector.extract_strided_slice %21 {offsets = [32, 256], sizes = [32, 128], strides = [1, 1]} : vector<128x512xf32> to vector<32x128xf32>
    %c2_31 = arith.constant 2 : index
    %c0_32 = arith.constant 0 : index
    %40 = tpu.strided_load %arg8[%c2_31, %c0_32] {strides = array<i32: 4, 1>} : memref<128x128xf32, #tpu.memory_space<vmem>>, vector<32x128xf32>
    tpu.strided_store %arg8[%c2_31, %c0_32], %39 {strides = array<i32: 4, 1>} : memref<128x128xf32, #tpu.memory_space<vmem>>, vector<32x128xf32>
    %41 = vector.extract_strided_slice %21 {offsets = [32, 384], sizes = [32, 128], strides = [1, 1]} : vector<128x512xf32> to vector<32x128xf32>
    %c3_33 = arith.constant 3 : index
    %c0_34 = arith.constant 0 : index
    %42 = tpu.strided_load %arg8[%c3_33, %c0_34] {strides = array<i32: 4, 1>} : memref<128x128xf32, #tpu.memory_space<vmem>>, vector<32x128xf32>
    tpu.strided_store %arg8[%c3_33, %c0_34], %41 {strides = array<i32: 4, 1>} : memref<128x128xf32, #tpu.memory_space<vmem>>, vector<32x128xf32>
    %c0_35 = arith.constant 0 : index
    %c0_36 = arith.constant 0 : index
    %43 = vector.load %arg8[%c0_35, %c0_36] : memref<128x128xf32, #tpu.memory_space<vmem>>, vector<128x128xf32>
    %cst_37 = arith.constant dense<0.000000e+00> : vector<128x128xf32>
    %44 = tpu.matmul %43, %43, %cst_37 {dimension_numbers = #tpu.dot_dimension_numbers<[1], [1], [0], [0], [0, 0, 1, 0], [], []>} : vector<128x128xf32>, vector<128x128xf32>, vector<128x128xf32> -> vector<128x128xf32>
    %c0_38 = arith.constant 0 : index
    %c1_39 = arith.constant 1 : index
    %c0_40 = arith.constant 0 : index
    %c0_41 = arith.constant 0 : index
    %45 = vector.load %arg7[%c0_38, %c1_39, %c0_40, %c0_41] : memref<2x4x128x128xf32, #tpu.memory_space<vmem>>, vector<1x1x128x128xf32>
    %46 = vector.shape_cast %45 : vector<1x1x128x128xf32> to vector<128x128xf32>
    %47 = vector.shape_cast %44 : vector<128x128xf32> to vector<1x1x128x128xf32>
    tpu.vector_store %arg7[%c0_38, %c1_39, %c0_40, %c0_41], %47 {strides = array<i32>} : memref<2x4x128x128xf32, #tpu.memory_space<vmem>>, vector<1x1x128x128xf32>,
    %48 = vector.extract_strided_slice %21 {offsets = [64, 0], sizes = [32, 128], strides = [1, 1]} : vector<128x512xf32> to vector<32x128xf32>
    %c0_42 = arith.constant 0 : index
    %c0_43 = arith.constant 0 : index
    %49 = tpu.strided_load %arg8[%c0_42, %c0_43] {strides = array<i32: 4, 1>} : memref<128x128xf32, #tpu.memory_space<vmem>>, vector<32x128xf32>
    tpu.strided_store %arg8[%c0_42, %c0_43], %48 {strides = array<i32: 4, 1>} : memref<128x128xf32, #tpu.memory_space<vmem>>, vector<32x128xf32>
    %50 = vector.extract_strided_slice %21 {offsets = [64, 128], sizes = [32, 128], strides = [1, 1]} : vector<128x512xf32> to vector<32x128xf32>
    %c1_44 = arith.constant 1 : index
    %c0_45 = arith.constant 0 : index
    %51 = tpu.strided_load %arg8[%c1_44, %c0_45] {strides = array<i32: 4, 1>} : memref<128x128xf32, #tpu.memory_space<vmem>>, vector<32x128xf32>
    tpu.strided_store %arg8[%c1_44, %c0_45], %50 {strides = array<i32: 4, 1>} : memref<128x128xf32, #tpu.memory_space<vmem>>, vector<32x128xf32>
    %52 = vector.extract_strided_slice %21 {offsets = [64, 256], sizes = [32, 128], strides = [1, 1]} : vector<128x512xf32> to vector<32x128xf32>
    %c2_46 = arith.constant 2 : index
    %c0_47 = arith.constant 0 : index
    %53 = tpu.strided_load %arg8[%c2_46, %c0_47] {strides = array<i32: 4, 1>} : memref<128x128xf32, #tpu.memory_space<vmem>>, vector<32x128xf32>
    tpu.strided_store %arg8[%c2_46, %c0_47], %52 {strides = array<i32: 4, 1>} : memref<128x128xf32, #tpu.memory_space<vmem>>, vector<32x128xf32>
    %54 = vector.extract_strided_slice %21 {offsets = [64, 384], sizes = [32, 128], strides = [1, 1]} : vector<128x512xf32> to vector<32x128xf32>
    %c3_48 = arith.constant 3 : index
    %c0_49 = arith.constant 0 : index
    %55 = tpu.strided_load %arg8[%c3_48, %c0_49] {strides = array<i32: 4, 1>} : memref<128x128xf32, #tpu.memory_space<vmem>>, vector<32x128xf32>
    tpu.strided_store %arg8[%c3_48, %c0_49], %54 {strides = array<i32: 4, 1>} : memref<128x128xf32, #tpu.memory_space<vmem>>, vector<32x128xf32>
    %c0_50 = arith.constant 0 : index
    %c0_51 = arith.constant 0 : index
    %56 = vector.load %arg8[%c0_50, %c0_51] : memref<128x128xf32, #tpu.memory_space<vmem>>, vector<128x128xf32>
    %cst_52 = arith.constant dense<0.000000e+00> : vector<128x128xf32>
    %57 = tpu.matmul %56, %56, %cst_52 {dimension_numbers = #tpu.dot_dimension_numbers<[1], [1], [0], [0], [0, 0, 1, 0], [], []>} : vector<128x128xf32>, vector<128x128xf32>, vector<128x128xf32> -> vector<128x128xf32>
    %c0_53 = arith.constant 0 : index
    %c2_54 = arith.constant 2 : index
    %c0_55 = arith.constant 0 : index
    %c0_56 = arith.constant 0 : index
    %58 = vector.load %arg7[%c0_53, %c2_54, %c0_55, %c0_56] : memref<2x4x128x128xf32, #tpu.memory_space<vmem>>, vector<1x1x128x128xf32>
    %59 = vector.shape_cast %58 : vector<1x1x128x128xf32> to vector<128x128xf32>
    %60 = vector.shape_cast %57 : vector<128x128xf32> to vector<1x1x128x128xf32>
    tpu.vector_store %arg7[%c0_53, %c2_54, %c0_55, %c0_56], %60 {strides = array<i32>} : memref<2x4x128x128xf32, #tpu.memory_space<vmem>>, vector<1x1x128x128xf32>,
    %61 = vector.extract_strided_slice %21 {offsets = [96, 0], sizes = [32, 128], strides = [1, 1]} : vector<128x512xf32> to vector<32x128xf32>
    %c0_57 = arith.constant 0 : index
    %c0_58 = arith.constant 0 : index
    %62 = tpu.strided_load %arg8[%c0_57, %c0_58] {strides = array<i32: 4, 1>} : memref<128x128xf32, #tpu.memory_space<vmem>>, vector<32x128xf32>
    tpu.strided_store %arg8[%c0_57, %c0_58], %61 {strides = array<i32: 4, 1>} : memref<128x128xf32, #tpu.memory_space<vmem>>, vector<32x128xf32>
    %63 = vector.extract_strided_slice %21 {offsets = [96, 128], sizes = [32, 128], strides = [1, 1]} : vector<128x512xf32> to vector<32x128xf32>
    %c1_59 = arith.constant 1 : index
    %c0_60 = arith.constant 0 : index
    %64 = tpu.strided_load %arg8[%c1_59, %c0_60] {strides = array<i32: 4, 1>} : memref<128x128xf32, #tpu.memory_space<vmem>>, vector<32x128xf32>
    tpu.strided_store %arg8[%c1_59, %c0_60], %63 {strides = array<i32: 4, 1>} : memref<128x128xf32, #tpu.memory_space<vmem>>, vector<32x128xf32>
    %65 = vector.extract_strided_slice %21 {offsets = [96, 256], sizes = [32, 128], strides = [1, 1]} : vector<128x512xf32> to vector<32x128xf32>
    %c2_61 = arith.constant 2 : index
    %c0_62 = arith.constant 0 : index
    %66 = tpu.strided_load %arg8[%c2_61, %c0_62] {strides = array<i32: 4, 1>} : memref<128x128xf32, #tpu.memory_space<vmem>>, vector<32x128xf32>
    tpu.strided_store %arg8[%c2_61, %c0_62], %65 {strides = array<i32: 4, 1>} : memref<128x128xf32, #tpu.memory_space<vmem>>, vector<32x128xf32>
    %67 = vector.extract_strided_slice %21 {offsets = [96, 384], sizes = [32, 128], strides = [1, 1]} : vector<128x512xf32> to vector<32x128xf32>
    %c3_63 = arith.constant 3 : index
    %c0_64 = arith.constant 0 : index
    %68 = tpu.strided_load %arg8[%c3_63, %c0_64] {strides = array<i32: 4, 1>} : memref<128x128xf32, #tpu.memory_space<vmem>>, vector<32x128xf32>
    tpu.strided_store %arg8[%c3_63, %c0_64], %67 {strides = array<i32: 4, 1>} : memref<128x128xf32, #tpu.memory_space<vmem>>, vector<32x128xf32>
    %c0_65 = arith.constant 0 : index
    %c0_66 = arith.constant 0 : index
    %69 = vector.load %arg8[%c0_65, %c0_66] : memref<128x128xf32, #tpu.memory_space<vmem>>, vector<128x128xf32>
    %cst_67 = arith.constant dense<0.000000e+00> : vector<128x128xf32>
    %70 = tpu.matmul %69, %69, %cst_67 {dimension_numbers = #tpu.dot_dimension_numbers<[1], [1], [0], [0], [0, 0, 1, 0], [], []>} : vector<128x128xf32>, vector<128x128xf32>, vector<128x128xf32> -> vector<128x128xf32>
    %c0_68 = arith.constant 0 : index
    %c3_69 = arith.constant 3 : index
    %c0_70 = arith.constant 0 : index
    %c0_71 = arith.constant 0 : index
    %71 = vector.load %arg7[%c0_68, %c3_69, %c0_70, %c0_71] : memref<2x4x128x128xf32, #tpu.memory_space<vmem>>, vector<1x1x128x128xf32>
    %72 = vector.shape_cast %71 : vector<1x1x128x128xf32> to vector<128x128xf32>
    %73 = vector.shape_cast %70 : vector<128x128xf32> to vector<1x1x128x128xf32>
    tpu.vector_store %arg7[%c0_68, %c3_69, %c0_70, %c0_71], %73 {strides = array<i32>} : memref<2x4x128x128xf32, #tpu.memory_space<vmem>>, vector<1x1x128x128xf32>,
    %74 = vector.extract_strided_slice %20 {offsets = [128, 0], sizes = [128, 512], strides = [1, 1]} : vector<256x512xf32> to vector<128x512xf32>
    %75 = vector.extract_strided_slice %74 {offsets = [0, 0], sizes = [32, 128], strides = [1, 1]} : vector<128x512xf32> to vector<32x128xf32>
    %c0_72 = arith.constant 0 : index
    %c0_73 = arith.constant 0 : index
    %76 = tpu.strided_load %arg8[%c0_72, %c0_73] {strides = array<i32: 4, 1>} : memref<128x128xf32, #tpu.memory_space<vmem>>, vector<32x128xf32>
    tpu.strided_store %arg8[%c0_72, %c0_73], %75 {strides = array<i32: 4, 1>} : memref<128x128xf32, #tpu.memory_space<vmem>>, vector<32x128xf32>
    %77 = vector.extract_strided_slice %74 {offsets = [0, 128], sizes = [32, 128], strides = [1, 1]} : vector<128x512xf32> to vector<32x128xf32>
    %c1_74 = arith.constant 1 : index
    %c0_75 = arith.constant 0 : index
    %78 = tpu.strided_load %arg8[%c1_74, %c0_75] {strides = array<i32: 4, 1>} : memref<128x128xf32, #tpu.memory_space<vmem>>, vector<32x128xf32>
    tpu.strided_store %arg8[%c1_74, %c0_75], %77 {strides = array<i32: 4, 1>} : memref<128x128xf32, #tpu.memory_space<vmem>>, vector<32x128xf32>
    %79 = vector.extract_strided_slice %74 {offsets = [0, 256], sizes = [32, 128], strides = [1, 1]} : vector<128x512xf32> to vector<32x128xf32>
    %c2_76 = arith.constant 2 : index
    %c0_77 = arith.constant 0 : index
    %80 = tpu.strided_load %arg8[%c2_76, %c0_77] {strides = array<i32: 4, 1>} : memref<128x128xf32, #tpu.memory_space<vmem>>, vector<32x128xf32>
    tpu.strided_store %arg8[%c2_76, %c0_77], %79 {strides = array<i32: 4, 1>} : memref<128x128xf32, #tpu.memory_space<vmem>>, vector<32x128xf32>
    %81 = vector.extract_strided_slice %74 {offsets = [0, 384], sizes = [32, 128], strides = [1, 1]} : vector<128x512xf32> to vector<32x128xf32>
    %c3_78 = arith.constant 3 : index
    %c0_79 = arith.constant 0 : index
    %82 = tpu.strided_load %arg8[%c3_78, %c0_79] {strides = array<i32: 4, 1>} : memref<128x128xf32, #tpu.memory_space<vmem>>, vector<32x128xf32>
    tpu.strided_store %arg8[%c3_78, %c0_79], %81 {strides = array<i32: 4, 1>} : memref<128x128xf32, #tpu.memory_space<vmem>>, vector<32x128xf32>
    %c0_80 = arith.constant 0 : index
    %c0_81 = arith.constant 0 : index
    %83 = vector.load %arg8[%c0_80, %c0_81] : memref<128x128xf32, #tpu.memory_space<vmem>>, vector<128x128xf32>
    %cst_82 = arith.constant dense<0.000000e+00> : vector<128x128xf32>
    %84 = tpu.matmul %83, %83, %cst_82 {dimension_numbers = #tpu.dot_dimension_numbers<[1], [1], [0], [0], [0, 0, 1, 0], [], []>} : vector<128x128xf32>, vector<128x128xf32>, vector<128x128xf32> -> vector<128x128xf32>
    %c1_83 = arith.constant 1 : index
    %c0_84 = arith.constant 0 : index
    %c0_85 = arith.constant 0 : index
    %c0_86 = arith.constant 0 : index
    %85 = vector.load %arg7[%c1_83, %c0_84, %c0_85, %c0_86] : memref<2x4x128x128xf32, #tpu.memory_space<vmem>>, vector<1x1x128x128xf32>
    %86 = vector.shape_cast %85 : vector<1x1x128x128xf32> to vector<128x128xf32>
    %87 = vector.shape_cast %84 : vector<128x128xf32> to vector<1x1x128x128xf32>
    tpu.vector_store %arg7[%c1_83, %c0_84, %c0_85, %c0_86], %87 {strides = array<i32>} : memref<2x4x128x128xf32, #tpu.memory_space<vmem>>, vector<1x1x128x128xf32>,
    %88 = vector.extract_strided_slice %74 {offsets = [32, 0], sizes = [32, 128], strides = [1, 1]} : vector<128x512xf32> to vector<32x128xf32>
    %c0_87 = arith.constant 0 : index
    %c0_88 = arith.constant 0 : index
    %89 = tpu.strided_load %arg8[%c0_87, %c0_88] {strides = array<i32: 4, 1>} : memref<128x128xf32, #tpu.memory_space<vmem>>, vector<32x128xf32>
    tpu.strided_store %arg8[%c0_87, %c0_88], %88 {strides = array<i32: 4, 1>} : memref<128x128xf32, #tpu.memory_space<vmem>>, vector<32x128xf32>
    %90 = vector.extract_strided_slice %74 {offsets = [32, 128], sizes = [32, 128], strides = [1, 1]} : vector<128x512xf32> to vector<32x128xf32>
    %c1_89 = arith.constant 1 : index
    %c0_90 = arith.constant 0 : index
    %91 = tpu.strided_load %arg8[%c1_89, %c0_90] {strides = array<i32: 4, 1>} : memref<128x128xf32, #tpu.memory_space<vmem>>, vector<32x128xf32>
    tpu.strided_store %arg8[%c1_89, %c0_90], %90 {strides = array<i32: 4, 1>} : memref<128x128xf32, #tpu.memory_space<vmem>>, vector<32x128xf32>
    %92 = vector.extract_strided_slice %74 {offsets = [32, 256], sizes = [32, 128], strides = [1, 1]} : vector<128x512xf32> to vector<32x128xf32>
    %c2_91 = arith.constant 2 : index
    %c0_92 = arith.constant 0 : index
    %93 = tpu.strided_load %arg8[%c2_91, %c0_92] {strides = array<i32: 4, 1>} : memref<128x128xf32, #tpu.memory_space<vmem>>, vector<32x128xf32>
    tpu.strided_store %arg8[%c2_91, %c0_92], %92 {strides = array<i32: 4, 1>} : memref<128x128xf32, #tpu.memory_space<vmem>>, vector<32x128xf32>
    %94 = vector.extract_strided_slice %74 {offsets = [32, 384], sizes = [32, 128], strides = [1, 1]} : vector<128x512xf32> to vector<32x128xf32>
    %c3_93 = arith.constant 3 : index
    %c0_94 = arith.constant 0 : index
    %95 = tpu.strided_load %arg8[%c3_93, %c0_94] {strides = array<i32: 4, 1>} : memref<128x128xf32, #tpu.memory_space<vmem>>, vector<32x128xf32>
    tpu.strided_store %arg8[%c3_93, %c0_94], %94 {strides = array<i32: 4, 1>} : memref<128x128xf32, #tpu.memory_space<vmem>>, vector<32x128xf32>
    %c0_95 = arith.constant 0 : index
    %c0_96 = arith.constant 0 : index
    %96 = vector.load %arg8[%c0_95, %c0_96] : memref<128x128xf32, #tpu.memory_space<vmem>>, vector<128x128xf32>
    %cst_97 = arith.constant dense<0.000000e+00> : vector<128x128xf32>
    %97 = tpu.matmul %96, %96, %cst_97 {dimension_numbers = #tpu.dot_dimension_numbers<[1], [1], [0], [0], [0, 0, 1, 0], [], []>} : vector<128x128xf32>, vector<128x128xf32>, vector<128x128xf32> -> vector<128x128xf32>
    %c1_98 = arith.constant 1 : index
    %c1_99 = arith.constant 1 : index
    %c0_100 = arith.constant 0 : index
    %c0_101 = arith.constant 0 : index
    %98 = vector.load %arg7[%c1_98, %c1_99, %c0_100, %c0_101] : memref<2x4x128x128xf32, #tpu.memory_space<vmem>>, vector<1x1x128x128xf32>
    %99 = vector.shape_cast %98 : vector<1x1x128x128xf32> to vector<128x128xf32>
    %100 = vector.shape_cast %97 : vector<128x128xf32> to vector<1x1x128x128xf32>
    tpu.vector_store %arg7[%c1_98, %c1_99, %c0_100, %c0_101], %100 {strides = array<i32>} : memref<2x4x128x128xf32, #tpu.memory_space<vmem>>, vector<1x1x128x128xf32>,
    %101 = vector.extract_strided_slice %74 {offsets = [64, 0], sizes = [32, 128], strides = [1, 1]} : vector<128x512xf32> to vector<32x128xf32>
    %c0_102 = arith.constant 0 : index
    %c0_103 = arith.constant 0 : index
    %102 = tpu.strided_load %arg8[%c0_102, %c0_103] {strides = array<i32: 4, 1>} : memref<128x128xf32, #tpu.memory_space<vmem>>, vector<32x128xf32>
    tpu.strided_store %arg8[%c0_102, %c0_103], %101 {strides = array<i32: 4, 1>} : memref<128x128xf32, #tpu.memory_space<vmem>>, vector<32x128xf32>
    %103 = vector.extract_strided_slice %74 {offsets = [64, 128], sizes = [32, 128], strides = [1, 1]} : vector<128x512xf32> to vector<32x128xf32>
    %c1_104 = arith.constant 1 : index
    %c0_105 = arith.constant 0 : index
    %104 = tpu.strided_load %arg8[%c1_104, %c0_105] {strides = array<i32: 4, 1>} : memref<128x128xf32, #tpu.memory_space<vmem>>, vector<32x128xf32>
    tpu.strided_store %arg8[%c1_104, %c0_105], %103 {strides = array<i32: 4, 1>} : memref<128x128xf32, #tpu.memory_space<vmem>>, vector<32x128xf32>
    %105 = vector.extract_strided_slice %74 {offsets = [64, 256], sizes = [32, 128], strides = [1, 1]} : vector<128x512xf32> to vector<32x128xf32>
    %c2_106 = arith.constant 2 : index
    %c0_107 = arith.constant 0 : index
    %106 = tpu.strided_load %arg8[%c2_106, %c0_107] {strides = array<i32: 4, 1>} : memref<128x128xf32, #tpu.memory_space<vmem>>, vector<32x128xf32>
    tpu.strided_store %arg8[%c2_106, %c0_107], %105 {strides = array<i32: 4, 1>} : memref<128x128xf32, #tpu.memory_space<vmem>>, vector<32x128xf32>
    %107 = vector.extract_strided_slice %74 {offsets = [64, 384], sizes = [32, 128], strides = [1, 1]} : vector<128x512xf32> to vector<32x128xf32>
    %c3_108 = arith.constant 3 : index
    %c0_109 = arith.constant 0 : index
    %108 = tpu.strided_load %arg8[%c3_108, %c0_109] {strides = array<i32: 4, 1>} : memref<128x128xf32, #tpu.memory_space<vmem>>, vector<32x128xf32>
    tpu.strided_store %arg8[%c3_108, %c0_109], %107 {strides = array<i32: 4, 1>} : memref<128x128xf32, #tpu.memory_space<vmem>>, vector<32x128xf32>
    %c0_110 = arith.constant 0 : index
    %c0_111 = arith.constant 0 : index
    %109 = vector.load %arg8[%c0_110, %c0_111] : memref<128x128xf32, #tpu.memory_space<vmem>>, vector<128x128xf32>
    %cst_112 = arith.constant dense<0.000000e+00> : vector<128x128xf32>
    %110 = tpu.matmul %109, %109, %cst_112 {dimension_numbers = #tpu.dot_dimension_numbers<[1], [1], [0], [0], [0, 0, 1, 0], [], []>} : vector<128x128xf32>, vector<128x128xf32>, vector<128x128xf32> -> vector<128x128xf32>
    %c1_113 = arith.constant 1 : index
    %c2_114 = arith.constant 2 : index
    %c0_115 = arith.constant 0 : index
    %c0_116 = arith.constant 0 : index
    %111 = vector.load %arg7[%c1_113, %c2_114, %c0_115, %c0_116] : memref<2x4x128x128xf32, #tpu.memory_space<vmem>>, vector<1x1x128x128xf32>
    %112 = vector.shape_cast %111 : vector<1x1x128x128xf32> to vector<128x128xf32>
    %113 = vector.shape_cast %110 : vector<128x128xf32> to vector<1x1x128x128xf32>
    tpu.vector_store %arg7[%c1_113, %c2_114, %c0_115, %c0_116], %113 {strides = array<i32>} : memref<2x4x128x128xf32, #tpu.memory_space<vmem>>, vector<1x1x128x128xf32>,
    %114 = vector.extract_strided_slice %74 {offsets = [96, 0], sizes = [32, 128], strides = [1, 1]} : vector<128x512xf32> to vector<32x128xf32>
    %c0_117 = arith.constant 0 : index
    %c0_118 = arith.constant 0 : index
    %115 = tpu.strided_load %arg8[%c0_117, %c0_118] {strides = array<i32: 4, 1>} : memref<128x128xf32, #tpu.memory_space<vmem>>, vector<32x128xf32>
    tpu.strided_store %arg8[%c0_117, %c0_118], %114 {strides = array<i32: 4, 1>} : memref<128x128xf32, #tpu.memory_space<vmem>>, vector<32x128xf32>
    %116 = vector.extract_strided_slice %74 {offsets = [96, 128], sizes = [32, 128], strides = [1, 1]} : vector<128x512xf32> to vector<32x128xf32>
    %c1_119 = arith.constant 1 : index
    %c0_120 = arith.constant 0 : index
    %117 = tpu.strided_load %arg8[%c1_119, %c0_120] {strides = array<i32: 4, 1>} : memref<128x128xf32, #tpu.memory_space<vmem>>, vector<32x128xf32>
    tpu.strided_store %arg8[%c1_119, %c0_120], %116 {strides = array<i32: 4, 1>} : memref<128x128xf32, #tpu.memory_space<vmem>>, vector<32x128xf32>
    %118 = vector.extract_strided_slice %74 {offsets = [96, 256], sizes = [32, 128], strides = [1, 1]} : vector<128x512xf32> to vector<32x128xf32>
    %c2_121 = arith.constant 2 : index
    %c0_122 = arith.constant 0 : index
    %119 = tpu.strided_load %arg8[%c2_121, %c0_122] {strides = array<i32: 4, 1>} : memref<128x128xf32, #tpu.memory_space<vmem>>, vector<32x128xf32>
    tpu.strided_store %arg8[%c2_121, %c0_122], %118 {strides = array<i32: 4, 1>} : memref<128x128xf32, #tpu.memory_space<vmem>>, vector<32x128xf32>
    %120 = vector.extract_strided_slice %74 {offsets = [96, 384], sizes = [32, 128], strides = [1, 1]} : vector<128x512xf32> to vector<32x128xf32>
    %c3_123 = arith.constant 3 : index
    %c0_124 = arith.constant 0 : index
    %121 = tpu.strided_load %arg8[%c3_123, %c0_124] {strides = array<i32: 4, 1>} : memref<128x128xf32, #tpu.memory_space<vmem>>, vector<32x128xf32>
    tpu.strided_store %arg8[%c3_123, %c0_124], %120 {strides = array<i32: 4, 1>} : memref<128x128xf32, #tpu.memory_space<vmem>>, vector<32x128xf32>
    %c0_125 = arith.constant 0 : index
    %c0_126 = arith.constant 0 : index
    %122 = vector.load %arg8[%c0_125, %c0_126] : memref<128x128xf32, #tpu.memory_space<vmem>>, vector<128x128xf32>
    %cst_127 = arith.constant dense<0.000000e+00> : vector<128x128xf32>
    %123 = tpu.matmul %122, %122, %cst_127 {dimension_numbers = #tpu.dot_dimension_numbers<[1], [1], [0], [0], [0, 0, 1, 0], [], []>} : vector<128x128xf32>, vector<128x128xf32>, vector<128x128xf32> -> vector<128x128xf32>
    %c1_128 = arith.constant 1 : index
    %c3_129 = arith.constant 3 : index
    %c0_130 = arith.constant 0 : index
    %c0_131 = arith.constant 0 : index
    %124 = vector.load %arg7[%c1_128, %c3_129, %c0_130, %c0_131] : memref<2x4x128x128xf32, #tpu.memory_space<vmem>>, vector<1x1x128x128xf32>
    %125 = vector.shape_cast %124 : vector<1x1x128x128xf32> to vector<128x128xf32>
    %126 = vector.shape_cast %123 : vector<128x128xf32> to vector<1x1x128x128xf32>
    tpu.vector_store %arg7[%c1_128, %c3_129, %c0_130, %c0_131], %126 {strides = array<i32>} : memref<2x4x128x128xf32, #tpu.memory_space<vmem>>, vector<1x1x128x128xf32>,
    return
  }
  func.func @transform_0(%arg0: i32) -> (i32, i32) {
    %c0_i32 = arith.constant 0 : i32
    %c0_i32_0 = arith.constant 0 : i32
    return %arg0, %c0_i32 : i32, i32
  }
  func.func @transform_1(%arg0: i32) -> (i32, i32) {
    %c0_i32 = arith.constant 0 : i32
    %c0_i32_0 = arith.constant 0 : i32
    return %arg0, %c0_i32 : i32, i32
  }
  func.func @transform_2(%arg0: i32) -> (i32, i32) {
    %c0_i32 = arith.constant 0 : i32
    %c0_i32_0 = arith.constant 0 : i32
    %c0_i32_1 = arith.constant 0 : i32
    return %c0_i32, %c0_i32_0 : i32, i32
  }
  func.func @transform_3(%arg0: i32) -> (i32, i32) {
    %c0_i32 = arith.constant 0 : i32
    %c0_i32_0 = arith.constant 0 : i32
    %c0_i32_1 = arith.constant 0 : i32
    return %c0_i32, %c0_i32_0 : i32, i32
  }
  func.func @transform_4(%arg0: i32) -> (i32, i32) {
    %c0_i32 = arith.constant 0 : i32
    %c0_i32_0 = arith.constant 0 : i32
    %c0_i32_1 = arith.constant 0 : i32
    return %c0_i32, %c0_i32_0 : i32, i32
  }
  func.func @transform_5(%arg0: i32) -> (i32, i32) {
    %c0_i32 = arith.constant 0 : i32
    %c0_i32_0 = arith.constant 0 : i32
    %c0_i32_1 = arith.constant 0 : i32
    return %c0_i32, %c0_i32_0 : i32, i32
  }
  func.func @transform_6(%arg0: i32) -> (i32, i32, i32, i32) {
    %c0_i32 = arith.constant 0 : i32
    %c0_i32_0 = arith.constant 0 : i32
    %c0_i32_1 = arith.constant 0 : i32
    %c0_i32_2 = arith.constant 0 : i32
    return %arg0, %c0_i32, %c0_i32_0, %c0_i32_1 : i32, i32, i32, i32
  }
}

</mosaic_0001>

<bundles_post_ra>
// kernel: tpu_custom_call.1
= control target key start
LH: loop header
LB: loop body
LE: loop exit
PB: predicated region body
PF: predicated region fallthrough
CT: control target
= control target key end

     0   :  { %11 = vsyncpa [#allocation4], 0  ;;  %s6265_s0 = inlined_call_operand.vmem [shape: f32[512,32], index: 0, kind: input, shape index: {}]   ;;  %s6266_s1 = inlined_call_operand.vmem [shape: f32[512,32], index: 1, kind: input, shape index: {}]   ;;  %s6267_s2 = inlined_call_operand.vmem [shape: f32[64,128], index: 2, kind: input, shape index: {}]   ;;  %s6268_s3 = inlined_call_operand.vmem [shape: f32[1,128], index: 3, kind: input, shape index: {}]   ;;  %s6269_s4 = inlined_call_operand.vmem [shape: f32[128,512], index: 4, kind: input, shape index: {}]   ;;  %s6270_s5 = inlined_call_operand.vmem [shape: f32[1,512], index: 5, kind: input, shape index: {}]   ;;  %s6271_s6 = inlined_call_operand.hbm [shape: f32[4,4,128,128], index: 6, kind: output, shape index: {}]  }
   0x1   :  { %13 = vsyncpa [#allocation4 + $0x1], 0  ;;  %s4777_s21 = smov 0   ;;  %s4779_s22 = smov 0  }
   0x2   :  { %s4781_s23 = smov 0   ;;  %s4783_s24 = smov 0  }
   0x3 LB: > { %s4798_s25 = sadd.s32 4294967295, %s4735_s24   ;;  %s3252_s26 = sadd.s32 4294967294, %s4735_s24   ;;  %s4735_s24 = sphi %s4783_s24, %s6397_s24   ;;  %s4731_s23 = sphi %s4781_s23, %s6396_s23   ;;  %s4727_s22 = sphi %s4779_s22, %s6395_s22   ;;  %s4723_s21 = sphi %s4777_s21, %s6394_s21  }
   0x4   : > { %s4802_s27 = sadd.s32 1, %s4735_s24   ;;  %s162_s28 = sadd.s32 1, %s4731_s23 }
   0x5   : > { %s159_s29 = ssub.s32 %s4735_s24, %s4802_s27  ;;  %p172_p0 = scmp.ne.s32.totalorder %s4731_s23, %s4727_s22 }
   0x6   : > { %p160_p1 = scmp.eq.s32.totalorder %s159_s29, 0  ;;  %p173_p2 = scmp.eq.s32.totalorder %s4798_s25, 1 }
   0x7   : > { %p178_p3 = scmp.ne.s32.totalorder %s4727_s22, %s4723_s21  ;;  %p179_p4 = scmp.eq.s32.totalorder %s3252_s26, 1 }
   0x8   : > { %s4813_s30 = scalar_select %p160_p1, %s4731_s23, %s162_s28  }
   0x9   : > { %p4815_p5 = por %p173_p2, %p172_p0  ;;  %p4819_p6 = por %p179_p4, %p178_p3 }
   0xa   : > { %p3255_p7 = scmp.ge.s32.totalorder %s4735_s24, 1  ;;  %p227_p8 = scmp.lt.s32.totalorder %s4735_s24, 3 }
   0xc   : > { %p228_p9 = pnand %p3255_p7, %p227_p8 }
   0xe   : > { %231 = sbr.rel (%p228_p9) target bundleno = 1136 (0x470), region = 44 }
  0x15   : > { %s3257_s9 = sshll.u32 %s4798_s25, 5  ;;  %v500_v0 = vld [vmem:[%s6267_s2] sm:$0xff]  ;;  %v501_v1 = vld [vmem:[%s6267_s2 + $0x8] sm:$0xff]  ;;  %v502_v2 = vld [vmem:[%s6267_s2 + $0x10] sm:$0xff]  ;;  %s4737_s16 = smov 32   ;;  %vm467_vm0 = vcmask 261120  }
  0x16   : > { %p263_p10 = scmp.lt.s32.totalorder %s3257_s9, 63  ;;  %v4222_v3 = vpack.c.bf16 %v501_v1, %v500_v0  ;;  %v503_v4 = vld [vmem:[%s6267_s2 + $0x18] sm:$0xff]  ;;  %v504_v6 = vld [vmem:[%s6267_s2 + $0x20] sm:$0xff]  ;;  %v505_v7 = vld [vmem:[%s6267_s2 + $0x28] sm:$0xff]  ;;  %vm515_vm1 = vcmask 523264   ;;  %s259_s19 = sand.u32 1, %s4727_s22  }
  0x17   : > { %v4226_v5 = vpack.c.bf16 %v503_v4, %v502_v2  ;;  %v4230_v8 = vpack.c.bf16 %v505_v7, %v504_v6  ;;  %v506_v9 = vld [vmem:[%s6267_s2 + $0x30] sm:$0xff]  ;;  %v507_v12 = vld [vmem:[%s6267_s2 + $0x38] sm:$0xff]  ;;  %v998_v37 = vld [vmem:[%s6269_s4 + $0x8] sm:$0xff]  ;;  %s3256_s20 = sshll.u32 %s259_s19, 10  ;;  %s3413_s29 = sshll.u32 %s4798_s25, 14 }
  0x18   : > { %s6399_s9 = smov (!%p263_p10, %s3257_s9), 63  ;;  %4223 = vmatprep.subr.bf16.mxu0 %v4222_v3  ;;  %4558 = vmatprep.subr.bf16.mxu1 %v4222_v3  ;;  %v4234_v15 = vpack.c.bf16 %v507_v12, %v506_v9  ;;  %v1002_v38 = vld [vmem:[%s6269_s4 + $0x28] sm:$0xff]  ;;  %v1000_v41 = vld [vmem:[%s6269_s4 + $0x18] sm:$0xff]  ;;  %v999_v53 = vld [vmem:[%s6269_s4 + $0x10] sm:$0xff]  ;;  %s6065_s26 = scalar_lea.vmem [#allocation3], %s3256_s20 }
  0x19   : > { %4225 = vmatpush3.bf16.msra.mxu0 %v4222_v3  ;;  %4562 = vmatpush3.bf16.msra.mxu1 %v4222_v3  ;;  %s3258_s28 = sshll.u32 %s6399_s9, 3  ;;  %v4238_v40 = vpack.c.bf16 %v1002_v38, %v998_v37  ;;  %v1004_v42 = vld [vmem:[%s6269_s4 + $0x38] sm:$0xff]  ;;  %v1003_v54 = vld [vmem:[%s6269_s4 + $0x30] sm:$0xff]  ;;  %s3178_s10 = sshll.u32 %s6065_s26, 4  ;;  %s6218_s10 = int_to_ptr.vmem [resolvable:$true] %s3178_s10 }
  0x1a   : > { %4227 = vmatprep.subr.bf16.mxu0 %v4226_v5  ;;  %4559 = vmatprep.subr.bf16.mxu1 %v4226_v5  ;;  %s4852_s11 = scalar_lea.vmem %s6266_s1, %s3258_s28  ;;  %v4270_v43 = vpack.c.bf16 %v1004_v42, %v1000_v41  ;;  %s4941_s15 = scalar_lea.vmem %s6265_s0, %s3258_s28  ;;  %v1008_v57 = vld [vmem:[%s6269_s4 + $0x58] sm:$0xff]  ;;  %v4272_v60 = vpack.c.bf16 %v1003_v54, %v999_v53  ;;  %v1007_v2 = vld [vmem:[%s6269_s4 + $0x50] sm:$0xff]  ;;  %v1010_v53 = vld [vmem:[%s6269_s4 + $0x68] sm:$0xff] }
  0x1b   : > { %v307_v10 = vld [vmem:[%s4852_s11] sm:$0xff]  ;;  %v309_v11 = vld [vmem:[%s4852_s11 + $0x10] sm:$0xff]  ;;  %v308_v13 = vld [vmem:[%s4852_s11 + $0x8] sm:$0xff]  ;;  %s6216_s14 = scalar_lea.hbm %s6271_s6, %s3413_s29  ;;  %s6224_s25 = scalar_lea.sflag [#allocation4], %s259_s19 }
  0x1c   : > { %371 = vrot.lane.b32.xlu0 %v307_v10, %s4737_s16  ;;  %375 = vrot.lane.b32.xlu1 %v309_v11, %s4737_s16  ;;  %v310_v14 = vld [vmem:[%s4852_s11 + $0x18] sm:$0xff]  ;;  %v311_v16 = vld [vmem:[%s4852_s11 + $0x20] sm:$0xff]  ;;  %s4739_s17 = smov [#allocation3]  }
  0x1d   : > { %4229 = vmatpush3.bf16.msra.mxu0 %v4226_v5  ;;  %4563 = vmatpush3.bf16.msra.mxu1 %v4226_v5  ;;  %v312_v17 = vld [vmem:[%s4852_s11 + $0x28] sm:$0xff]  ;;  %v313_v18 = vld [vmem:[%s4852_s11 + $0x30] sm:$0xff]  ;;  %v314_v19 = vld [vmem:[%s4852_s11 + $0x38] sm:$0xff] }
  0x1e   : > { %4231 = vmatprep.subr.bf16.mxu0 %v4230_v8  ;;  %4560 = vmatprep.subr.bf16.mxu1 %v4230_v8  ;;  %v315_v20 = vld [vmem:[%s4852_s11 + $0x40] sm:$0xff]  ;;  %v316_v21 = vld [vmem:[%s4852_s11 + $0x48] sm:$0xff]  ;;  %v317_v22 = vld [vmem:[%s4852_s11 + $0x50] sm:$0xff] }
  0x1f   : > { %v318_v23 = vld [vmem:[%s4852_s11 + $0x58] sm:$0xff]  ;;  %v319_v24 = vld [vmem:[%s4852_s11 + $0x60] sm:$0xff]  ;;  %v320_v25 = vld [vmem:[%s4852_s11 + $0x68] sm:$0xff] }
  0x20   : > { %373 = vrot.lane.b32.xlu0 %v308_v13, %s4737_s16  ;;  %377 = vrot.lane.b32.xlu1 %v310_v14, %s4737_s16  ;;  %v321_v26 = vld [vmem:[%s4852_s11 + $0x70] sm:$0xff]  ;;  %v322_v27 = vld [vmem:[%s4852_s11 + $0x78] sm:$0xff] }
  0x21   : > { %4233 = vmatpush3.bf16.msra.mxu0 %v4230_v8  ;;  %4564 = vmatpush3.bf16.msra.mxu1 %v4230_v8  ;;  %v323_v28 = vld [vmem:[%s4852_s11 + $0x80] sm:$0xff]  ;;  %v324_v29 = vld [vmem:[%s4852_s11 + $0x88] sm:$0xff]  ;;  %v325_v30 = vld [vmem:[%s4852_s11 + $0x90] sm:$0xff] }
  0x22   : > { %4235 = vmatprep.subr.bf16.mxu0 %v4234_v15  ;;  %4561 = vmatprep.subr.bf16.mxu1 %v4234_v15  ;;  %v326_v31 = vld [vmem:[%s4852_s11 + $0x98] sm:$0xff]  ;;  %v327_v32 = vld [vmem:[%s4852_s11 + $0xa0] sm:$0xff]  ;;  %v328_v33 = vld [vmem:[%s4852_s11 + $0xa8] sm:$0xff] }
  0x23   : > { %v329_v34 = vld [vmem:[%s4852_s11 + $0xb0] sm:$0xff]  ;;  %v330_v35 = vld [vmem:[%s4852_s11 + $0xb8] sm:$0xff]  ;;  %v331_v36 = vld [vmem:[%s4852_s11 + $0xc0] sm:$0xff] }
  0x24   : > { %379 = vrot.lane.b32.xlu0 %v311_v16, %s4737_s16  ;;  %381 = vrot.lane.b32.xlu1 %v312_v17, %s4737_s16  ;;  %v332_v39 = vld [vmem:[%s4852_s11 + $0xc8] sm:$0xff]  ;;  %v333_v44 = vld [vmem:[%s4852_s11 + $0xd0] sm:$0xff] }
  0x25   : > { %4237 = vmatpush3.bf16.msra.mxu0 %v4234_v15  ;;  %4565 = vmatpush3.bf16.msra.mxu1 %v4234_v15  ;;  %v334_v45 = vld [vmem:[%s4852_s11 + $0xd8] sm:$0xff]  ;;  %v335_v46 = vld [vmem:[%s4852_s11 + $0xe0] sm:$0xff]  ;;  %v336_v47 = vld [vmem:[%s4852_s11 + $0xe8] sm:$0xff] }
  0x26   : > { %4239 = vmatprep.subr.bf16.mxu1 %v4238_v40  ;;  %4271 = vmatprep.subr.bf16.mxu0 %v4270_v43  ;;  %v337_v48 = vld [vmem:[%s4852_s11 + $0xf0] sm:$0xff]  ;;  %v338_v49 = vld [vmem:[%s4852_s11 + $0xf8] sm:$0xff]  ;;  %v275_v50 = vld [vmem:[%s4941_s15] sm:$0xff]  ;;  %s4673_s11 = scalar_lea.vmem %s6218_s10, 16384 }
  0x27   : > { %v277_v56 = vld [vmem:[%s4941_s15 + $0x10] sm:$0xff]  ;;  %v1012_v58 = vld [vmem:[%s6269_s4 + $0x78] sm:$0xff]  ;;  %v276_v59 = vld [vmem:[%s4941_s15 + $0x8] sm:$0xff]  ;;  %p4674_p11 = scmp.ne.s32.totalorder %s6218_s10, %s4673_s11 }
  0x28   : > { %383 = vrot.lane.b32.xlu0 %v313_v18, %s4737_s16  ;;  %385 = vrot.lane.b32.xlu1 %v314_v19, %s4737_s16  ;;  %v278_v0 = vld [vmem:[%s4941_s15 + $0x18] sm:$0xff]  ;;  %v4274_v1 = vpack.c.bf16 %v1012_v58, %v1008_v57  ;;  %v1011_v3 = vld [vmem:[%s6269_s4 + $0x70] sm:$0xff] }
  0x29   : > { %v1016_v5 = vld [vmem:[%s6269_s4 + $0x98] sm:$0xff]  ;;  %v279_v7 = vld [vmem:[%s4941_s15 + $0x20] sm:$0xff]  ;;  %v4276_v9 = vpack.c.bf16 %v1011_v3, %v1007_v2  ;;  %v280_v12 = vld [vmem:[%s4941_s15 + $0x28] sm:$0xff]  ;;  %p4675_p12 = pnand %p4674_p11, %p4815_p5 }
  0x2a   : > { %v1020_v6 = vld [vmem:[%s6269_s4 + $0xb8] sm:$0xff]  ;;  %v1015_v14 = vld [vmem:[%s6269_s4 + $0x90] sm:$0xff]  ;;  %v288_v40 = vld [vmem:[%s4941_s15 + $0x68] sm:$0xff] }
  0x2b   : > { %v4278_v13 = vpack.c.bf16 %v1020_v6, %v1016_v5  ;;  %v1019_v15 = vld [vmem:[%s6269_s4 + $0xb0] sm:$0xff]  ;;  %v1018_v2 = vld [vmem:[%s6269_s4 + $0xa8] sm:$0xff]  ;;  %p4676_p13 = pneg %p4675_p12 }
  0x2c   : > { %387 = vrot.lane.b32.xlu0 %v315_v20, %s4737_s16  ;;  %389 = vrot.lane.b32.xlu1 %v316_v21, %s4737_s16  ;;  %v281_v17 = vld [vmem:[%s4941_s15 + $0x30] sm:$0xff]  ;;  %v4280_v19 = vpack.c.bf16 %v1019_v15, %v1015_v14 }
  0x2d   : > { %v289_v42 = vld [vmem:[%s4941_s15 + $0x70] sm:$0xff] }
  0x30   : > { %391 = vrot.lane.b32.xlu0 %v317_v22, %s4737_s16  ;;  %393 = vrot.lane.b32.xlu1 %v318_v23, %s4737_s16  ;;  %v282_v22 = vld [vmem:[%s4941_s15 + $0x38] sm:$0xff] }
  0x34   : > { %395 = vrot.lane.b32.xlu0 %v319_v24, %s4737_s16  ;;  %397 = vrot.lane.b32.xlu1 %v320_v25, %s4737_s16  ;;  %v283_v24 = vld [vmem:[%s4941_s15 + $0x40] sm:$0xff] }
  0x38   : > { %399 = vrot.lane.b32.xlu0 %v321_v26, %s4737_s16  ;;  %401 = vrot.lane.b32.xlu1 %v322_v27, %s4737_s16 }
  0x3c   : > { %403 = vrot.lane.b32.xlu0 %v323_v28, %s4737_s16  ;;  %405 = vrot.lane.b32.xlu1 %v324_v29, %s4737_s16  ;;  %v284_v28 = vld [vmem:[%s4941_s15 + $0x48] sm:$0xff] }
  0x40   : > { %407 = vrot.lane.b32.xlu0 %v325_v30, %s4737_s16  ;;  %409 = vrot.lane.b32.xlu1 %v326_v31, %s4737_s16  ;;  %v285_v30 = vld [vmem:[%s4941_s15 + $0x50] sm:$0xff] }
  0x44   : > { %411 = vrot.lane.b32.xlu0 %v327_v32, %s4737_s16  ;;  %413 = vrot.lane.b32.xlu1 %v328_v33, %s4737_s16 }
  0x48   : > { %415 = vrot.lane.b32.xlu0 %v329_v34, %s4737_s16  ;;  %417 = vrot.lane.b32.xlu1 %v330_v35, %s4737_s16  ;;  %v286_v34 = vld [vmem:[%s4941_s15 + $0x58] sm:$0xff] }
  0x4c   : > { %419 = vrot.lane.b32.xlu0 %v331_v36, %s4737_s16  ;;  %421 = vrot.lane.b32.xlu1 %v332_v39, %s4737_s16  ;;  %v287_v36 = vld [vmem:[%s4941_s15 + $0x60] sm:$0xff] }
  0x50   : > { %423 = vrot.lane.b32.xlu0 %v333_v44, %s4737_s16  ;;  %425 = vrot.lane.b32.xlu1 %v334_v45, %s4737_s16 }
  0x54   : > { %427 = vrot.lane.b32.xlu0 %v335_v46, %s4737_s16  ;;  %429 = vrot.lane.b32.xlu1 %v336_v47, %s4737_s16  ;;  %v290_v46 = vld [vmem:[%s4941_s15 + $0x78] sm:$0xff] }
  0x58   : > { %431 = vrot.lane.b32.xlu0 %v337_v48, %s4737_s16  ;;  %433 = vrot.lane.b32.xlu1 %v338_v49, %s4737_s16  ;;  %v292_v48 = vld [vmem:[%s4941_s15 + $0x88] sm:$0xff]  ;;  %v997_v49 = vld [vmem:[%s6269_s4] sm:$0xff] }
  0x8e   : > { %v372_v51 = vpop.permute.xlu0 %371  ;;  %v376_v52 = vpop.permute.xlu1 %375 }
  0x8f   : > { %v468_v55 = vsel %vm467_vm0, %v275_v50, %v372_v51  ;;  %v470_v61 = vsel %vm467_vm0, %v277_v56, %v376_v52  ;;  %v1001_v50 = vld [vmem:[%s6269_s4 + $0x20] sm:$0xff]  ;;  %v1006_v52 = vld [vmem:[%s6269_s4 + $0x48] sm:$0xff] }
  0x90   : > { %3726 = vmatprep.mubr.msk.f32.mxu0 %vm515_vm1, %v468_v55  ;;  %v291_v51 = vld [vmem:[%s4941_s15 + $0x80] sm:$0xff]  ;;  %v4240_v57 = vpack.c.bf16 %v1001_v50, %v997_v49  ;;  %v1026_v49 = vld [vmem:[%s6269_s4 + $0xe8] sm:$0xff]  ;;  %v1024_v50 = vld [vmem:[%s6269_s4 + $0xd8] sm:$0xff] }
  0x92   : > { %v374_v62 = vpop.permute.xlu0 %373  ;;  %v378_v63 = vpop.permute.xlu1 %377 }
  0x93   : > { %v469_v4 = vsel %vm467_vm0, %v276_v59, %v374_v62  ;;  %v471_v8 = vsel %vm467_vm0, %v278_v0, %v378_v63  ;;  %v1005_v62 = vld [vmem:[%s6269_s4 + $0x40] sm:$0xff]  ;;  %v294_v0 = vld [vmem:[%s4941_s15 + $0x98] sm:$0xff] }
  0x94   : > { %3727 = vmatmul.mubr.msk.f32.vlgmr.msra.gmra.mrb[0].mxu0 %vm515_vm1, %v469_v4  ;;  %v1009_v63 = vld [vmem:[%s6269_s4 + $0x60] sm:$0xff] }
  0x95   : > { %3729 = vmatprep.mubr.msk.f32.mxu0 %vm515_vm1, %v470_v61  ;;  %4273 = vmatpush1.bf16.msra.mxu0 %v4272_v60  ;;  %v293_v60 = vld [vmem:[%s4941_s15 + $0x90] sm:$0xff]  ;;  %v4242_v61 = vpack.c.bf16 %v1010_v53, %v1006_v52  ;;  %v4244_v5 = vpack.c.bf16 %v1009_v63, %v1005_v62  ;;  %v1028_v52 = vld [vmem:[%s6269_s4 + $0xf8] sm:$0xff]  ;;  %v1021_v53 = vld [vmem:[%s6269_s4 + $0xc0] sm:$0xff] }
  0x96   : > { %v380_v10 = vpop.permute.xlu0 %379  ;;  %v382_v11 = vpop.permute.xlu1 %381  ;;  %4275 = vmatprep.subr.bf16.mxu0 %v4274_v1  ;;  %v1014_v1 = vld [vmem:[%s6269_s4 + $0x88] sm:$0xff]  ;;  %v1032_v62 = vld [vmem:[%s6269_s4 + $0x118] sm:$0xff] }
  0x97   : > { %v472_v16 = vsel %vm467_vm0, %v279_v7, %v380_v10  ;;  %v473_v18 = vsel %vm467_vm0, %v280_v12, %v382_v11  ;;  %v1017_v10 = vld [vmem:[%s6269_s4 + $0xa0] sm:$0xff]  ;;  %v296_v12 = vld [vmem:[%s4941_s15 + $0xa8] sm:$0xff] }
  0x98   : > { %3730 = vmatmul.mubr.msk.f32.gmra.mrb[2].mxu0 %vm515_vm1, %v471_v8  ;;  %v4246_v8 = vpack.c.bf16 %v1018_v2, %v1014_v1  ;;  %v295_v11 = vld [vmem:[%s4941_s15 + $0xa0] sm:$0xff] }
  0x99   : > { %3732 = vmatprep.mubr.msk.f32.mxu0 %vm515_vm1, %v472_v16  ;;  %4277 = vmatpush1.bf16.msra.mxu0 %v4276_v9  ;;  %v1013_v9 = vld [vmem:[%s6269_s4 + $0x80] sm:$0xff] }
  0x9a   : > { %v384_v20 = vpop.permute.xlu0 %383  ;;  %v386_v21 = vpop.permute.xlu1 %385  ;;  %4279 = vmatprep.subr.bf16.mxu0 %v4278_v13  ;;  %v4248_v15 = vpack.c.bf16 %v1017_v10, %v1013_v9  ;;  %v1029_v1 = vld [vmem:[%s6269_s4 + $0x100] sm:$0xff]  ;;  %v1042_v9 = vld [vmem:[%s6269_s4 + $0x168] sm:$0xff]  ;;  %v1040_v10 = vld [vmem:[%s6269_s4 + $0x158] sm:$0xff] }
  0x9b   : > { %v474_v23 = vsel %vm467_vm0, %v281_v17, %v384_v20  ;;  %v475_v25 = vsel %vm467_vm0, %v282_v22, %v386_v21  ;;  %v1033_v2 = vld [vmem:[%s6269_s4 + $0x120] sm:$0xff] }
  0x9c   : > { %3733 = vmatmul.mubr.msk.f32.gmra.mrb[4].mxu0 %vm515_vm1, %v473_v18  ;;  %v297_v18 = vld [vmem:[%s4941_s15 + $0xb0] sm:$0xff] }
  0x9d   : > { %3735 = vmatprep.mubr.msk.f32.mxu0 %vm515_vm1, %v474_v23  ;;  %4281 = vmatpush1.bf16.msra.mxu0 %v4280_v19  ;;  %v298_v19 = vld [vmem:[%s4941_s15 + $0xb8] sm:$0xff] }
  0x9e   : > { %v388_v26 = vpop.permute.xlu0 %387  ;;  %v390_v27 = vpop.permute.xlu1 %389 }
  0x9f   : > { %v476_v29 = vsel %vm467_vm0, %v283_v24, %v388_v26  ;;  %v477_v31 = vsel %vm467_vm0, %v284_v28, %v390_v27  ;;  %v299_v24 = vld [vmem:[%s4941_s15 + $0xc0] sm:$0xff] }
  0xa0   : > { %3736 = vmatmul.mubr.msk.f32.gmra.mrb[6].mxu0 %vm515_vm1, %v475_v25  ;;  %v300_v25 = vld [vmem:[%s4941_s15 + $0xc8] sm:$0xff] }
  0xa1   : > { %3738 = vmatprep.mubr.msk.f32.mxu0 %vm515_vm1, %v476_v29 }
  0xa2   : > { %v392_v32 = vpop.permute.xlu0 %391  ;;  %v394_v33 = vpop.permute.xlu1 %393 }
  0xa3   : > { %v478_v35 = vsel %vm467_vm0, %v285_v30, %v392_v32  ;;  %v479_v37 = vsel %vm467_vm0, %v286_v34, %v394_v33  ;;  %v301_v30 = vld [vmem:[%s4941_s15 + $0xd0] sm:$0xff] }
  0xa4   : > { %3739 = vmatmul.mubr.msk.f32.gmra.mrb[8].mxu0 %vm515_vm1, %v477_v31  ;;  %v302_v31 = vld [vmem:[%s4941_s15 + $0xd8] sm:$0xff] }
  0xa5   : > { %3741 = vmatprep.mubr.msk.f32.mxu0 %vm515_vm1, %v478_v35 }
  0xa6   : > { %v396_v38 = vpop.permute.xlu0 %395  ;;  %v398_v39 = vpop.permute.xlu1 %397 }
  0xa7   : > { %v480_v41 = vsel %vm467_vm0, %v287_v36, %v396_v38  ;;  %v481_v43 = vsel %vm467_vm0, %v288_v40, %v398_v39  ;;  %v303_v36 = vld [vmem:[%s4941_s15 + $0xe0] sm:$0xff] }
  0xa8   : > { %3742 = vmatmul.mubr.msk.f32.gmra.mrb[10].mxu0 %vm515_vm1, %v479_v37  ;;  %v304_v37 = vld [vmem:[%s4941_s15 + $0xe8] sm:$0xff] }
  0xa9   : > { %3744 = vmatprep.mubr.msk.f32.mxu0 %vm515_vm1, %v480_v41 }
  0xaa   : > { %v400_v44 = vpop.permute.xlu0 %399  ;;  %v402_v45 = vpop.permute.xlu1 %401 }
  0xab   : > { %v482_v47 = vsel %vm467_vm0, %v289_v42, %v400_v44  ;;  %v483_v54 = vsel %vm467_vm0, %v290_v46, %v402_v45  ;;  %v305_v42 = vld [vmem:[%s4941_s15 + $0xf0] sm:$0xff] }
  0xac   : > { %3745 = vmatmul.mubr.msk.f32.gmra.mrb[12].mxu0 %vm515_vm1, %v481_v43  ;;  %v306_v43 = vld [vmem:[%s4941_s15 + $0xf8] sm:$0xff]  ;;  %s4677_s15 = sshll.u32 %s4739_s17, 4  ;;  %s4678_s15 = int_to_ptr.vmem [resolvable:$false] %s4677_s15 }
  0xad   : > { %3747 = vmatprep.mubr.msk.f32.mxu0 %vm515_vm1, %v482_v47  ;;  %s4679_s16 = scalar_lea.vmem %s4678_s15, 32768  ;;  %p4680_p0 = scmp.lt.s32.totalorder %s6218_s10, %s4678_s15 }
  0xae   : > { %v404_v55 = vpop.permute.xlu0 %403  ;;  %v406_v56 = vpop.permute.xlu1 %405  ;;  %p4681_p1 = scmp.lt.s32.totalorder %s4679_s16, %s4673_s11 }
  0xaf   : > { %v485_v58 = vsel %vm467_vm0, %v292_v48, %v406_v56  ;;  %v484_v59 = vsel %vm467_vm0, %v291_v51, %v404_v55  ;;  %v1022_v48 = vld [vmem:[%s6269_s4 + $0xc8] sm:$0xff]  ;;  %v4282_v55 = vpack.c.bf16 %v1028_v52, %v1024_v50 }
  0xb0   : > { %3748 = vmatmul.mubr.msk.f32.gmra.mrb[14].mxu0 %vm515_vm1, %v483_v54  ;;  %3750 = vmatprep.mubr.msk.f32.mxu1 %vm515_vm1, %v484_v59  ;;  %v4250_v51 = vpack.c.bf16 %v1026_v49, %v1022_v48  ;;  %v1025_v54 = vld [vmem:[%s6269_s4 + $0xe0] sm:$0xff]  ;;  %p4682_p2 = por %p4681_p1, %p4680_p0 }
  0xb1   : > { %3751 = vmatmul.mubr.msk.f32.vlgmr.msra.gmra.mrb[0].mxu1 %vm515_vm1, %v485_v58  ;;  %v4252_v56 = vpack.c.bf16 %v1025_v54, %v1021_v53  ;;  %v1027_v58 = vld [vmem:[%s6269_s4 + $0xf0] sm:$0xff]  ;;  %4283 = vmatprep.subr.bf16.mxu0 %v4282_v55 }
  0xb2   : > { %v408_v3 = vpop.permute.xlu0 %407  ;;  %v410_v4 = vpop.permute.xlu1 %409  ;;  %4241 = vmatpush1.bf16.msra.mxu1 %v4240_v57  ;;  %v1023_v57 = vld [vmem:[%s6269_s4 + $0xd0] sm:$0xff]  ;;  %p4683_p3 = pnand %p4682_p2, %p4676_p13 }
  0xb3   : > { %v486_v6 = vsel %vm467_vm0, %v293_v60, %v408_v3  ;;  %v487_v7 = vsel %vm467_vm0, %v294_v0, %v410_v4  ;;  %4243 = vmatprep.subr.bf16.mxu1 %v4242_v61  ;;  %v4284_v59 = vpack.c.bf16 %v1027_v58, %v1023_v57  ;;  %v1030_v60 = vld [vmem:[%s6269_s4 + $0x108] sm:$0xff]  ;;  %v1036_v0 = vld [vmem:[%s6269_s4 + $0x138] sm:$0xff]  ;;  %v4256_v4 = vpack.c.bf16 %v1033_v2, %v1029_v1 }
  0xb4   : > { %3753 = vmatprep.mubr.msk.f32.mxu1 %vm515_vm1, %v486_v6  ;;  %v1034_v61 = vld [vmem:[%s6269_s4 + $0x128] sm:$0xff]  ;;  %v4286_v3 = vpack.c.bf16 %v1036_v0, %v1032_v62  ;;  %v1035_v6 = vld [vmem:[%s6269_s4 + $0x130] sm:$0xff] }
  0xb5   : > { %3754 = vmatmul.mubr.msk.f32.gmra.mrb[2].mxu1 %vm515_vm1, %v487_v7  ;;  %4285 = vmatpush1.bf16.msra.mxu0 %v4284_v59  ;;  %v4254_v63 = vpack.c.bf16 %v1034_v61, %v1030_v60 }
  0xb6   : > { %v412_v13 = vpop.permute.xlu0 %411  ;;  %v414_v14 = vpop.permute.xlu1 %413  ;;  %4245 = vmatpush1.bf16.msra.mxu1 %v4244_v5  ;;  %v1031_v5 = vld [vmem:[%s6269_s4 + $0x110] sm:$0xff]  ;;  %4287 = vmatprep.subr.bf16.mxu0 %v4286_v3 }
  0xb7   : > { %v488_v16 = vsel %vm467_vm0, %v295_v11, %v412_v13  ;;  %v489_v17 = vsel %vm467_vm0, %v296_v12, %v414_v14  ;;  %4247 = vmatprep.subr.bf16.mxu1 %v4246_v8  ;;  %v4288_v7 = vpack.c.bf16 %v1035_v6, %v1031_v5  ;;  %v1038_v8 = vld [vmem:[%s6269_s4 + $0x148] sm:$0xff]  ;;  %v1044_v12 = vld [vmem:[%s6269_s4 + $0x178] sm:$0xff]  ;;  %v1037_v13 = vld [vmem:[%s6269_s4 + $0x140] sm:$0xff] }
  0xb8   : > { %3756 = vmatprep.mubr.msk.f32.mxu1 %vm515_vm1, %v488_v16  ;;  %v4258_v11 = vpack.c.bf16 %v1042_v9, %v1038_v8  ;;  %v1041_v14 = vld [vmem:[%s6269_s4 + $0x160] sm:$0xff] }
  0xb9   : > { %3757 = vmatmul.mubr.msk.f32.gmra.mrb[4].mxu1 %vm515_vm1, %v489_v17  ;;  %4289 = vmatpush1.bf16.msra.mxu0 %v4288_v7  ;;  %v4260_v16 = vpack.c.bf16 %v1041_v14, %v1037_v13  ;;  %v1039_v17 = vld [vmem:[%s6269_s4 + $0x150] sm:$0xff] }
  0xba   : > { %v416_v20 = vpop.permute.xlu0 %415  ;;  %v418_v21 = vpop.permute.xlu1 %417  ;;  %4249 = vmatpush1.bf16.msra.mxu1 %v4248_v15  ;;  %v4290_v15 = vpack.c.bf16 %v1044_v12, %v1040_v10 }
  0xbb   : > { %v490_v22 = vsel %vm467_vm0, %v297_v18, %v416_v20  ;;  %v491_v23 = vsel %vm467_vm0, %v298_v19, %v418_v21  ;;  %4251 = vmatprep.subr.bf16.mxu1 %v4250_v51  ;;  %v1043_v18 = vld [vmem:[%s6269_s4 + $0x170] sm:$0xff]  ;;  %v1046_v20 = vld [vmem:[%s6269_s4 + $0x188] sm:$0xff] }
  0xbc   : > { %3759 = vmatprep.mubr.msk.f32.mxu1 %vm515_vm1, %v490_v22  ;;  %v4292_v19 = vpack.c.bf16 %v1043_v18, %v1039_v17  ;;  %4291 = vmatprep.subr.bf16.mxu0 %v4290_v15  ;;  %v1050_v21 = vld [vmem:[%s6269_s4 + $0x1a8] sm:$0xff]  ;;  %v1048_v22 = vld [vmem:[%s6269_s4 + $0x198] sm:$0xff] }
  0xbd   : > { %3760 = vmatmul.mubr.msk.f32.gmra.mrb[6].mxu1 %vm515_vm1, %v491_v23  ;;  %v4262_v23 = vpack.c.bf16 %v1050_v21, %v1046_v20 }
  0xbe   : > { %v420_v26 = vpop.permute.xlu0 %419  ;;  %v422_v27 = vpop.permute.xlu1 %421  ;;  %4253 = vmatpush1.bf16.msra.mxu1 %v4252_v56  ;;  %4293 = vmatpush1.bf16.msra.mxu0 %v4292_v19 }
  0xbf   : > { %v492_v28 = vsel %vm467_vm0, %v299_v24, %v420_v26  ;;  %v493_v29 = vsel %vm467_vm0, %v300_v25, %v422_v27  ;;  %4255 = vmatprep.subr.bf16.mxu1 %v4254_v63  ;;  %v1052_v24 = vld [vmem:[%s6269_s4 + $0x1b8] sm:$0xff]  ;;  %v1045_v25 = vld [vmem:[%s6269_s4 + $0x180] sm:$0xff] }
  0xc0   : > { %3762 = vmatprep.mubr.msk.f32.mxu1 %vm515_vm1, %v492_v28  ;;  %v1049_v26 = vld [vmem:[%s6269_s4 + $0x1a0] sm:$0xff]  ;;  %v4294_v27 = vpack.c.bf16 %v1052_v24, %v1048_v22 }
  0xc1   : > { %3763 = vmatmul.mubr.msk.f32.gmra.mrb[8].mxu1 %vm515_vm1, %v493_v29  ;;  %v4264_v28 = vpack.c.bf16 %v1049_v26, %v1045_v25  ;;  %v1047_v29 = vld [vmem:[%s6269_s4 + $0x190] sm:$0xff] }
  0xc2   : > { %v424_v32 = vpop.permute.xlu0 %423  ;;  %v426_v33 = vpop.permute.xlu1 %425  ;;  %4257 = vmatpush1.bf16.msra.mxu1 %v4256_v4  ;;  %4295 = vmatprep.subr.bf16.mxu0 %v4294_v27 }
  0xc3   : > { %v494_v34 = vsel %vm467_vm0, %v301_v30, %v424_v32  ;;  %v495_v35 = vsel %vm467_vm0, %v302_v31, %v426_v33  ;;  %4259 = vmatprep.subr.bf16.mxu1 %v4258_v11  ;;  %v1051_v30 = vld [vmem:[%s6269_s4 + $0x1b0] sm:$0xff]  ;;  %v1054_v32 = vld [vmem:[%s6269_s4 + $0x1c8] sm:$0xff] }
  0xc4   : > { %3765 = vmatprep.mubr.msk.f32.mxu1 %vm515_vm1, %v494_v34  ;;  %v4296_v31 = vpack.c.bf16 %v1051_v30, %v1047_v29  ;;  %v1058_v33 = vld [vmem:[%s6269_s4 + $0x1e8] sm:$0xff]  ;;  %v1056_v34 = vld [vmem:[%s6269_s4 + $0x1d8] sm:$0xff] }
  0xc5   : > { %3766 = vmatmul.mubr.msk.f32.gmra.mrb[10].mxu1 %vm515_vm1, %v495_v35  ;;  %v4266_v35 = vpack.c.bf16 %v1058_v33, %v1054_v32 }
  0xc6   : > { %v428_v38 = vpop.permute.xlu0 %427  ;;  %v430_v39 = vpop.permute.xlu1 %429  ;;  %4261 = vmatpush1.bf16.msra.mxu1 %v4260_v16  ;;  %4297 = vmatpush1.bf16.msra.mxu0 %v4296_v31 }
  0xc7   : > { %v496_v40 = vsel %vm467_vm0, %v303_v36, %v428_v38  ;;  %v497_v41 = vsel %vm467_vm0, %v304_v37, %v430_v39  ;;  %4263 = vmatprep.subr.bf16.mxu1 %v4262_v23  ;;  %v1060_v36 = vld [vmem:[%s6269_s4 + $0x1f8] sm:$0xff]  ;;  %v1053_v37 = vld [vmem:[%s6269_s4 + $0x1c0] sm:$0xff] }
  0xc8   : > { %3768 = vmatprep.mubr.msk.f32.mxu1 %vm515_vm1, %v496_v40  ;;  %v1057_v38 = vld [vmem:[%s6269_s4 + $0x1e0] sm:$0xff]  ;;  %v4298_v39 = vpack.c.bf16 %v1060_v36, %v1056_v34 }
  0xc9   : > { %3769 = vmatmul.mubr.msk.f32.gmra.mrb[12].mxu1 %vm515_vm1, %v497_v41  ;;  %v4268_v40 = vpack.c.bf16 %v1057_v38, %v1053_v37  ;;  %v1055_v41 = vld [vmem:[%s6269_s4 + $0x1d0] sm:$0xff] }
  0xca   : > { %v432_v44 = vpop.permute.xlu0 %431  ;;  %v434_v45 = vpop.permute.xlu1 %433  ;;  %4265 = vmatpush1.bf16.msra.mxu1 %v4264_v28  ;;  %4299 = vmatprep.subr.bf16.mxu0 %v4298_v39 }
  0xcb   : > { %v498_v46 = vsel %vm467_vm0, %v305_v42, %v432_v44  ;;  %v499_v47 = vsel %vm467_vm0, %v306_v43, %v434_v45  ;;  %v1059_v42 = vld [vmem:[%s6269_s4 + $0x1f0] sm:$0xff]  ;;  %4267 = vmatprep.subr.bf16.mxu1 %v4266_v35  ;;  %v4738_v44 = vmov 0.0   ;;  %v5224_v45 = vld [vmem:[%s6268_s3] ss:$0 sm:$0xff] }
  0xcc   : > { %3771 = vmatprep.mubr.msk.f32.mxu1 %vm515_vm1, %v498_v46  ;;  %v4300_v43 = vpack.c.bf16 %v1059_v42, %v1055_v41  ;;  %1404 = vmatprep.mubr.f32.mxu0 %v4738_v44 }
  0xcd   : > { %3772 = vmatmul.mubr.msk.f32.gmra.mrb[14].mxu1 %vm515_vm1, %v499_v47 }
  0xce   : > { %4269 = vmatpush1.bf16.msra.mxu1 %v4268_v40  ;;  %4301 = vmatpush1.bf16.msra.mxu0 %v4300_v43 }
  0xcf   : > { %1147 = vmatprep.mubr.f32.mxu1 %v4738_v44 }
 0x167   : > { %v3728_v46 = vpop.f32.mrb[0].mxu0 }
 0x168   : > { %v684_v47 = vadd.f32 %v3728_v46, %v5224_v45  ;;  %v678_v48 = vpop.f32.mrb[1].mxu0 }
 0x169   : > { %v679_v49 = vadd.f32 %v5224_v45, %v678_v48 }
 0x16a   : > { %v870_v50 = vmul.f32 0.70710677, %v684_v47  ;;  %v838_v15 = vmul.f32 0.5, %v684_v47 }
 0x16b   : > { %v869_v51 = vmul.f32 0.70710677, %v679_v49  ;;  %v3731_v52 = vpop.f32.mrb[2].mxu0  ;;  %v837_v5 = vmul.f32 0.5, %v679_v49 }
 0x16c   : > { %4609 = verf.f32 %v870_v50  ;;  %v688_v53 = vpop.f32.mrb[3].mxu0  ;;  %v694_v54 = vadd.f32 %v3731_v52, %v5224_v45 }
 0x16d   : > { %4611 = verf.f32 %v869_v51  ;;  %v689_v55 = vadd.f32 %v5224_v45, %v688_v53 }
 0x16e   : > { %v872_v59 = vmul.f32 0.70710677, %v694_v54  ;;  %v840_v31 = vmul.f32 0.5, %v694_v54 }
 0x16f   : > { %v871_v56 = vmul.f32 0.70710677, %v689_v55  ;;  %v3734_v57 = vpop.f32.mrb[4].mxu0  ;;  %v839_v23 = vmul.f32 0.5, %v689_v55 }
 0x170   : > { %v698_v58 = vpop.f32.mrb[5].mxu0  ;;  %v5234_v63 = vadd.f32 %v3734_v57, %v5224_v45 }
 0x171   : > { %4613 = verf.f32 %v871_v56  ;;  %v5231_v60 = vadd.f32 %v5224_v45, %v698_v58 }
 0x172   : > { %4615 = verf.f32 %v872_v59  ;;  %v874_v8 = vmul.f32 0.70710677, %v5234_v63  ;;  %v842_v54 = vmul.f32 0.5, %v5234_v63 }
 0x173   : > { %v3737_v61 = vpop.f32.mrb[6].mxu0  ;;  %v873_v0 = vmul.f32 0.70710677, %v5231_v60  ;;  %v841_v42 = vmul.f32 0.5, %v5231_v60 }
 0x174   : > { %v708_v62 = vpop.f32.mrb[7].mxu0  ;;  %v5242_v12 = vadd.f32 %v3737_v61, %v5224_v45 }
 0x175   : > { %v5238_v3 = vadd.f32 %v5224_v45, %v708_v62  ;;  %4617 = verf.f32 %v873_v0 }
 0x176   : > { %v4610_v1 = vpop.eup %4609  ;;  %4619 = verf.f32 %v874_v8  ;;  %v876_v20 = vmul.f32 0.70710677, %v5242_v12 }
 0x177   : > { %v4612_v2 = vpop.eup %4611  ;;  %v3740_v4 = vpop.f32.mrb[8].mxu0  ;;  %v934_v9 = vadd.f32 1.0, %v4610_v1  ;;  %v875_v13 = vmul.f32 0.70710677, %v5238_v3  ;;  %v843_v55 = vmul.f32 0.5, %v5238_v3  ;;  %v844_v1 = vmul.f32 0.5, %v5242_v12 }
 0x178   : > { %v933_v6 = vadd.f32 1.0, %v4612_v2  ;;  %v718_v7 = vpop.f32.mrb[9].mxu0  ;;  %v5256_v28 = vadd.f32 %v3740_v4, %v5224_v45 }
 0x179   : > { %v966_v18 = vmul.f32 %v934_v9, %v838_v15  ;;  %4621 = verf.f32 %v875_v13  ;;  %v5249_v21 = vadd.f32 %v5224_v45, %v718_v7 }
 0x17a   : > { %v965_v10 = vmul.f32 %v933_v6, %v837_v5  ;;  %4623 = verf.f32 %v876_v20  ;;  %v878_v40 = vmul.f32 0.70710677, %v5256_v28 }
 0x17b   : > { %v4614_v11 = vpop.eup %4613  ;;  %v3743_v14 = vpop.f32.mrb[10].mxu0  ;;  %v877_v29 = vmul.f32 0.70710677, %v5249_v21 }
 0x17c   : > { %1148 = vmatmul.mubr.f32.vlgmr.msra.gmra.mrb[16].mxu1 %v965_v10  ;;  %1405 = vmatmul.mubr.f32.vlgmr.msra.gmra.mrb[16].mxu0 %v965_v10  ;;  %v728_v16 = vpop.f32.mrb[11].mxu0  ;;  %v935_v17 = vadd.f32 1.0, %v4614_v11  ;;  %v4616_v19 = vpop.eup %4615  ;;  %v5285_v52 = vadd.f32 %v3743_v14, %v5224_v45  ;;  %v845_v11 = vmul.f32 0.5, %v5249_v21  ;;  %v846_v21 = vmul.f32 0.5, %v5256_v28 }
 0x17d   : > { %1153 = vmatprep.mubr.f32.mxu1 %v4738_v44  ;;  %1410 = vmatprep.mubr.f32.mxu0 %v4738_v44  ;;  %v936_v25 = vadd.f32 1.0, %v4616_v19  ;;  %4625 = verf.f32 %v877_v29  ;;  %v5273_v41 = vadd.f32 %v5224_v45, %v728_v16 }
 0x17e   : > { %v967_v26 = vmul.f32 %v935_v17, %v839_v23  ;;  %4627 = verf.f32 %v878_v40  ;;  %v880_v63 = vmul.f32 0.70710677, %v5285_v52 }
 0x17f   : > { %v5251_v22 = vpop.f32.mrb[12].mxu0  ;;  %v4618_v27 = vpop.eup %4617  ;;  %v968_v37 = vmul.f32 %v936_v25, %v840_v31  ;;  %v879_v53 = vmul.f32 0.70710677, %v5273_v41 }
 0x180   : > { %1154 = vmatmul.mubr.f32.gmra.mrb[18].mxu1 %v966_v18  ;;  %1411 = vmatmul.mubr.f32.gmra.mrb[18].mxu0 %v966_v18  ;;  %v738_v24 = vpop.f32.mrb[13].mxu0  ;;  %v937_v36 = vadd.f32 1.0, %v4618_v27  ;;  %v4620_v39 = vpop.eup %4619  ;;  %v5313_v9 = vadd.f32 %v5251_v22, %v5224_v45 }
 0x181   : > { %1159 = vmatprep.mubr.f32.mxu1 %v4738_v44  ;;  %1416 = vmatprep.mubr.f32.mxu0 %v4738_v44  ;;  %v938_v49 = vadd.f32 1.0, %v4620_v39  ;;  %4629 = verf.f32 %v879_v53  ;;  %v5300_v0 = vadd.f32 %v5224_v45, %v738_v24 }
 0x182   : > { %v969_v50 = vmul.f32 %v937_v36, %v841_v42  ;;  %4631 = verf.f32 %v880_v63  ;;  %v882_v19 = vmul.f32 0.70710677, %v5313_v9 }
 0x183   : > { %v5259_v30 = vpop.f32.mrb[14].mxu0  ;;  %v4622_v46 = vpop.eup %4621  ;;  %v970_v61 = vmul.f32 %v938_v49, %v842_v54  ;;  %v881_v10 = vmul.f32 0.70710677, %v5300_v0 }
 0x184   : > { %1160 = vmatmul.mubr.f32.gmra.mrb[20].mxu1 %v967_v26  ;;  %1417 = vmatmul.mubr.f32.gmra.mrb[20].mxu0 %v967_v26  ;;  %v5261_v32 = vpop.f32.mrb[15].mxu0  ;;  %v3752_v33 = vpop.f32.mrb[0].mxu1  ;;  %v939_v56 = vadd.f32 1.0, %v4622_v46  ;;  %v754_v28 = vadd.f32 %v5259_v30, %v5224_v45 }
 0x185   : > { %1165 = vmatprep.mubr.f32.mxu1 %v4738_v44  ;;  %1422 = vmatprep.mubr.f32.mxu0 %v4738_v44  ;;  %v5266_v34 = vadd.f32 %v3752_v33, %v5224_v45  ;;  %v758_v35 = vpop.f32.mrb[1].mxu1  ;;  %v4624_v58 = vpop.eup %4623  ;;  %4633 = verf.f32 %v881_v10  ;;  %v5328_v20 = vadd.f32 %v5224_v45, %v5261_v32  ;;  %v847_v32 = vmul.f32 0.5, %v5273_v41 }
 0x186   : > { %v5269_v38 = vadd.f32 %v5224_v45, %v758_v35  ;;  %v940_v2 = vadd.f32 1.0, %v4624_v58  ;;  %v971_v3 = vmul.f32 %v939_v56, %v843_v55  ;;  %4635 = verf.f32 %v882_v19 }
 0x187   : > { %v4626_v5 = vpop.eup %4625  ;;  %v883_v31 = vmul.f32 0.70710677, %v5328_v20  ;;  %v884_v42 = vmul.f32 0.70710677, %v754_v28  ;;  %v848_v41 = vmul.f32 0.5, %v5285_v52  ;;  %v849_v55 = vmul.f32 0.5, %v5300_v0 }
 0x188   : > { %1166 = vmatmul.mubr.f32.gmra.mrb[22].mxu1 %v968_v37  ;;  %1423 = vmatmul.mubr.f32.gmra.mrb[22].mxu0 %v968_v37  ;;  %v3755_v43 = vpop.f32.mrb[2].mxu1  ;;  %v941_v12 = vadd.f32 1.0, %v4626_v5  ;;  %v972_v13 = vmul.f32 %v940_v2, %v844_v1  ;;  %v4628_v15 = vpop.eup %4627  ;;  %v885_v52 = vmul.f32 0.70710677, %v5269_v38  ;;  %v851_v2 = vmul.f32 0.5, %v5328_v20 }
 0x189   : > { %1171 = vmatprep.mubr.f32.mxu1 %v4738_v44  ;;  %1428 = vmatprep.mubr.f32.mxu0 %v4738_v44  ;;  %v5279_v47 = vadd.f32 %v3755_v43, %v5224_v45  ;;  %v768_v48 = vpop.f32.mrb[3].mxu1  ;;  %v942_v22 = vadd.f32 1.0, %v4628_v15  ;;  %4637 = verf.f32 %v883_v31 }
 0x18a   : > { %v5282_v51 = vadd.f32 %v5224_v45, %v768_v48  ;;  %v973_v23 = vmul.f32 %v941_v12, %v845_v11  ;;  %4639 = verf.f32 %v884_v42 }
 0x18b   : > { %v4630_v25 = vpop.eup %4629  ;;  %v974_v35 = vmul.f32 %v942_v22, %v846_v21  ;;  %4641 = verf.f32 %v885_v52  ;;  %v854_v21 = vmul.f32 0.5, %v5266_v34 }
 0x18c   : > { %1172 = vmatmul.mubr.f32.gmra.mrb[24].mxu1 %v969_v50  ;;  %1429 = vmatmul.mubr.f32.gmra.mrb[24].mxu0 %v969_v50  ;;  %v3758_v57 = vpop.f32.mrb[4].mxu1  ;;  %v943_v33 = vadd.f32 1.0, %v4630_v25  ;;  %v4632_v37 = vpop.eup %4631  ;;  %v887_v0 = vmul.f32 0.70710677, %v5282_v51  ;;  %v855_v25 = vmul.f32 0.5, %v5282_v51 }
 0x18d   : > { %1177 = vmatprep.mubr.f32.mxu1 %v4738_v44  ;;  %1434 = vmatprep.mubr.f32.mxu0 %v4738_v44  ;;  %v5293_v59 = vadd.f32 %v3758_v57, %v5224_v45  ;;  %v778_v60 = vpop.f32.mrb[5].mxu1  ;;  %v944_v43 = vadd.f32 1.0, %v4632_v37 }
 0x18e   : > { %v5296_v62 = vadd.f32 %v5224_v45, %v778_v60  ;;  %v975_v46 = vmul.f32 %v943_v33, %v847_v32  ;;  %v886_v60 = vmul.f32 0.70710677, %v5266_v34  ;;  %v856_v32 = vmul.f32 0.5, %v5279_v47 }
 0x18f   : > { %v4634_v49 = vpop.eup %4633  ;;  %v976_v57 = vmul.f32 %v944_v43, %v848_v41  ;;  %v890_v20 = vmul.f32 0.70710677, %v5293_v59  ;;  %v858_v43 = vmul.f32 0.5, %v5293_v59 }
 0x190   : > { %1178 = vmatmul.mubr.f32.gmra.mrb[26].mxu1 %v970_v61  ;;  %1435 = vmatmul.mubr.f32.gmra.mrb[26].mxu0 %v970_v61  ;;  %v3761_v4 = vpop.f32.mrb[6].mxu1  ;;  %v945_v56 = vadd.f32 1.0, %v4634_v49  ;;  %v4636_v58 = vpop.eup %4635  ;;  %4643 = verf.f32 %v886_v60  ;;  %v857_v37 = vmul.f32 0.5, %v5296_v62 }
 0x191   : > { %1183 = vmatprep.mubr.f32.mxu1 %v4738_v44  ;;  %1440 = vmatprep.mubr.f32.mxu0 %v4738_v44  ;;  %v5306_v6 = vadd.f32 %v3761_v4, %v5224_v45  ;;  %v788_v7 = vpop.f32.mrb[7].mxu1  ;;  %v946_v61 = vadd.f32 1.0, %v4636_v58  ;;  %4645 = verf.f32 %v887_v0 }
 0x192   : > { %v5309_v8 = vadd.f32 %v5224_v45, %v788_v7  ;;  %v977_v63 = vmul.f32 %v945_v56, %v849_v55  ;;  %v888_v7 = vmul.f32 0.70710677, %v5279_v47 }
 0x193   : > { %v4638_v1 = vpop.eup %4637  ;;  %v892_v34 = vmul.f32 0.70710677, %v5306_v6 }
 0x194   : > { %1184 = vmatmul.mubr.f32.gmra.mrb[28].mxu1 %v971_v3  ;;  %1441 = vmatmul.mubr.f32.gmra.mrb[28].mxu0 %v971_v3  ;;  %v3764_v14 = vpop.f32.mrb[8].mxu1  ;;  %v947_v3 = vadd.f32 1.0, %v4638_v1  ;;  %v4640_v5 = vpop.eup %4639  ;;  %4647 = verf.f32 %v888_v7 }
 0x195   : > { %1189 = vmatprep.mubr.f32.mxu1 %v4738_v44  ;;  %1446 = vmatprep.mubr.f32.mxu0 %v4738_v44  ;;  %v5320_v16 = vadd.f32 %v3764_v14, %v5224_v45  ;;  %v798_v17 = vpop.f32.mrb[9].mxu1  ;;  %v948_v10 = vadd.f32 1.0, %v4640_v5  ;;  %v4642_v12 = vpop.eup %4641  ;;  %v853_v14 = vmul.f32 0.5, %v5269_v38  ;;  %v891_v38 = vmul.f32 0.70710677, %v5309_v8 }
 0x196   : > { %v5323_v18 = vadd.f32 %v5224_v45, %v798_v17  ;;  %v979_v11 = vmul.f32 %v947_v3, %v851_v2  ;;  %v949_v15 = vadd.f32 1.0, %v4642_v12 }
 0x197   : > { %v894_v47 = vmul.f32 0.70710677, %v5320_v16  ;;  %v862_v2 = vmul.f32 0.5, %v5320_v16 }
 0x198   : > { %1190 = vmatmul.mubr.f32.gmra.mrb[30].mxu1 %v972_v13  ;;  %1447 = vmatmul.mubr.f32.gmra.mrb[30].mxu0 %v972_v13  ;;  %v3767_v24 = vpop.f32.mrb[10].mxu1  ;;  %v889_v13 = vmul.f32 0.70710677, %v5296_v62  ;;  %v893_v51 = vmul.f32 0.70710677, %v5323_v18 }
 0x199   : > { %1195 = vmatprep.mubr.f32.mxu1 %v4738_v44  ;;  %1452 = vmatprep.mubr.f32.mxu0 %v4738_v44  ;;  %v5334_v26 = vadd.f32 %v3767_v24, %v5224_v45  ;;  %v808_v27 = vpop.f32.mrb[11].mxu1 }
 0x19a   : > { %v5337_v29 = vadd.f32 %v5224_v45, %v808_v27  ;;  %v4644_v19 = vpop.eup %4643  ;;  %4649 = verf.f32 %v889_v13 }
 0x19b   : > { %v950_v22 = vadd.f32 1.0, %v4644_v19  ;;  %v4646_v24 = vpop.eup %4645  ;;  %4651 = verf.f32 %v890_v20  ;;  %v896_v59 = vmul.f32 0.70710677, %v5334_v26  ;;  %v864_v12 = vmul.f32 0.5, %v5334_v26 }
 0x19c   : > { %1196 = vmatmul.mubr.f32.gmra.mrb[32].mxu1 %v973_v23  ;;  %1453 = vmatmul.mubr.f32.gmra.mrb[32].mxu0 %v973_v23  ;;  %v3770_v36 = vpop.f32.mrb[12].mxu1  ;;  %v981_v23 = vmul.f32 %v949_v15, %v853_v14  ;;  %v951_v27 = vadd.f32 1.0, %v4646_v24  ;;  %4653 = verf.f32 %v891_v38  ;;  %v895_v62 = vmul.f32 0.70710677, %v5337_v29 }
 0x19d   : > { %1201 = vmatprep.mubr.f32.mxu1 %v4738_v44  ;;  %1458 = vmatprep.mubr.f32.mxu0 %v4738_v44  ;;  %v5346_v39 = vadd.f32 %v3770_v36, %v5224_v45  ;;  %v818_v40 = vpop.f32.mrb[13].mxu1  ;;  %4655 = verf.f32 %v892_v34  ;;  %v863_v7 = vmul.f32 0.5, %v5337_v29 }
 0x19e   : > { %v5349_v30 = vadd.f32 %v5224_v45, %v818_v40  ;;  %v4648_v31 = vpop.eup %4647  ;;  %4657 = verf.f32 %v893_v51 }
 0x19f   : > { %v952_v33 = vadd.f32 1.0, %v4648_v31  ;;  %4659 = verf.f32 %v894_v47  ;;  %v866_v26 = vmul.f32 0.5, %v5346_v39  ;;  %v1063_v31 = vlaneseq }
 0x1a0   : > { %1202 = vmatmul.mubr.f32.gmra.mrb[34].mxu1 %v974_v35  ;;  %1459 = vmatmul.mubr.f32.gmra.mrb[34].mxu0 %v974_v35  ;;  %v3773_v48 = vpop.f32.mrb[14].mxu1  ;;  %v983_v35 = vmul.f32 %v951_v27, %v855_v25  ;;  %4661 = verf.f32 %v895_v62  ;;  %v865_v29 = vmul.f32 0.5, %v5349_v30 }
 0x1a1   : > { %1207 = vmatprep.mubr.f32.mxu1 %v4738_v44  ;;  %1464 = vmatprep.mubr.f32.mxu0 %v4738_v44  ;;  %v5355_v50 = vadd.f32 %v3773_v48, %v5224_v45  ;;  %v828_v53 = vpop.f32.mrb[15].mxu1  ;;  %v984_v42 = vmul.f32 %v952_v33, %v856_v32  ;;  %4663 = verf.f32 %v896_v59  ;;  %v1064_v34 = vshrl.u32 %v1063_v31, 7  ;;  %v1061_v33 = vld [vmem:[%s6270_s5] sm:$0xf] }
 0x1a2   : > { %v5358_v54 = vadd.f32 %v5224_v45, %v828_v53  ;;  %v850_v45 = vmul.f32 0.5, %v5313_v9  ;;  %v852_v9 = vmul.f32 0.5, %v754_v28  ;;  %v982_v28 = vmul.f32 %v950_v22, %v854_v21 }
 0x1a3   : > { %v859_v53 = vmul.f32 0.5, %v5309_v8  ;;  %v897_v8 = vmul.f32 0.70710677, %v5349_v30  ;;  %v900_v16 = vmul.f32 0.70710677, %v5355_v50  ;;  %v1073_v32 = vsub.s32 2, %v1064_v34 }
 0x1a4   : > { %1208 = vmatmul.mubr.f32.gmra.mrb[36].mxu1 %v975_v46  ;;  %1465 = vmatmul.mubr.f32.gmra.mrb[36].mxu0 %v975_v46  ;;  %v978_v4 = vmul.f32 %v946_v61, %v850_v45  ;;  %v980_v17 = vmul.f32 %v948_v10, %v852_v9  ;;  %v4650_v36 = vpop.eup %4649  ;;  %v861_v61 = vmul.f32 0.5, %v5323_v18  ;;  %v899_v18 = vmul.f32 0.70710677, %v5358_v54 }
 0x1a5   : > { %1213 = vmatprep.mubr.f32.mxu1 %v4738_v44  ;;  %1470 = vmatprep.mubr.f32.mxu0 %v4738_v44  ;;  %v953_v40 = vadd.f32 1.0, %v4650_v36  ;;  %v4652_v41 = vpop.eup %4651  ;;  %4665 = verf.f32 %v897_v8  ;;  %v867_v30 = vmul.f32 0.5, %v5358_v54  ;;  %v1077_v36 = vsub.s32 3, %v1064_v34 }
 0x1a6   : > { %v954_v46 = vadd.f32 1.0, %v4652_v41  ;;  %v4654_v49 = vpop.eup %4653 }
 0x1a7   : > { %v985_v48 = vmul.f32 %v953_v40, %v857_v37  ;;  %v955_v52 = vadd.f32 1.0, %v4654_v49  ;;  %v4656_v56 = vpop.eup %4655  ;;  %v5442_v37 = vrot.slane %v1061_v33, %v1073_v32 }
 0x1a8   : > { %1214 = vmatmul.mubr.f32.gmra.mrb[38].mxu1 %v976_v57  ;;  %1471 = vmatmul.mubr.f32.gmra.mrb[38].mxu0 %v976_v57  ;;  %v986_v55 = vmul.f32 %v954_v46, %v858_v43  ;;  %v860_v57 = vmul.f32 0.5, %v5306_v6  ;;  %v956_v58 = vadd.f32 1.0, %v4656_v56  ;;  %v4658_v45 = vpop.eup %4657  ;;  %v898_v6 = vmul.f32 0.70710677, %v5346_v39 }
 0x1a9   : > { %1219 = vmatprep.mubr.f32.mxu1 %v4738_v44  ;;  %1476 = vmatprep.mubr.f32.mxu0 %v4738_v44  ;;  %v987_v60 = vmul.f32 %v955_v52, %v859_v53  ;;  %v4660_v0 = vpop.eup %4659  ;;  %v868_v39 = vmul.f32 0.5, %v5355_v50  ;;  %v1065_v50 = vsub.s32 0, %v1064_v34 }
 0x1aa   : > { %v988_v1 = vmul.f32 %v956_v58, %v860_v57  ;;  %v958_v3 = vadd.f32 1.0, %v4660_v0  ;;  %v4662_v5 = vpop.eup %4661  ;;  %4667 = verf.f32 %v898_v6 }
 0x1ab   : > { %v959_v9 = vadd.f32 1.0, %v4662_v5  ;;  %4669 = verf.f32 %v899_v18  ;;  %v5440_v51 = vrot.slane %v1061_v33, %v1065_v50 }
 0x1ac   : > { %1220 = vmatmul.mubr.f32.gmra.mrb[40].mxu1 %v977_v63  ;;  %1477 = vmatmul.mubr.f32.gmra.mrb[40].mxu0 %v977_v63  ;;  %v957_v63 = vadd.f32 1.0, %v4658_v45  ;;  %v990_v10 = vmul.f32 %v958_v3, %v862_v2  ;;  %4671 = verf.f32 %v900_v16 }
 0x1ad   : > { %1225 = vmatprep.mubr.f32.mxu1 %v4738_v44  ;;  %1482 = vmatprep.mubr.f32.mxu0 %v4738_v44  ;;  %v991_v14 = vmul.f32 %v959_v9, %v863_v7 }
 0x1b0   : > { %1226 = vmatmul.mubr.f32.gmra.mrb[42].mxu1 %v978_v4  ;;  %1483 = vmatmul.mubr.f32.gmra.mrb[42].mxu0 %v978_v4  ;;  %v989_v4 = vmul.f32 %v957_v63, %v861_v61 }
 0x1b1   : > { %1231 = vmatprep.mubr.f32.mxu1 %v4738_v44  ;;  %1488 = vmatprep.mubr.f32.mxu0 %v4738_v44 }
 0x1b4   : > { %1232 = vmatmul.mubr.f32.gmra.mrb[44].mxu1 %v979_v11  ;;  %1489 = vmatmul.mubr.f32.gmra.mrb[44].mxu0 %v979_v11  ;;  %v4664_v11 = vpop.eup %4663 }
 0x1b5   : > { %1237 = vmatprep.mubr.f32.mxu1 %v4738_v44  ;;  %1494 = vmatprep.mubr.f32.mxu0 %v4738_v44  ;;  %v960_v13 = vadd.f32 1.0, %v4664_v11  ;;  %v4666_v15 = vpop.eup %4665 }
 0x1b6   : > { %v4668_v20 = vpop.eup %4667 }
 0x1b7   : > { %v992_v19 = vmul.f32 %v960_v13, %v864_v12  ;;  %v962_v21 = vadd.f32 1.0, %v4668_v20 }
 0x1b8   : > { %1238 = vmatmul.mubr.f32.gmra.mrb[46].mxu1 %v980_v17  ;;  %1495 = vmatmul.mubr.f32.gmra.mrb[46].mxu0 %v980_v17  ;;  %v961_v17 = vadd.f32 1.0, %v4666_v15 }
 0x1b9   : > { %1243 = vmatprep.mubr.f32.mxu1 %v4738_v44  ;;  %1500 = vmatprep.mubr.f32.mxu0 %v4738_v44  ;;  %v994_v38 = vmul.f32 %v962_v21, %v866_v26 }
 0x1ba   : > { %v993_v22 = vmul.f32 %v961_v17, %v865_v29 }
 0x1bc   : > { %1244 = vmatmul.mubr.f32.gmra.mrb[48].mxu1 %v981_v23  ;;  %1501 = vmatmul.mubr.f32.gmra.mrb[48].mxu0 %v981_v23  ;;  %v4670_v23 = vpop.eup %4669 }
 0x1bd   : > { %1249 = vmatprep.mubr.f32.mxu1 %v4738_v44  ;;  %1506 = vmatprep.mubr.f32.mxu0 %v4738_v44  ;;  %v963_v24 = vadd.f32 1.0, %v4670_v23  ;;  %v4672_v25 = vpop.eup %4671 }
 0x1be   : > { %v964_v27 = vadd.f32 1.0, %v4672_v25 }
 0x1c0   : > { %1250 = vmatmul.mubr.f32.gmra.mrb[50].mxu1 %v982_v28  ;;  %1507 = vmatmul.mubr.f32.gmra.mrb[50].mxu0 %v982_v28  ;;  %v995_v28 = vmul.f32 %v963_v24, %v867_v30  ;;  %v996_v54 = vmul.f32 %v964_v27, %v868_v39 }
 0x1c1   : > { %1255 = vmatprep.mubr.f32.mxu1 %v4738_v44  ;;  %1512 = vmatprep.mubr.f32.mxu0 %v4738_v44 }
 0x1c4   : > { %1256 = vmatmul.mubr.f32.gmra.mrb[52].mxu1 %v983_v35  ;;  %1513 = vmatmul.mubr.f32.gmra.mrb[52].mxu0 %v983_v35  ;;  %v1069_v35 = vsub.s32 1, %v1064_v34 }
 0x1c5   : > { %1261 = vmatprep.mubr.f32.mxu1 %v4738_v44  ;;  %1518 = vmatprep.mubr.f32.mxu0 %v4738_v44 }
 0x1c6   : > { %v5444_v40 = vrot.slane %v1061_v33, %v1069_v35 }
 0x1c8   : > { %1262 = vmatmul.mubr.f32.gmra.mrb[54].mxu1 %v984_v42  ;;  %1519 = vmatmul.mubr.f32.gmra.mrb[54].mxu0 %v984_v42  ;;  %v5446_v42 = vrot.slane %v1061_v33, %v1077_v36 }
 0x1c9   : > { %1267 = vmatprep.mubr.f32.mxu1 %v4738_v44  ;;  %1524 = vmatprep.mubr.f32.mxu0 %v4738_v44 }
 0x1cc   : > { %1268 = vmatmul.mubr.f32.gmra.mrb[56].mxu1 %v985_v48  ;;  %1525 = vmatmul.mubr.f32.gmra.mrb[56].mxu0 %v985_v48 }
 0x1cd   : > { %1273 = vmatprep.mubr.f32.mxu1 %v4738_v44  ;;  %1530 = vmatprep.mubr.f32.mxu0 %v4738_v44 }
 0x1d0   : > { %1274 = vmatmul.mubr.f32.gmra.mrb[58].mxu1 %v986_v55  ;;  %1531 = vmatmul.mubr.f32.gmra.mrb[58].mxu0 %v986_v55 }
 0x1d1   : > { %1279 = vmatprep.mubr.f32.mxu1 %v4738_v44  ;;  %1536 = vmatprep.mubr.f32.mxu0 %v4738_v44 }
 0x1d4   : > { %1280 = vmatmul.mubr.f32.gmra.mrb[60].mxu1 %v987_v60  ;;  %1537 = vmatmul.mubr.f32.gmra.mrb[60].mxu0 %v987_v60 }
 0x1d5   : > { %1285 = vmatprep.mubr.f32.mxu1 %v4738_v44  ;;  %1542 = vmatprep.mubr.f32.mxu0 %v4738_v44 }
 0x1d8   : > { %1286 = vmatmul.mubr.f32.gmra.mrb[62].mxu1 %v988_v1  ;;  %1543 = vmatmul.mubr.f32.gmra.mrb[62].mxu0 %v988_v1 }
 0x1d9   : > { %1291 = vmatprep.mubr.f32.mxu1 %v4738_v44  ;;  %1548 = vmatprep.mubr.f32.mxu0 %v4738_v44 }
 0x1dc   : > { %1292 = vmatmul.mubr.f32.gmra.mrb[64].mxu1 %v989_v4  ;;  %1549 = vmatmul.mubr.f32.gmra.mrb[64].mxu0 %v989_v4 }
 0x1dd   : > { %1297 = vmatprep.mubr.f32.mxu1 %v4738_v44  ;;  %1554 = vmatprep.mubr.f32.mxu0 %v4738_v44 }
 0x1e0   : > { %1298 = vmatmul.mubr.f32.gmra.mrb[66].mxu1 %v990_v10  ;;  %1555 = vmatmul.mubr.f32.gmra.mrb[66].mxu0 %v990_v10 }
 0x1e1   : > { %1303 = vmatprep.mubr.f32.mxu1 %v4738_v44  ;;  %1560 = vmatprep.mubr.f32.mxu0 %v4738_v44 }
 0x1e4   : > { %1304 = vmatmul.mubr.f32.gmra.mrb[68].mxu1 %v991_v14  ;;  %1561 = vmatmul.mubr.f32.gmra.mrb[68].mxu0 %v991_v14 }
 0x1e5   : > { %1309 = vmatprep.mubr.f32.mxu1 %v4738_v44  ;;  %1566 = vmatprep.mubr.f32.mxu0 %v4738_v44 }
 0x1e8   : > { %1310 = vmatmul.mubr.f32.gmra.mrb[70].mxu1 %v992_v19  ;;  %1567 = vmatmul.mubr.f32.gmra.mrb[70].mxu0 %v992_v19 }
 0x1e9   : > { %1315 = vmatprep.mubr.f32.mxu1 %v4738_v44  ;;  %1572 = vmatprep.mubr.f32.mxu0 %v4738_v44 }
 0x1ec   : > { %1316 = vmatmul.mubr.f32.gmra.mrb[72].mxu1 %v993_v22  ;;  %1573 = vmatmul.mubr.f32.gmra.mrb[72].mxu0 %v993_v22 }
 0x1ed   : > { %1321 = vmatprep.mubr.f32.mxu1 %v4738_v44  ;;  %1578 = vmatprep.mubr.f32.mxu0 %v4738_v44 }
 0x1f0   : > { %1322 = vmatmul.mubr.f32.gmra.mrb[74].mxu1 %v994_v38  ;;  %1579 = vmatmul.mubr.f32.gmra.mrb[74].mxu0 %v994_v38 }
 0x1f1   : > { %1327 = vmatprep.mubr.f32.mxu1 %v4738_v44  ;;  %1584 = vmatprep.mubr.f32.mxu0 %v4738_v44 }
 0x1f4   : > { %1328 = vmatmul.mubr.f32.gmra.mrb[76].mxu1 %v995_v28  ;;  %1585 = vmatmul.mubr.f32.gmra.mrb[76].mxu0 %v995_v28 }
 0x1f5   : > { %1333 = vmatprep.mubr.f32.mxu1 %v4738_v44  ;;  %1590 = vmatprep.mubr.f32.mxu0 %v4738_v44 }
 0x1f8   : > { %1334 = vmatmul.mubr.f32.gmra.mrb[78].mxu1 %v996_v54  ;;  %1591 = vmatmul.mubr.f32.gmra.mrb[78].mxu0 %v996_v54 }
 0x24f   : > { %v1149_v44 = vpop.f32.mrb[16].mxu1  ;;  %v1406_v41 = vpop.f32.mrb[16].mxu0 }
 0x250   : > { %v1150_v47 = vadd.f32 %v1149_v44, %v5440_v51  ;;  %v1407_v43 = vadd.f32 %v1406_v41, %v5442_v37  ;;  %v1151_v46 = vpop.f32.mrb[17].mxu1  ;;  %v1408_v48 = vpop.f32.mrb[17].mxu0 }
 0x251   : > { %v1152_v49 = vadd.f32 %v1151_v46, %v5444_v40  ;;  %v1409_v62 = vadd.f32 %v1408_v48, %v5446_v42 }
 0x252   : > { %1597 = vst [vmem:[#allocation2] ss:$4 sm:$0xff] %v1150_v47  ;;  %1613 = vst [vmem:[#allocation2 + $0x2] ss:$4 sm:$0xff] %v1407_v43 }
 0x253   : > { %1605 = vst [vmem:[#allocation2 + $0x1] ss:$4 sm:$0xff] %v1152_v49  ;;  %1621 = vst [vmem:[#allocation2 + $0x3] ss:$4 sm:$0xff] %v1409_v62  ;;  %v1155_v53 = vpop.f32.mrb[18].mxu1  ;;  %v1412_v52 = vpop.f32.mrb[18].mxu0 }
 0x254   : > { %v1156_v55 = vadd.f32 %v1155_v53, %v5440_v51  ;;  %v1413_v56 = vadd.f32 %v1412_v52, %v5442_v37  ;;  %v1157_v59 = vpop.f32.mrb[19].mxu1  ;;  %v1414_v57 = vpop.f32.mrb[19].mxu0 }
 0x255   : > { %v1158_v58 = vadd.f32 %v1157_v59, %v5444_v40  ;;  %v1415_v60 = vadd.f32 %v1414_v57, %v5446_v42 }
 0x256   : > { %1599 = vst [vmem:[#allocation2 + $0x20] ss:$4 sm:$0xff] %v1156_v55  ;;  %1615 = vst [vmem:[#allocation2 + $0x22] ss:$4 sm:$0xff] %v1413_v56 }
 0x257   : > { %1607 = vst [vmem:[#allocation2 + $0x21] ss:$4 sm:$0xff] %v1158_v58  ;;  %1623 = vst [vmem:[#allocation2 + $0x23] ss:$4 sm:$0xff] %v1415_v60  ;;  %v1161_v45 = vpop.f32.mrb[20].mxu1  ;;  %v1418_v8 = vpop.f32.mrb[20].mxu0 }
 0x258   : > { %v1162_v61 = vadd.f32 %v1161_v45, %v5440_v51  ;;  %v1419_v63 = vadd.f32 %v1418_v8, %v5442_v37  ;;  %v1163_v1 = vpop.f32.mrb[21].mxu1  ;;  %v1420_v0 = vpop.f32.mrb[21].mxu0 }
 0x259   : > { %v1164_v6 = vadd.f32 %v1163_v1, %v5444_v40  ;;  %v1421_v2 = vadd.f32 %v1420_v0, %v5446_v42 }
 0x25a   : > { %v1628_v3 = vld [vmem:[#allocation2] sm:$0xff]  ;;  %v5460_v4 = vld [vmem:[#allocation2 + $0x8] sm:$0xff]  ;;  %v5462_v5 = vld [vmem:[#allocation2 + $0x10] sm:$0xff]  ;;  %1601 = vst [vmem:[#allocation2 + $0x40] ss:$4 sm:$0xff] %v1162_v61 }
 0x25b   : > { %1617 = vst [vmem:[#allocation2 + $0x42] ss:$4 sm:$0xff] %v1419_v63  ;;  %v5464_v18 = vld [vmem:[#allocation2 + $0x18] sm:$0xff]  ;;  %1609 = vst [vmem:[#allocation2 + $0x41] ss:$4 sm:$0xff] %v1164_v6  ;;  %v1167_v7 = vpop.f32.mrb[22].mxu1  ;;  %3806 = vmatprep.mubr.f32.mxu1 %v1628_v3  ;;  %v4302_v10 = vpack.c.bf16 %v5460_v4, %v1628_v3 }
 0x25c   : > { %1625 = vst [vmem:[#allocation2 + $0x43] ss:$4 sm:$0xff] %v1421_v2  ;;  %v1424_v9 = vpop.f32.mrb[22].mxu0  ;;  %v1168_v11 = vadd.f32 %v1167_v7, %v5440_v51  ;;  %v1169_v12 = vpop.f32.mrb[23].mxu1  ;;  %v4306_v29 = vpack.c.bf16 %v5464_v18, %v5462_v5 }
 0x25d   : > { %v1425_v16 = vadd.f32 %v1424_v9, %v5442_v37  ;;  %v1426_v13 = vpop.f32.mrb[23].mxu0  ;;  %v1170_v14 = vadd.f32 %v1169_v12, %v5444_v40  ;;  %4303 = vmatprep.subr.bf16.mxu1 %v4302_v10 }
 0x25e   : > { %v1427_v15 = vadd.f32 %v1426_v13, %v5446_v42  ;;  %1603 = vst [vmem:[#allocation2 + $0x60] ss:$4 sm:$0xff] %v1168_v11  ;;  %4305 = vmatpush3.bf16.xpose.msra.mxu1 %v4302_v10  ;;  %v5477_v24 = vld [vmem:[#allocation2 + $0x20] sm:$0xff]  ;;  %v5479_v38 = vld [vmem:[#allocation2 + $0x28] sm:$0xff]  ;;  %v5483_v34 = vld [vmem:[#allocation2 + $0x30] sm:$0xff] }
 0x25f   : > { %1619 = vst [vmem:[#allocation2 + $0x62] ss:$4 sm:$0xff] %v1425_v16  ;;  %1611 = vst [vmem:[#allocation2 + $0x61] ss:$4 sm:$0xff] %v1170_v14  ;;  %v1173_v17 = vpop.f32.mrb[24].mxu1  ;;  %v1430_v19 = vpop.f32.mrb[24].mxu0  ;;  %4307 = vmatprep.subr.bf16.mxu1 %v4306_v29  ;;  %v4310_v35 = vpack.c.bf16 %v5479_v38, %v5477_v24 }
 0x260   : > { %1627 = vst [vmem:[#allocation2 + $0x63] ss:$4 sm:$0xff] %v1427_v15  ;;  %v1174_v20 = vadd.f32 %v1173_v17, %v5440_v51  ;;  %v1431_v26 = vadd.f32 %v1430_v19, %v5442_v37  ;;  %v1175_v21 = vpop.f32.mrb[25].mxu1  ;;  %v1432_v22 = vpop.f32.mrb[25].mxu0  ;;  %v5485_v50 = vld [vmem:[#allocation2 + $0x38] sm:$0xff] }
 0x261   : > { %v1176_v23 = vadd.f32 %v1175_v21, %v5444_v40  ;;  %v1433_v30 = vadd.f32 %v1432_v22, %v5446_v42  ;;  %v4314_v9 = vpack.c.bf16 %v5485_v50, %v5483_v34 }
 0x262   : > { %1805 = vst [vmem:[#allocation2] ss:$4 sm:$0xff] %v1174_v20  ;;  %1813 = vst [vmem:[#allocation2 + $0x2] ss:$4 sm:$0xff] %v1431_v26 }
 0x263   : > { %1809 = vst [vmem:[#allocation2 + $0x1] ss:$4 sm:$0xff] %v1176_v23  ;;  %1817 = vst [vmem:[#allocation2 + $0x3] ss:$4 sm:$0xff] %v1433_v30  ;;  %v1179_v25 = vpop.f32.mrb[26].mxu1  ;;  %v1436_v39 = vpop.f32.mrb[26].mxu0 }
 0x264   : > { %v1180_v27 = vadd.f32 %v1179_v25, %v5440_v51  ;;  %v1437_v28 = vadd.f32 %v1436_v39, %v5442_v37  ;;  %v1181_v54 = vpop.f32.mrb[27].mxu1  ;;  %v1438_v31 = vpop.f32.mrb[27].mxu0  ;;  %v5491_v41 = vld [vmem:[#allocation2 + $0x40] sm:$0xff]  ;;  %v5495_v49 = vld [vmem:[#allocation2 + $0x48] sm:$0xff]  ;;  %v5497_v62 = vld [vmem:[#allocation2 + $0x50] sm:$0xff] }
 0x265   : > { %v1182_v32 = vadd.f32 %v1181_v54, %v5444_v40  ;;  %v1439_v33 = vadd.f32 %v1438_v31, %v5446_v42  ;;  %v5499_v53 = vld [vmem:[#allocation2 + $0x58] sm:$0xff]  ;;  %v4318_v31 = vpack.c.bf16 %v5495_v49, %v5491_v41 }
 0x266   : > { %1806 = vst [vmem:[#allocation2 + $0x20] ss:$4 sm:$0xff] %v1180_v27  ;;  %1814 = vst [vmem:[#allocation2 + $0x22] ss:$4 sm:$0xff] %v1437_v28  ;;  %4309 = vmatpush3.bf16.xpose.msra.mxu1 %v4306_v29 }
 0x267   : > { %1810 = vst [vmem:[#allocation2 + $0x21] ss:$4 sm:$0xff] %v1182_v32  ;;  %1818 = vst [vmem:[#allocation2 + $0x23] ss:$4 sm:$0xff] %v1439_v33  ;;  %4311 = vmatprep.subr.bf16.mxu1 %v4310_v35  ;;  %v1185_v36 = vpop.f32.mrb[28].mxu1  ;;  %v1442_v44 = vpop.f32.mrb[28].mxu0 }
 0x268   : > { %v1186_v47 = vadd.f32 %v1185_v36, %v5440_v51  ;;  %v1443_v43 = vadd.f32 %v1442_v44, %v5442_v37  ;;  %v1187_v46 = vpop.f32.mrb[29].mxu1  ;;  %v1444_v48 = vpop.f32.mrb[29].mxu0  ;;  %v5510_v61 = vld [vmem:[#allocation2 + $0x60] sm:$0xff]  ;;  %v5514_v2 = vld [vmem:[#allocation2 + $0x68] sm:$0xff]  ;;  %v5516_v3 = vld [vmem:[#allocation2 + $0x70] sm:$0xff] }
 0x269   : > { %v1188_v52 = vadd.f32 %v1187_v46, %v5444_v40  ;;  %v1445_v55 = vadd.f32 %v1444_v48, %v5446_v42  ;;  %v5518_v7 = vld [vmem:[#allocation2 + $0x78] sm:$0xff] }
 0x26a   : > { %v1821_v56 = vld [vmem:[#allocation2] sm:$0xff]  ;;  %v5503_v59 = vld [vmem:[#allocation2 + $0x8] sm:$0xff]  ;;  %v5505_v57 = vld [vmem:[#allocation2 + $0x10] sm:$0xff]  ;;  %1807 = vst [vmem:[#allocation2 + $0x40] ss:$4 sm:$0xff] %v1186_v47 }
 0x26b   : > { %1815 = vst [vmem:[#allocation2 + $0x42] ss:$4 sm:$0xff] %v1443_v43  ;;  %v5507_v58 = vld [vmem:[#allocation2 + $0x18] sm:$0xff]  ;;  %3862 = vmatprep.mubr.f32.mxu0 %v1821_v56  ;;  %v4334_v60 = vpack.c.bf16 %v5503_v59, %v1821_v56  ;;  %1811 = vst [vmem:[#allocation2 + $0x41] ss:$4 sm:$0xff] %v1188_v52  ;;  %v1191_v45 = vpop.f32.mrb[30].mxu1 }
 0x26c   : > { %1819 = vst [vmem:[#allocation2 + $0x43] ss:$4 sm:$0xff] %v1445_v55  ;;  %v1448_v8 = vpop.f32.mrb[30].mxu0  ;;  %v1192_v63 = vadd.f32 %v1191_v45, %v5440_v51  ;;  %v1193_v0 = vpop.f32.mrb[31].mxu1  ;;  %v4338_v10 = vpack.c.bf16 %v5507_v58, %v5505_v57 }
 0x26d   : > { %v1449_v1 = vadd.f32 %v1448_v8, %v5442_v37  ;;  %v1450_v6 = vpop.f32.mrb[31].mxu0  ;;  %4335 = vmatprep.subr.bf16.mxu0 %v4334_v60  ;;  %v1194_v11 = vadd.f32 %v1193_v0, %v5444_v40 }
 0x26e   : > { %v1451_v16 = vadd.f32 %v1450_v6, %v5446_v42  ;;  %4313 = vmatpush3.bf16.xpose.msra.mxu1 %v4310_v35  ;;  %4337 = vmatpush3.bf16.xpose.msra.mxu0 %v4334_v60  ;;  %1808 = vst [vmem:[#allocation2 + $0x60] ss:$4 sm:$0xff] %v1192_v63  ;;  %v5530_v26 = vld [vmem:[#allocation2 + $0x20] sm:$0xff]  ;;  %v5532_v21 = vld [vmem:[#allocation2 + $0x28] sm:$0xff]  ;;  %v5536_v28 = vld [vmem:[#allocation2 + $0x30] sm:$0xff] }
 0x26f   : > { %1816 = vst [vmem:[#allocation2 + $0x62] ss:$4 sm:$0xff] %v1449_v1  ;;  %4315 = vmatprep.subr.bf16.mxu1 %v4314_v9  ;;  %4339 = vmatprep.subr.bf16.mxu0 %v4338_v10  ;;  %1812 = vst [vmem:[#allocation2 + $0x61] ss:$4 sm:$0xff] %v1194_v11  ;;  %v1197_v12 = vpop.f32.mrb[32].mxu1  ;;  %v1454_v13 = vpop.f32.mrb[32].mxu0  ;;  %v4342_v32 = vpack.c.bf16 %v5532_v21, %v5530_v26 }
 0x270   : > { %1820 = vst [vmem:[#allocation2 + $0x63] ss:$4 sm:$0xff] %v1451_v16  ;;  %v1198_v14 = vadd.f32 %v1197_v12, %v5440_v51  ;;  %v1455_v15 = vadd.f32 %v1454_v13, %v5442_v37  ;;  %v1199_v29 = vpop.f32.mrb[33].mxu1  ;;  %v1456_v17 = vpop.f32.mrb[33].mxu0  ;;  %v5538_v54 = vld [vmem:[#allocation2 + $0x38] sm:$0xff]  ;;  %v4322_v16 = vpack.c.bf16 %v5499_v53, %v5497_v62 }
 0x271   : > { %v1200_v19 = vadd.f32 %v1199_v29, %v5444_v40  ;;  %v1457_v20 = vadd.f32 %v1456_v17, %v5446_v42  ;;  %v4346_v12 = vpack.c.bf16 %v5538_v54, %v5536_v28 }
 0x272   : > { %1999 = vst [vmem:[#allocation2] ss:$4 sm:$0xff] %v1198_v14  ;;  %2007 = vst [vmem:[#allocation2 + $0x2] ss:$4 sm:$0xff] %v1455_v15 }
 0x273   : > { %2003 = vst [vmem:[#allocation2 + $0x1] ss:$4 sm:$0xff] %v1200_v19  ;;  %2011 = vst [vmem:[#allocation2 + $0x3] ss:$4 sm:$0xff] %v1457_v20  ;;  %v1203_v22 = vpop.f32.mrb[34].mxu1  ;;  %v1460_v23 = vpop.f32.mrb[34].mxu0 }
 0x274   : > { %v1204_v30 = vadd.f32 %v1203_v22, %v5440_v51  ;;  %v1461_v25 = vadd.f32 %v1460_v23, %v5442_v37  ;;  %v1205_v39 = vpop.f32.mrb[35].mxu1  ;;  %v1462_v27 = vpop.f32.mrb[35].mxu0  ;;  %v5546_v47 = vld [vmem:[#allocation2 + $0x40] sm:$0xff]  ;;  %v5550_v55 = vld [vmem:[#allocation2 + $0x48] sm:$0xff]  ;;  %v5552_v56 = vld [vmem:[#allocation2 + $0x50] sm:$0xff] }
 0x275   : > { %v1206_v33 = vadd.f32 %v1205_v39, %v5444_v40  ;;  %v1463_v35 = vadd.f32 %v1462_v27, %v5446_v42  ;;  %v5554_v60 = vld [vmem:[#allocation2 + $0x58] sm:$0xff] }
 0x276   : > { %4317 = vmatpush3.bf16.xpose.msra.mxu1 %v4314_v9  ;;  %4341 = vmatpush3.bf16.xpose.msra.mxu0 %v4338_v10  ;;  %2000 = vst [vmem:[#allocation2 + $0x20] ss:$4 sm:$0xff] %v1204_v30  ;;  %2008 = vst [vmem:[#allocation2 + $0x22] ss:$4 sm:$0xff] %v1461_v25 }
 0x277   : > { %4319 = vmatprep.subr.bf16.mxu1 %v4318_v31  ;;  %4343 = vmatprep.subr.bf16.mxu0 %v4342_v32  ;;  %2004 = vst [vmem:[#allocation2 + $0x21] ss:$4 sm:$0xff] %v1206_v33  ;;  %2012 = vst [vmem:[#allocation2 + $0x23] ss:$4 sm:$0xff] %v1463_v35  ;;  %v1209_v36 = vpop.f32.mrb[36].mxu1  ;;  %v1466_v44 = vpop.f32.mrb[36].mxu0 }
 0x278   : > { %v1210_v43 = vadd.f32 %v1209_v36, %v5440_v51  ;;  %v1467_v46 = vadd.f32 %v1466_v44, %v5442_v37  ;;  %v1211_v48 = vpop.f32.mrb[37].mxu1  ;;  %v1468_v52 = vpop.f32.mrb[37].mxu0  ;;  %6314 = vst [vmem:[#allocation6_spill] sm:$0xff] %v5554_v60  ;;  %v5558_v0 = vld [vmem:[#allocation2 + $0x60] sm:$0xff]  ;;  %v5566_v13 = vld [vmem:[#allocation2 + $0x68] sm:$0xff]  ;;  %v5568_v14 = vld [vmem:[#allocation2 + $0x70] sm:$0xff] }
 0x279   : > { %v1212_v45 = vadd.f32 %v1211_v48, %v5444_v40  ;;  %v1469_v8 = vadd.f32 %v1468_v52, %v5446_v42  ;;  %6315 = vst [vmem:[#allocation7_spill] sm:$0xff] %v5558_v0  ;;  %6316 = vst [vmem:[#allocation8_spill] sm:$0xff] %v5566_v13  ;;  %v5570_v15 = vld [vmem:[#allocation2 + $0x78] sm:$0xff] }
 0x27a   : > { %2001 = vst [vmem:[#allocation2 + $0x40] ss:$4 sm:$0xff] %v1210_v43  ;;  %2009 = vst [vmem:[#allocation2 + $0x42] ss:$4 sm:$0xff] %v1467_v46  ;;  %v5574_v22 = vld [vmem:[#allocation2] sm:$0xff]  ;;  %v5578_v27 = vld [vmem:[#allocation2 + $0x8] sm:$0xff] }
 0x27b   : > { %2005 = vst [vmem:[#allocation2 + $0x41] ss:$4 sm:$0xff] %v1212_v45  ;;  %2013 = vst [vmem:[#allocation2 + $0x43] ss:$4 sm:$0xff] %v1469_v8  ;;  %v1215_v63 = vpop.f32.mrb[38].mxu1  ;;  %v1472_v1 = vpop.f32.mrb[38].mxu0  ;;  %v4326_v8 = vpack.c.bf16 %v5514_v2, %v5510_v61 }
 0x27c   : > { %v1216_v6 = vadd.f32 %v1215_v63, %v5440_v51  ;;  %v1473_v9 = vadd.f32 %v1472_v1, %v5442_v37  ;;  %v1217_v10 = vpop.f32.mrb[39].mxu1  ;;  %v1474_v11 = vpop.f32.mrb[39].mxu0  ;;  %6317 = vst [vmem:[#allocation9_spill] sm:$0xff] %v5578_v27  ;;  %v4350_v63 = vpack.c.bf16 %v5550_v55, %v5546_v47 }
 0x27d   : > { %v1218_v29 = vadd.f32 %v1217_v10, %v5444_v40  ;;  %v1475_v17 = vadd.f32 %v1474_v11, %v5446_v42 }
 0x27e   : > { %4321 = vmatpush3.bf16.xpose.msra.mxu1 %v4318_v31  ;;  %4345 = vmatpush3.bf16.xpose.msra.mxu0 %v4342_v32  ;;  %2002 = vst [vmem:[#allocation2 + $0x60] ss:$4 sm:$0xff] %v1216_v6  ;;  %2010 = vst [vmem:[#allocation2 + $0x62] ss:$4 sm:$0xff] %v1473_v9  ;;  %v5580_v31 = vld [vmem:[#allocation2 + $0x10] sm:$0xff]  ;;  %v5582_v32 = vld [vmem:[#allocation2 + $0x18] sm:$0xff] }
 0x27f   : > { %4323 = vmatprep.subr.bf16.mxu1 %v4322_v16  ;;  %4347 = vmatprep.subr.bf16.mxu0 %v4346_v12  ;;  %2006 = vst [vmem:[#allocation2 + $0x61] ss:$4 sm:$0xff] %v1218_v29  ;;  %2014 = vst [vmem:[#allocation2 + $0x63] ss:$4 sm:$0xff] %v1475_v17  ;;  %v1221_v19 = vpop.f32.mrb[40].mxu1  ;;  %v1478_v20 = vpop.f32.mrb[40].mxu0 }
 0x280   : > { %v1222_v23 = vadd.f32 %v1221_v19, %v5440_v51  ;;  %v1479_v30 = vadd.f32 %v1478_v20, %v5442_v37  ;;  %v1223_v25 = vpop.f32.mrb[41].mxu1  ;;  %v1480_v39 = vpop.f32.mrb[41].mxu0  ;;  %6318 = vst [vmem:[#allocation10_spill] sm:$0xff] %v5580_v31  ;;  %6319 = vst [vmem:[#allocation11_spill] sm:$0xff] %v5582_v32  ;;  %v5586_v43 = vld [vmem:[#allocation2 + $0x20] sm:$0xff]  ;;  %v5594_v1 = vld [vmem:[#allocation2 + $0x28] sm:$0xff] }
 0x281   : > { %v1224_v33 = vadd.f32 %v1223_v25, %v5444_v40  ;;  %v1481_v35 = vadd.f32 %v1480_v39, %v5446_v42  ;;  %v5596_v6 = vld [vmem:[#allocation2 + $0x30] sm:$0xff]  ;;  %v5598_v9 = vld [vmem:[#allocation2 + $0x38] sm:$0xff] }
 0x282   : > { %2193 = vst [vmem:[#allocation2] ss:$4 sm:$0xff] %v1222_v23  ;;  %2201 = vst [vmem:[#allocation2 + $0x2] ss:$4 sm:$0xff] %v1479_v30  ;;  %v5602_v19 = vld [vmem:[#allocation2 + $0x40] sm:$0xff]  ;;  %v5606_v39 = vld [vmem:[#allocation2 + $0x48] sm:$0xff] }
 0x283   : > { %2197 = vst [vmem:[#allocation2 + $0x1] ss:$4 sm:$0xff] %v1224_v33  ;;  %2205 = vst [vmem:[#allocation2 + $0x3] ss:$4 sm:$0xff] %v1481_v35  ;;  %v1227_v36 = vpop.f32.mrb[42].mxu1  ;;  %v1484_v44 = vpop.f32.mrb[42].mxu0 }
 0x284   : > { %v1228_v46 = vadd.f32 %v1227_v36, %v5440_v51  ;;  %v1485_v48 = vadd.f32 %v1484_v44, %v5442_v37  ;;  %v1229_v52 = vpop.f32.mrb[43].mxu1  ;;  %v1486_v45 = vpop.f32.mrb[43].mxu0 }
 0x285   : > { %v1230_v10 = vadd.f32 %v1229_v52, %v5444_v40  ;;  %v1487_v11 = vadd.f32 %v1486_v45, %v5446_v42 }
 0x286   : > { %4325 = vmatpush3.bf16.xpose.msra.mxu1 %v4322_v16  ;;  %4349 = vmatpush3.bf16.xpose.msra.mxu0 %v4346_v12  ;;  %2194 = vst [vmem:[#allocation2 + $0x20] ss:$4 sm:$0xff] %v1228_v46  ;;  %2202 = vst [vmem:[#allocation2 + $0x22] ss:$4 sm:$0xff] %v1485_v48  ;;  %v5608_v16 = vld [vmem:[#allocation2 + $0x50] sm:$0xff]  ;;  %v5610_v12 = vld [vmem:[#allocation2 + $0x58] sm:$0xff] }
 0x287   : > { %4327 = vmatprep.subr.bf16.mxu1 %v4326_v8  ;;  %4351 = vmatprep.subr.bf16.mxu0 %v4350_v63  ;;  %2198 = vst [vmem:[#allocation2 + $0x21] ss:$4 sm:$0xff] %v1230_v10  ;;  %2206 = vst [vmem:[#allocation2 + $0x23] ss:$4 sm:$0xff] %v1487_v11  ;;  %v1233_v29 = vpop.f32.mrb[44].mxu1  ;;  %v1490_v17 = vpop.f32.mrb[44].mxu0  ;;  %v4330_v11 = vpack.c.bf16 %v5518_v7, %v5516_v3 }
 0x288   : > { %v1234_v20 = vadd.f32 %v1233_v29, %v5440_v51  ;;  %v1491_v23 = vadd.f32 %v1490_v17, %v5442_v37  ;;  %v1235_v30 = vpop.f32.mrb[45].mxu1  ;;  %v1492_v25 = vpop.f32.mrb[45].mxu0  ;;  %6320 = vst [vmem:[#allocation12_spill] sm:$0xff] %v5610_v12  ;;  %v5614_v46 = vld [vmem:[#allocation2 + $0x60] sm:$0xff]  ;;  %v4354_v29 = vpack.c.bf16 %v5554_v60, %v5552_v56  ;;  %v5622_v17 = vld [vmem:[#allocation2 + $0x68] sm:$0xff]  ;;  %v4358_v12 = vpack.c.bf16 %v5566_v13, %v5558_v0 }
 0x289   : > { %v1236_v33 = vadd.f32 %v1235_v30, %v5444_v40  ;;  %v1493_v35 = vadd.f32 %v1492_v25, %v5446_v42  ;;  %6321 = vst [vmem:[#allocation13_spill] sm:$0xff] %v5614_v46  ;;  %6322 = vst [vmem:[#allocation14_spill] sm:$0xff] %v5622_v17 }
 0x28a   : > { %2195 = vst [vmem:[#allocation2 + $0x40] ss:$4 sm:$0xff] %v1234_v20  ;;  %2203 = vst [vmem:[#allocation2 + $0x42] ss:$4 sm:$0xff] %v1491_v23  ;;  %v5624_v20 = vld [vmem:[#allocation2 + $0x70] sm:$0xff]  ;;  %v5626_v23 = vld [vmem:[#allocation2 + $0x78] sm:$0xff] }
 0x28b   : > { %2199 = vst [vmem:[#allocation2 + $0x41] ss:$4 sm:$0xff] %v1236_v33  ;;  %2207 = vst [vmem:[#allocation2 + $0x43] ss:$4 sm:$0xff] %v1493_v35  ;;  %v1239_v36 = vpop.f32.mrb[46].mxu1  ;;  %v1496_v44 = vpop.f32.mrb[46].mxu0 }
 0x28c   : > { %v1240_v48 = vadd.f32 %v1239_v36, %v5440_v51  ;;  %v1497_v52 = vadd.f32 %v1496_v44, %v5442_v37  ;;  %v1241_v45 = vpop.f32.mrb[47].mxu1  ;;  %v1498_v10 = vpop.f32.mrb[47].mxu0  ;;  %6323 = vst [vmem:[#allocation15_spill] sm:$0xff] %v5624_v20  ;;  %6324 = vst [vmem:[#allocation16_spill] sm:$0xff] %v5626_v23  ;;  %v5630_v36 = vld [vmem:[#allocation2] sm:$0xff]  ;;  %v5634_v17 = vld [vmem:[#allocation2 + $0x8] sm:$0xff] }
 0x28d   : > { %v1242_v30 = vadd.f32 %v1241_v45, %v5444_v40  ;;  %v1499_v25 = vadd.f32 %v1498_v10, %v5446_v42 }
 0x28e   : > { %4329 = vmatpush3.bf16.xpose.msra.mxu1 %v4326_v8  ;;  %4353 = vmatpush3.bf16.xpose.msra.mxu0 %v4350_v63  ;;  %2196 = vst [vmem:[#allocation2 + $0x60] ss:$4 sm:$0xff] %v1240_v48  ;;  %2204 = vst [vmem:[#allocation2 + $0x62] ss:$4 sm:$0xff] %v1497_v52  ;;  %v5636_v8 = vld [vmem:[#allocation2 + $0x10] sm:$0xff]  ;;  %v5638_v63 = vld [vmem:[#allocation2 + $0x18] sm:$0xff] }
 0x28f   : > { %4331 = vmatprep.subr.bf16.mxu1 %v4330_v11  ;;  %4355 = vmatprep.subr.bf16.mxu0 %v4354_v29  ;;  %2200 = vst [vmem:[#allocation2 + $0x61] ss:$4 sm:$0xff] %v1242_v30  ;;  %2208 = vst [vmem:[#allocation2 + $0x63] ss:$4 sm:$0xff] %v1499_v25  ;;  %v1245_v33 = vpop.f32.mrb[48].mxu1  ;;  %v1502_v35 = vpop.f32.mrb[48].mxu0 }
 0x290   : > { %v1246_v44 = vadd.f32 %v1245_v33, %v5440_v51  ;;  %v1503_v23 = vadd.f32 %v1502_v35, %v5442_v37  ;;  %v1247_v20 = vpop.f32.mrb[49].mxu1  ;;  %v1504_v45 = vpop.f32.mrb[49].mxu0  ;;  %v5642_v25 = vld [vmem:[#allocation2 + $0x20] sm:$0xff] }
 0x291   : > { %v1248_v48 = vadd.f32 %v1247_v20, %v5444_v40  ;;  %v1505_v52 = vadd.f32 %v1504_v45, %v5446_v42  ;;  %v4366_v20 = vpack.c.bf16 %v5578_v27, %v5574_v22  ;;  %v5654_v45 = vld [vmem:[#allocation2 + $0x38] sm:$0xff] }
 0x292   : > { %2387 = vst [vmem:[#allocation2] ss:$4 sm:$0xff] %v1246_v44  ;;  %2395 = vst [vmem:[#allocation2 + $0x2] ss:$4 sm:$0xff] %v1503_v23  ;;  %v5650_v44 = vld [vmem:[#allocation2 + $0x28] sm:$0xff]  ;;  %v5652_v23 = vld [vmem:[#allocation2 + $0x30] sm:$0xff] }
 0x293   : > { %2391 = vst [vmem:[#allocation2 + $0x1] ss:$4 sm:$0xff] %v1248_v48  ;;  %2399 = vst [vmem:[#allocation2 + $0x3] ss:$4 sm:$0xff] %v1505_v52  ;;  %v1251_v10 = vpop.f32.mrb[50].mxu1  ;;  %v1508_v30 = vpop.f32.mrb[50].mxu0 }
 0x294   : > { %v1252_v33 = vadd.f32 %v1251_v10, %v5440_v51  ;;  %v1509_v35 = vadd.f32 %v1508_v30, %v5442_v37  ;;  %v1253_v46 = vpop.f32.mrb[51].mxu1  ;;  %v1510_v60 = vpop.f32.mrb[51].mxu0  ;;  %6325 = vst [vmem:[#allocation17_spill] sm:$0xff] %v5652_v23  ;;  %6326 = vst [vmem:[#allocation18_spill] sm:$0xff] %v5654_v45  ;;  %v5658_v27 = vld [vmem:[#allocation2 + $0x40] sm:$0xff]  ;;  %v5662_v23 = vld [vmem:[#allocation2 + $0x48] sm:$0xff] }
 0x295   : > { %v1254_v48 = vadd.f32 %v1253_v46, %v5444_v40  ;;  %v1511_v52 = vadd.f32 %v1510_v60, %v5446_v42  ;;  %6327 = vst [vmem:[#allocation19_spill] sm:$0xff] %v5662_v23  ;;  %v5664_v60 = vld [vmem:[#allocation2 + $0x50] sm:$0xff] }
 0x296   : > { %4333 = vmatpush3.bf16.xpose.msra.mxu1 %v4330_v11  ;;  %4357 = vmatpush3.bf16.xpose.msra.mxu0 %v4354_v29  ;;  %2388 = vst [vmem:[#allocation2 + $0x20] ss:$4 sm:$0xff] %v1252_v33  ;;  %2396 = vst [vmem:[#allocation2 + $0x22] ss:$4 sm:$0xff] %v1509_v35  ;;  %v5666_v11 = vld [vmem:[#allocation2 + $0x58] sm:$0xff] }
 0x297   : > { %4359 = vmatprep.subr.bf16.mxu0 %v4358_v12  ;;  %4367 = vmatprep.subr.bf16.mxu1 %v4366_v20  ;;  %2392 = vst [vmem:[#allocation2 + $0x21] ss:$4 sm:$0xff] %v1254_v48  ;;  %2400 = vst [vmem:[#allocation2 + $0x23] ss:$4 sm:$0xff] %v1511_v52  ;;  %v1257_v10 = vpop.f32.mrb[52].mxu1  ;;  %v1514_v30 = vpop.f32.mrb[52].mxu0 }
 0x298   : > { %v1258_v13 = vadd.f32 %v1257_v10, %v5440_v51  ;;  %v1515_v0 = vadd.f32 %v1514_v30, %v5442_v37  ;;  %v1259_v45 = vpop.f32.mrb[53].mxu1  ;;  %v1516_v46 = vpop.f32.mrb[53].mxu0  ;;  %6328 = vst [vmem:[#allocation20_spill] sm:$0xff] %v5664_v60  ;;  %v5672_v30 = vld [vmem:[#allocation2 + $0x60] sm:$0xff] }
 0x299   : > { %v1260_v29 = vadd.f32 %v1259_v45, %v5444_v40  ;;  %v1517_v33 = vadd.f32 %v1516_v46, %v5446_v42  ;;  %v4362_v45 = vpack.c.bf16 %v5570_v15, %v5568_v14  ;;  %v5677_v46 = vld [vmem:[#allocation2 + $0x68] sm:$0xff] }
 0x29a   : > { %2389 = vst [vmem:[#allocation2 + $0x40] ss:$4 sm:$0xff] %v1258_v13  ;;  %2397 = vst [vmem:[#allocation2 + $0x42] ss:$4 sm:$0xff] %v1515_v0 }
 0x29b   : > { %2393 = vst [vmem:[#allocation2 + $0x41] ss:$4 sm:$0xff] %v1260_v29  ;;  %2401 = vst [vmem:[#allocation2 + $0x43] ss:$4 sm:$0xff] %v1517_v33  ;;  %v1263_v35 = vpop.f32.mrb[54].mxu1  ;;  %v1520_v48 = vpop.f32.mrb[54].mxu0 }
 0x29c   : > { %v1264_v52 = vadd.f32 %v1263_v35, %v5440_v51  ;;  %v1521_v10 = vadd.f32 %v1520_v48, %v5442_v37  ;;  %v1265_v23 = vpop.f32.mrb[55].mxu1  ;;  %v1522_v60 = vpop.f32.mrb[55].mxu0  ;;  %v5681_v29 = vld [vmem:[#allocation2 + $0x70] sm:$0xff]  ;;  %v5683_v33 = vld [vmem:[#allocation2 + $0x78] sm:$0xff]  ;;  %v4370_v35 = vpack.c.bf16 %v5582_v32, %v5580_v31  ;;  %v5693_v32 = vld [vmem:[#allocation2 + $0x8] sm:$0xff] }
 0x29d   : > { %3807 = vmatmul.mubr.f32.vlgmr.msra.gmra.mrb[80].mxu1 %v5460_v4  ;;  %v1266_v0 = vadd.f32 %v1265_v23, %v5444_v40  ;;  %v1523_v13 = vadd.f32 %v1522_v60, %v5446_v42  ;;  %6329 = vst [vmem:[#allocation21_spill] sm:$0xff] %v5683_v33  ;;  %v5688_v23 = vld [vmem:[#allocation2] sm:$0xff] }
 0x29e   : > { %3809 = vmatprep.mubr.f32.mxu1 %v5462_v5  ;;  %4361 = vmatpush3.bf16.xpose.msra.mxu0 %v4358_v12  ;;  %2390 = vst [vmem:[#allocation2 + $0x60] ss:$4 sm:$0xff] %v1264_v52  ;;  %2398 = vst [vmem:[#allocation2 + $0x62] ss:$4 sm:$0xff] %v1521_v10  ;;  %v5697_v10 = vld [vmem:[#allocation2 + $0x10] sm:$0xff] }
 0x29f   : > { %4369 = vmatpush3.bf16.xpose.msra.mxu1 %v4366_v20  ;;  %4363 = vmatprep.subr.bf16.mxu0 %v4362_v45  ;;  %v1269_v4 = vpop.f32.mrb[56].mxu1  ;;  %v1526_v48 = vpop.f32.mrb[56].mxu0  ;;  %2394 = vst [vmem:[#allocation2 + $0x61] ss:$4 sm:$0xff] %v1266_v0  ;;  %2402 = vst [vmem:[#allocation2 + $0x63] ss:$4 sm:$0xff] %v1523_v13 }
 0x2a0   : > { %4371 = vmatprep.subr.bf16.mxu1 %v4370_v35  ;;  %v1270_v60 = vadd.f32 %v1269_v4, %v5440_v51  ;;  %v1527_v33 = vadd.f32 %v1526_v48, %v5442_v37  ;;  %v1271_v5 = vpop.f32.mrb[57].mxu1  ;;  %v1528_v12 = vpop.f32.mrb[57].mxu0  ;;  %v5699_v0 = vld [vmem:[#allocation2 + $0x18] sm:$0xff]  ;;  %v5702_v48 = vld [vmem:[#allocation2 + $0x20] sm:$0xff] }
 0x2a1   : > { %3810 = vmatmul.mubr.f32.gmra.mrb[82].mxu1 %v5464_v18  ;;  %v1272_v20 = vadd.f32 %v1271_v5, %v5444_v40  ;;  %v1529_v52 = vadd.f32 %v1528_v12, %v5446_v42  ;;  %6330 = vst [vmem:[#allocation22_spill] sm:$0xff] %v5699_v0  ;;  %v4398_v0 = vpack.c.bf16 %v5634_v17, %v5630_v36 }
 0x2a2   : > { %3812 = vmatprep.mubr.f32.mxu1 %v5477_v24  ;;  %2581 = vst [vmem:[#allocation2] ss:$4 sm:$0xff] %v1270_v60  ;;  %2589 = vst [vmem:[#allocation2 + $0x2] ss:$4 sm:$0xff] %v1527_v33  ;;  %v5709_v24 = vld [vmem:[#allocation2 + $0x28] sm:$0xff] }
 0x2a3   : > { %2585 = vst [vmem:[#allocation2 + $0x1] ss:$4 sm:$0xff] %v1272_v20  ;;  %2593 = vst [vmem:[#allocation2 + $0x3] ss:$4 sm:$0xff] %v1529_v52  ;;  %v1275_v13 = vpop.f32.mrb[58].mxu1  ;;  %v1532_v4 = vpop.f32.mrb[58].mxu0 }
 0x2a4   : > { %v1276_v18 = vadd.f32 %v1275_v13, %v5440_v51  ;;  %v1533_v5 = vadd.f32 %v1532_v4, %v5442_v37  ;;  %v1277_v31 = vpop.f32.mrb[59].mxu1  ;;  %v1534_v12 = vpop.f32.mrb[59].mxu0  ;;  %v5713_v20 = vld [vmem:[#allocation2 + $0x30] sm:$0xff]  ;;  %v5715_v52 = vld [vmem:[#allocation2 + $0x38] sm:$0xff]  ;;  %v4374_v13 = vpack.c.bf16 %v5594_v1, %v5586_v43  ;;  %v5720_v4 = vld [vmem:[#allocation2 + $0x40] sm:$0xff] }
 0x2a5   : > { %3813 = vmatmul.mubr.f32.gmra.mrb[84].mxu1 %v5479_v38  ;;  %v1278_v33 = vadd.f32 %v1277_v31, %v5444_v40  ;;  %v1535_v60 = vadd.f32 %v1534_v12, %v5446_v42  ;;  %6331 = vst [vmem:[#allocation23_spill] sm:$0xff] %v5713_v20  ;;  %6332 = vst [vmem:[#allocation24_spill] sm:$0xff] %v5715_v52  ;;  %v5725_v20 = vld [vmem:[#allocation2 + $0x48] sm:$0xff] }
 0x2a6   : > { %3815 = vmatprep.mubr.f32.mxu1 %v5483_v34  ;;  %4365 = vmatpush3.bf16.xpose.msra.mxu0 %v4362_v45  ;;  %2582 = vst [vmem:[#allocation2 + $0x20] ss:$4 sm:$0xff] %v1276_v18  ;;  %2590 = vst [vmem:[#allocation2 + $0x22] ss:$4 sm:$0xff] %v1533_v5  ;;  %v5729_v5 = vld [vmem:[#allocation2 + $0x50] sm:$0xff] }
 0x2a7   : > { %4373 = vmatpush3.bf16.xpose.msra.mxu1 %v4370_v35  ;;  %4399 = vmatprep.subr.bf16.mxu0 %v4398_v0  ;;  %2586 = vst [vmem:[#allocation2 + $0x21] ss:$4 sm:$0xff] %v1278_v33  ;;  %2594 = vst [vmem:[#allocation2 + $0x23] ss:$4 sm:$0xff] %v1535_v60  ;;  %v1281_v38 = vpop.f32.mrb[60].mxu1  ;;  %v1538_v31 = vpop.f32.mrb[60].mxu0 }
 0x2a8   : > { %4375 = vmatprep.subr.bf16.mxu1 %v4374_v13  ;;  %v1282_v12 = vadd.f32 %v1281_v38, %v5440_v51  ;;  %v1539_v52 = vadd.f32 %v1538_v31, %v5442_v37  ;;  %v1283_v34 = vpop.f32.mrb[61].mxu1  ;;  %v1540_v45 = vpop.f32.mrb[61].mxu0  ;;  %6333 = vst [vmem:[#allocation25_spill] sm:$0xff] %v5725_v20  ;;  %v5731_v33 = vld [vmem:[#allocation2 + $0x58] sm:$0xff]  ;;  %v5736_v20 = vld [vmem:[#allocation2 + $0x60] sm:$0xff] }
 0x2a9   : > { %3816 = vmatmul.mubr.f32.gmra.mrb[86].mxu1 %v5485_v50  ;;  %v1284_v35 = vadd.f32 %v1283_v34, %v5444_v40  ;;  %v1541_v18 = vadd.f32 %v1540_v45, %v5446_v42  ;;  %6334 = vst [vmem:[#allocation26_spill] sm:$0xff] %v5731_v33  ;;  %v5740_v33 = vld [vmem:[#allocation2 + $0x68] sm:$0xff] }
 0x2aa   : > { %3818 = vmatprep.mubr.f32.mxu1 %v5491_v41  ;;  %2583 = vst [vmem:[#allocation2 + $0x40] ss:$4 sm:$0xff] %v1282_v12  ;;  %2591 = vst [vmem:[#allocation2 + $0x42] ss:$4 sm:$0xff] %v1539_v52  ;;  %v5744_v12 = vld [vmem:[#allocation2 + $0x70] sm:$0xff] }
 0x2ab   : > { %2587 = vst [vmem:[#allocation2 + $0x41] ss:$4 sm:$0xff] %v1284_v35  ;;  %2595 = vst [vmem:[#allocation2 + $0x43] ss:$4 sm:$0xff] %v1541_v18  ;;  %v1287_v60 = vpop.f32.mrb[62].mxu1  ;;  %v1544_v38 = vpop.f32.mrb[62].mxu0  ;;  %v4378_v18 = vpack.c.bf16 %v5598_v9, %v5596_v6 }
 0x2ac   : > { %v1288_v50 = vadd.f32 %v1287_v60, %v5440_v51  ;;  %v1545_v31 = vadd.f32 %v1544_v38, %v5442_v37  ;;  %v1289_v34 = vpop.f32.mrb[63].mxu1  ;;  %v1546_v45 = vpop.f32.mrb[63].mxu0  ;;  %v5746_v35 = vld [vmem:[#allocation2 + $0x78] sm:$0xff]  ;;  %v5754_v38 = vld [vmem:[#allocation2] sm:$0xff] }
 0x2ad   : > { %3819 = vmatmul.mubr.f32.gmra.mrb[88].mxu1 %v5495_v49  ;;  %3863 = vmatmul.mubr.f32.vlgmr.msra.gmra.mrb[80].mxu0 %v5503_v59  ;;  %v1290_v41 = vadd.f32 %v1289_v34, %v5444_v40  ;;  %v1547_v52 = vadd.f32 %v1546_v45, %v5446_v42  ;;  %6335 = vst [vmem:[#allocation27_spill] sm:$0xff] %v5746_v35 }
 0x2ae   : > { %3821 = vmatprep.mubr.f32.mxu1 %v5497_v62  ;;  %3865 = vmatprep.mubr.f32.mxu0 %v5505_v57  ;;  %v4402_v49 = vpack.c.bf16 %v5638_v63, %v5636_v8  ;;  %2584 = vst [vmem:[#allocation2 + $0x60] ss:$4 sm:$0xff] %v1288_v50  ;;  %2592 = vst [vmem:[#allocation2 + $0x62] ss:$4 sm:$0xff] %v1545_v31  ;;  %v5764_v50 = vld [vmem:[#allocation2 + $0x18] sm:$0xff] }
 0x2af   : > { %4377 = vmatpush3.bf16.xpose.msra.mxu1 %v4374_v13  ;;  %4401 = vmatpush3.bf16.xpose.msra.mxu0 %v4398_v0  ;;  %v1293_v59 = vpop.f32.mrb[64].mxu1  ;;  %v1550_v60 = vpop.f32.mrb[64].mxu0  ;;  %2588 = vst [vmem:[#allocation2 + $0x61] ss:$4 sm:$0xff] %v1290_v41  ;;  %2596 = vst [vmem:[#allocation2 + $0x63] ss:$4 sm:$0xff] %v1547_v52 }
 0x2b0   : > { %4379 = vmatprep.subr.bf16.mxu1 %v4378_v18  ;;  %4403 = vmatprep.subr.bf16.mxu0 %v4402_v49  ;;  %v1294_v62 = vadd.f32 %v1293_v59, %v5440_v51  ;;  %v1551_v57 = vadd.f32 %v1550_v60, %v5442_v37  ;;  %v1295_v34 = vpop.f32.mrb[65].mxu1  ;;  %v1552_v45 = vpop.f32.mrb[65].mxu0  ;;  %v5760_v13 = vld [vmem:[#allocation2 + $0x8] sm:$0xff]  ;;  %v5762_v0 = vld [vmem:[#allocation2 + $0x10] sm:$0xff]  ;;  %v5770_v52 = vld [vmem:[#allocation2 + $0x20] sm:$0xff] }
 0x2b1   : > { %3822 = vmatmul.mubr.f32.gmra.mrb[90].mxu1 %v5499_v53  ;;  %3866 = vmatmul.mubr.f32.gmra.mrb[82].mxu0 %v5507_v58  ;;  %v1296_v31 = vadd.f32 %v1295_v34, %v5444_v40  ;;  %v1553_v41 = vadd.f32 %v1552_v45, %v5446_v42 }
 0x2b2   : > { %3824 = vmatprep.mubr.f32.mxu1 %v5510_v61  ;;  %3868 = vmatprep.mubr.f32.mxu0 %v5530_v26  ;;  %2775 = vst [vmem:[#allocation2] ss:$4 sm:$0xff] %v1294_v62  ;;  %2783 = vst [vmem:[#allocation2 + $0x2] ss:$4 sm:$0xff] %v1551_v57  ;;  %v5776_v61 = vld [vmem:[#allocation2 + $0x28] sm:$0xff]  ;;  %v5778_v26 = vld [vmem:[#allocation2 + $0x30] sm:$0xff] }
 0x2b3   : > { %2779 = vst [vmem:[#allocation2 + $0x1] ss:$4 sm:$0xff] %v1296_v31  ;;  %2787 = vst [vmem:[#allocation2 + $0x3] ss:$4 sm:$0xff] %v1553_v41  ;;  %v1299_v53 = vpop.f32.mrb[66].mxu1  ;;  %v1556_v58 = vpop.f32.mrb[66].mxu0  ;;  %v4382_v31 = vpack.c.bf16 %v5606_v39, %v5602_v19 }
 0x2b4   : > { %v1300_v59 = vadd.f32 %v1299_v53, %v5440_v51  ;;  %v1557_v60 = vadd.f32 %v1556_v58, %v5442_v37  ;;  %v1301_v35 = vpop.f32.mrb[67].mxu1  ;;  %v1558_v34 = vpop.f32.mrb[67].mxu0  ;;  %v5780_v62 = vld [vmem:[#allocation2 + $0x38] sm:$0xff]  ;;  %v5790_v41 = vld [vmem:[#allocation2 + $0x40] sm:$0xff] }
 0x2b5   : > { %3825 = vmatmul.mubr.f32.gmra.mrb[92].mxu1 %v5514_v2  ;;  %3869 = vmatmul.mubr.f32.gmra.mrb[84].mxu0 %v5532_v21  ;;  %v1302_v57 = vadd.f32 %v1301_v35, %v5444_v40  ;;  %v1559_v45 = vadd.f32 %v1558_v34, %v5446_v42  ;;  %v4406_v2 = vpack.c.bf16 %v5650_v44, %v5642_v25 }
 0x2b6   : > { %3827 = vmatprep.mubr.f32.mxu1 %v5516_v3  ;;  %3871 = vmatprep.mubr.f32.mxu0 %v5536_v28  ;;  %2776 = vst [vmem:[#allocation2 + $0x20] ss:$4 sm:$0xff] %v1300_v59  ;;  %2784 = vst [vmem:[#allocation2 + $0x22] ss:$4 sm:$0xff] %v1557_v60  ;;  %v5800_v59 = vld [vmem:[#allocation2 + $0x58] sm:$0xff] }
 0x2b7   : > { %4381 = vmatpush3.bf16.xpose.msra.mxu1 %v4378_v18  ;;  %4405 = vmatpush3.bf16.xpose.msra.mxu0 %v4402_v49  ;;  %2780 = vst [vmem:[#allocation2 + $0x21] ss:$4 sm:$0xff] %v1302_v57  ;;  %2788 = vst [vmem:[#allocation2 + $0x23] ss:$4 sm:$0xff] %v1559_v45  ;;  %v1305_v21 = vpop.f32.mrb[68].mxu1  ;;  %v1562_v35 = vpop.f32.mrb[68].mxu0 }
 0x2b8   : > { %4383 = vmatprep.subr.bf16.mxu1 %v4382_v31  ;;  %4407 = vmatprep.subr.bf16.mxu0 %v4406_v2  ;;  %v1306_v3 = vadd.f32 %v1305_v21, %v5440_v51  ;;  %v1563_v28 = vadd.f32 %v1562_v35, %v5442_v37  ;;  %v1307_v53 = vpop.f32.mrb[69].mxu1  ;;  %v1564_v58 = vpop.f32.mrb[69].mxu0  ;;  %v5796_v18 = vld [vmem:[#allocation2 + $0x48] sm:$0xff]  ;;  %v5798_v49 = vld [vmem:[#allocation2 + $0x50] sm:$0xff]  ;;  %6337 = vst [vmem:[#allocation29_spill] sm:$0xff] %v5800_v59  ;;  %v5808_v59 = vld [vmem:[#allocation2 + $0x60] sm:$0xff] }
 0x2b9   : > { %3828 = vmatmul.mubr.f32.gmra.mrb[94].mxu1 %v5518_v7  ;;  %3872 = vmatmul.mubr.f32.gmra.mrb[86].mxu0 %v5538_v54  ;;  %6336 = vst [vmem:[#allocation28_spill] sm:$0xff] %v5798_v49  ;;  %v1308_v60 = vadd.f32 %v1307_v53, %v5444_v40  ;;  %v1565_v34 = vadd.f32 %v1564_v58, %v5446_v42  ;;  %6338 = vst [vmem:[#allocation30_spill] sm:$0xff] %v5808_v59  ;;  %v5817_v53 = vld [vmem:[#allocation2 + $0x78] sm:$0xff]  ;;  %v6342_v58 = vld [vmem:[#allocation12_spill] sm:$0xff] }
 0x2ba   : > { %3874 = vmatprep.mubr.f32.mxu0 %v5546_v47  ;;  %3918 = vmatprep.mubr.f32.mxu1 %v5574_v22  ;;  %2777 = vst [vmem:[#allocation2 + $0x40] ss:$4 sm:$0xff] %v1306_v3  ;;  %2785 = vst [vmem:[#allocation2 + $0x42] ss:$4 sm:$0xff] %v1563_v28  ;;  %v5813_v3 = vld [vmem:[#allocation2 + $0x68] sm:$0xff]  ;;  %v5815_v28 = vld [vmem:[#allocation2 + $0x70] sm:$0xff] }
 0x2bb   : > { %2781 = vst [vmem:[#allocation2 + $0x41] ss:$4 sm:$0xff] %v1308_v60  ;;  %2789 = vst [vmem:[#allocation2 + $0x43] ss:$4 sm:$0xff] %v1565_v34  ;;  %v1311_v7 = vpop.f32.mrb[70].mxu1  ;;  %v1568_v54 = vpop.f32.mrb[70].mxu0  ;;  %v4386_v60 = vpack.c.bf16 %v6342_v58, %v5608_v16 }
 0x2bc   : > { %v1312_v57 = vadd.f32 %v1311_v7, %v5440_v51  ;;  %v1569_v45 = vadd.f32 %v1568_v54, %v5442_v37  ;;  %v1313_v21 = vpop.f32.mrb[71].mxu1  ;;  %v1570_v35 = vpop.f32.mrb[71].mxu0  ;;  %6339 = vst [vmem:[#allocation31_spill] sm:$0xff] %v5813_v3  ;;  %6340 = vst [vmem:[#allocation32_spill] sm:$0xff] %v5815_v28  ;;  %v6343_v34 = vld [vmem:[#allocation17_spill] sm:$0xff]  ;;  %v6344_v7 = vld [vmem:[#allocation18_spill] sm:$0xff] }
 0x2bd   : > { %3875 = vmatmul.mubr.f32.gmra.mrb[88].mxu0 %v5550_v55  ;;  %v1314_v47 = vadd.f32 %v1313_v21, %v5444_v40  ;;  %v1571_v22 = vadd.f32 %v1570_v35, %v5446_v42  ;;  %6341 = vst [vmem:[#allocation33_spill] sm:$0xff] %v5817_v53  ;;  %v4410_v54 = vpack.c.bf16 %v6344_v7, %v6343_v34  ;;  %v5824_v35 = vld [vmem:[#allocation2] sm:$0xff] }
 0x2be   : > { %3877 = vmatprep.mubr.f32.mxu0 %v5552_v56  ;;  %2778 = vst [vmem:[#allocation2 + $0x60] ss:$4 sm:$0xff] %v1312_v57  ;;  %2786 = vst [vmem:[#allocation2 + $0x62] ss:$4 sm:$0xff] %v1569_v45  ;;  %v6346_v59 = vld [vmem:[#allocation6_spill] sm:$0xff]  ;;  %v5829_v57 = vld [vmem:[#allocation2 + $0x8] sm:$0xff] }
 0x2bf   : > { %4385 = vmatpush3.bf16.xpose.msra.mxu1 %v4382_v31  ;;  %4409 = vmatpush3.bf16.xpose.msra.mxu0 %v4406_v2  ;;  %v1317_v55 = vpop.f32.mrb[72].mxu1  ;;  %v1574_v21 = vpop.f32.mrb[72].mxu0  ;;  %2782 = vst [vmem:[#allocation2 + $0x61] ss:$4 sm:$0xff] %v1314_v47  ;;  %2790 = vst [vmem:[#allocation2 + $0x63] ss:$4 sm:$0xff] %v1571_v22 }
 0x2c0   : > { %4387 = vmatprep.subr.bf16.mxu1 %v4386_v60  ;;  %4411 = vmatprep.subr.bf16.mxu0 %v4410_v54  ;;  %6345 = vst [vmem:[#allocation12_spill] sm:$0xff] %v5824_v35  ;;  %v1318_v56 = vadd.f32 %v1317_v55, %v5440_v51  ;;  %v1575_v53 = vadd.f32 %v1574_v21, %v5442_v37  ;;  %v1319_v28 = vpop.f32.mrb[73].mxu1  ;;  %v1576_v3 = vpop.f32.mrb[73].mxu0  ;;  %6347 = vst [vmem:[#allocation17_spill] sm:$0xff] %v5829_v57  ;;  %v5833_v45 = vld [vmem:[#allocation2 + $0x10] sm:$0xff]  ;;  %v5835_v47 = vld [vmem:[#allocation2 + $0x18] sm:$0xff] }
 0x2c1   : > { %3878 = vmatmul.mubr.f32.gmra.mrb[90].mxu0 %v6346_v59  ;;  %v1320_v31 = vadd.f32 %v1319_v28, %v5444_v40  ;;  %v1577_v2 = vadd.f32 %v1576_v3, %v5446_v42  ;;  %6348 = vst [vmem:[#allocation18_spill] sm:$0xff] %v5833_v45  ;;  %6349 = vst [vmem:[#allocation6_spill] sm:$0xff] %v5835_v47  ;;  %v6350_v22 = vld [vmem:[#allocation7_spill] sm:$0xff]  ;;  %v5840_v49 = vld [vmem:[#allocation2 + $0x20] sm:$0xff] }
 0x2c2   : > { %3880 = vmatprep.mubr.f32.mxu0 %v6350_v22  ;;  %2969 = vst [vmem:[#allocation2] ss:$4 sm:$0xff] %v1318_v56  ;;  %2977 = vst [vmem:[#allocation2 + $0x2] ss:$4 sm:$0xff] %v1575_v53  ;;  %v6352_v3 = vld [vmem:[#allocation8_spill] sm:$0xff]  ;;  %v5845_v56 = vld [vmem:[#allocation2 + $0x28] sm:$0xff] }
 0x2c3   : > { %v1323_v55 = vpop.f32.mrb[74].mxu1  ;;  %v1580_v21 = vpop.f32.mrb[74].mxu0  ;;  %2973 = vst [vmem:[#allocation2 + $0x1] ss:$4 sm:$0xff] %v1320_v31  ;;  %2981 = vst [vmem:[#allocation2 + $0x3] ss:$4 sm:$0xff] %v1577_v2 }
 0x2c4   : > { %v1324_v59 = vadd.f32 %v1323_v55, %v5440_v51  ;;  %v1581_v57 = vadd.f32 %v1580_v21, %v5442_v37  ;;  %v1325_v35 = vpop.f32.mrb[75].mxu1  ;;  %v1582_v28 = vpop.f32.mrb[75].mxu0  ;;  %6351 = vst [vmem:[#allocation7_spill] sm:$0xff] %v5840_v49  ;;  %6353 = vst [vmem:[#allocation8_spill] sm:$0xff] %v5845_v56  ;;  %v5847_v53 = vld [vmem:[#allocation2 + $0x30] sm:$0xff]  ;;  %v5849_v31 = vld [vmem:[#allocation2 + $0x38] sm:$0xff] }
 0x2c5   : > { %3881 = vmatmul.mubr.f32.gmra.mrb[92].mxu0 %v6352_v3  ;;  %v1326_v47 = vadd.f32 %v1325_v35, %v5444_v40  ;;  %v1583_v22 = vadd.f32 %v1582_v28, %v5446_v42  ;;  %6354 = vst [vmem:[#allocation34_spill] sm:$0xff] %v5847_v53  ;;  %6355 = vst [vmem:[#allocation35_spill] sm:$0xff] %v5849_v31  ;;  %v6356_v2 = vld [vmem:[#allocation13_spill] sm:$0xff]  ;;  %v6357_v55 = vld [vmem:[#allocation14_spill] sm:$0xff] }
 0x2c6   : > { %3883 = vmatprep.mubr.f32.mxu0 %v5568_v14  ;;  %v4390_v21 = vpack.c.bf16 %v6357_v55, %v6356_v2  ;;  %v6358_v45 = vld [vmem:[#allocation19_spill] sm:$0xff]  ;;  %2970 = vst [vmem:[#allocation2 + $0x20] ss:$4 sm:$0xff] %v1324_v59  ;;  %2978 = vst [vmem:[#allocation2 + $0x22] ss:$4 sm:$0xff] %v1581_v57  ;;  %v5858_v56 = vld [vmem:[#allocation2 + $0x40] sm:$0xff] }
 0x2c7   : > { %v4414_v49 = vpack.c.bf16 %v6358_v45, %v5658_v27  ;;  %4389 = vmatpush3.bf16.xpose.msra.mxu1 %v4386_v60  ;;  %4413 = vmatpush3.bf16.xpose.msra.mxu0 %v4410_v54  ;;  %v1329_v35 = vpop.f32.mrb[76].mxu1  ;;  %v1586_v28 = vpop.f32.mrb[76].mxu0  ;;  %2974 = vst [vmem:[#allocation2 + $0x21] ss:$4 sm:$0xff] %v1326_v47  ;;  %2982 = vst [vmem:[#allocation2 + $0x23] ss:$4 sm:$0xff] %v1583_v22 }
 0x2c8   : > { %4391 = vmatprep.subr.bf16.mxu1 %v4390_v21  ;;  %v1330_v3 = vadd.f32 %v1329_v35, %v5440_v51  ;;  %v1587_v14 = vadd.f32 %v1586_v28, %v5442_v37  ;;  %v1331_v31 = vpop.f32.mrb[77].mxu1  ;;  %v1588_v53 = vpop.f32.mrb[77].mxu0  ;;  %6359 = vst [vmem:[#allocation13_spill] sm:$0xff] %v5858_v56  ;;  %v5863_v54 = vld [vmem:[#allocation2 + $0x48] sm:$0xff]  ;;  %v5865_v47 = vld [vmem:[#allocation2 + $0x50] sm:$0xff]  ;;  %v5867_v59 = vld [vmem:[#allocation2 + $0x58] sm:$0xff] }
 0x2c9   : > { %4415 = vmatprep.subr.bf16.mxu0 %v4414_v49  ;;  %3884 = vmatmul.mubr.f32.gmra.mrb[94].mxu0 %v5570_v15  ;;  %v1332_v57 = vadd.f32 %v1331_v31, %v5444_v40  ;;  %v1589_v60 = vadd.f32 %v1588_v53, %v5446_v42  ;;  %6360 = vst [vmem:[#allocation14_spill] sm:$0xff] %v5863_v54  ;;  %6361 = vst [vmem:[#allocation19_spill] sm:$0xff] %v5865_v47  ;;  %v5872_v56 = vld [vmem:[#allocation2 + $0x60] sm:$0xff]  ;;  %v5876_v54 = vld [vmem:[#allocation2 + $0x68] sm:$0xff] }
 0x2ca   : > { %6362 = vst [vmem:[#allocation36_spill] sm:$0xff] %v5867_v59  ;;  %3974 = vmatprep.mubr.f32.mxu0 %v5630_v36  ;;  %2971 = vst [vmem:[#allocation2 + $0x40] ss:$4 sm:$0xff] %v1330_v3  ;;  %v5878_v36 = vld [vmem:[#allocation2 + $0x70] sm:$0xff]  ;;  %v5880_v3 = vld [vmem:[#allocation2 + $0x78] sm:$0xff] }
 0x2cb   : > { %2979 = vst [vmem:[#allocation2 + $0x42] ss:$4 sm:$0xff] %v1587_v14  ;;  %v1335_v22 = vpop.f32.mrb[78].mxu1  ;;  %v1592_v35 = vpop.f32.mrb[78].mxu0  ;;  %2975 = vst [vmem:[#allocation2 + $0x41] ss:$4 sm:$0xff] %v1332_v57 }
 0x2cc   : > { %2983 = vst [vmem:[#allocation2 + $0x43] ss:$4 sm:$0xff] %v1589_v60  ;;  %v1336_v15 = vadd.f32 %v1335_v22, %v5440_v51  ;;  %v1593_v31 = vadd.f32 %v1592_v35, %v5442_v37  ;;  %v1337_v28 = vpop.f32.mrb[79].mxu1  ;;  %v1594_v53 = vpop.f32.mrb[79].mxu0  ;;  %v6363_v14 = vld [vmem:[#allocation15_spill] sm:$0xff]  ;;  %v6364_v57 = vld [vmem:[#allocation16_spill] sm:$0xff] }
 0x2cd   : > { %v1338_v47 = vadd.f32 %v1337_v28, %v5444_v40  ;;  %v1595_v59 = vadd.f32 %v1594_v53, %v5446_v42  ;;  %v4394_v60 = vpack.c.bf16 %v6364_v57, %v6363_v14  ;;  %v6365_v51 = vld [vmem:[#allocation20_spill] sm:$0xff]  ;;  %v4422_v40 = vpack.c.bf16 %v5677_v46, %v5672_v30  ;;  %v6366_v22 = vld [vmem:[#allocation9_spill] sm:$0xff] }
 0x2ce   : > { %v4418_v37 = vpack.c.bf16 %v5666_v11, %v6365_v51  ;;  %2972 = vst [vmem:[#allocation2 + $0x60] ss:$4 sm:$0xff] %v1336_v15  ;;  %2980 = vst [vmem:[#allocation2 + $0x62] ss:$4 sm:$0xff] %v1593_v31  ;;  %v4430_v42 = vpack.c.bf16 %v5693_v32, %v5688_v23  ;;  %v6367_v35 = vld [vmem:[#allocation21_spill] sm:$0xff]  ;;  %v6370_v15 = vld [vmem:[#allocation11_spill] sm:$0xff]  ;;  %v4462_v31 = vpack.c.bf16 %v5760_v13, %v5754_v38 }
 0x2cf   : > { %4393 = vmatpush3.bf16.xpose.msra.mxu1 %v4390_v21  ;;  %4417 = vmatpush3.bf16.xpose.msra.mxu0 %v4414_v49  ;;  %2976 = vst [vmem:[#allocation2 + $0x61] ss:$4 sm:$0xff] %v1338_v47  ;;  %2984 = vst [vmem:[#allocation2 + $0x63] ss:$4 sm:$0xff] %v1595_v59  ;;  %v4426_v21 = vpack.c.bf16 %v6367_v35, %v5681_v29  ;;  %v6368_v49 = vld [vmem:[#allocation10_spill] sm:$0xff]  ;;  %v4438_v28 = vpack.c.bf16 %v5709_v24, %v5702_v48 }
 0x2d0   : > { %4395 = vmatprep.subr.bf16.mxu1 %v4394_v60  ;;  %4419 = vmatprep.subr.bf16.mxu0 %v4418_v37  ;;  %v6369_v47 = vld [vmem:[#allocation22_spill] sm:$0xff]  ;;  %v4466_v53 = vpack.c.bf16 %v5764_v50, %v5762_v0 }
 0x2d1   : > { %v4434_v59 = vpack.c.bf16 %v6369_v47, %v5697_v10 }
 0x2d7   : > { %4397 = vmatpush3.bf16.xpose.msra.mxu1 %v4394_v60  ;;  %4421 = vmatpush3.bf16.xpose.msra.mxu0 %v4418_v37  ;;  %v5964_v37 = vld [vmem:[#allocation2 + $0x8] sm:$0xff] }
 0x2d8   : > { %4423 = vmatprep.subr.bf16.mxu0 %v4422_v40  ;;  %4431 = vmatprep.subr.bf16.mxu1 %v4430_v42 }
 0x2de   : > { %3919 = vmatmul.mubr.f32.vlgmr.msra.gmra.mrb[96].mxu1 %v6366_v22  ;;  %v5976_v22 = vld [vmem:[#allocation2 + $0x18] sm:$0xff] }
 0x2df   : > { %3921 = vmatprep.mubr.f32.mxu1 %v6368_v49  ;;  %4425 = vmatpush3.bf16.xpose.msra.mxu0 %v4422_v40  ;;  %v6387_v40 = vld [vmem:[#allocation8_spill] sm:$0xff] }
 0x2e0   : > { %4433 = vmatpush3.bf16.xpose.msra.mxu1 %v4430_v42  ;;  %4427 = vmatprep.subr.bf16.mxu0 %v4426_v21 }
 0x2e1   : > { %4435 = vmatprep.subr.bf16.mxu1 %v4434_v59 }
 0x2e2   : > { %3922 = vmatmul.mubr.f32.gmra.mrb[98].mxu1 %v6370_v15  ;;  %v6030_v15 = vld [vmem:[#allocation2 + $0x50] sm:$0xff] }
 0x2e3   : > { %3924 = vmatprep.mubr.f32.mxu1 %v5586_v43  ;;  %v6371_v43 = vld [vmem:[#allocation23_spill] sm:$0xff] }
 0x2e6   : > { %3925 = vmatmul.mubr.f32.gmra.mrb[100].mxu1 %v5594_v1  ;;  %v6372_v1 = vld [vmem:[#allocation24_spill] sm:$0xff] }
 0x2e7   : > { %3927 = vmatprep.mubr.f32.mxu1 %v5596_v6  ;;  %4429 = vmatpush3.bf16.xpose.msra.mxu0 %v4426_v21  ;;  %v4442_v6 = vpack.c.bf16 %v6372_v1, %v6371_v43 }
 0x2e8   : > { %4437 = vmatpush3.bf16.xpose.msra.mxu1 %v4434_v59  ;;  %4463 = vmatprep.subr.bf16.mxu0 %v4462_v31 }
 0x2e9   : > { %4439 = vmatprep.subr.bf16.mxu1 %v4438_v28 }
 0x2ea   : > { %3928 = vmatmul.mubr.f32.gmra.mrb[102].mxu1 %v5598_v9  ;;  %v6373_v9 = vld [vmem:[#allocation25_spill] sm:$0xff] }
 0x2eb   : > { %3930 = vmatprep.mubr.f32.mxu1 %v5602_v19  ;;  %v4446_v19 = vpack.c.bf16 %v6373_v9, %v5720_v4 }
 0x2ee   : > { %3931 = vmatmul.mubr.f32.gmra.mrb[104].mxu1 %v5606_v39  ;;  %3975 = vmatmul.mubr.f32.vlgmr.msra.gmra.mrb[96].mxu0 %v5634_v17  ;;  %v4470_v39 = vpack.c.bf16 %v5776_v61, %v5770_v52 }
 0x2ef   : > { %3933 = vmatprep.mubr.f32.mxu1 %v5608_v16  ;;  %3977 = vmatprep.mubr.f32.mxu0 %v5636_v8  ;;  %v6374_v16 = vld [vmem:[#allocation26_spill] sm:$0xff]  ;;  %v4474_v8 = vpack.c.bf16 %v5780_v62, %v5778_v26 }
 0x2f0   : > { %4441 = vmatpush3.bf16.xpose.msra.mxu1 %v4438_v28  ;;  %4465 = vmatpush3.bf16.xpose.msra.mxu0 %v4462_v31  ;;  %v4450_v17 = vpack.c.bf16 %v6374_v16, %v5729_v5  ;;  %v6032_v31 = vld [vmem:[#allocation2 + $0x58] sm:$0xff]  ;;  %v4522_v28 = vpack.c.bf16 %v5880_v3, %v5878_v36 }
 0x2f1   : > { %4443 = vmatprep.subr.bf16.mxu1 %v4442_v6  ;;  %4467 = vmatprep.subr.bf16.mxu0 %v4466_v53 }
 0x2f2   : > { %3934 = vmatmul.mubr.f32.gmra.mrb[106].mxu1 %v6342_v58  ;;  %3978 = vmatmul.mubr.f32.gmra.mrb[98].mxu0 %v5638_v63  ;;  %v4478_v63 = vpack.c.bf16 %v5796_v18, %v5790_v41 }
 0x2f3   : > { %3936 = vmatprep.mubr.f32.mxu1 %v6356_v2  ;;  %3980 = vmatprep.mubr.f32.mxu0 %v5642_v25  ;;  %v6375_v25 = vld [vmem:[#allocation27_spill] sm:$0xff]  ;;  %v6383_v2 = vld [vmem:[#allocation33_spill] sm:$0xff] }
 0x2f6   : > { %3937 = vmatmul.mubr.f32.gmra.mrb[108].mxu1 %v6357_v55  ;;  %3981 = vmatmul.mubr.f32.gmra.mrb[100].mxu0 %v5650_v44  ;;  %v4458_v44 = vpack.c.bf16 %v6375_v25, %v5744_v12 }
 0x2f7   : > { %3939 = vmatprep.mubr.f32.mxu1 %v6363_v14  ;;  %3983 = vmatprep.mubr.f32.mxu0 %v6343_v34  ;;  %v6380_v34 = vld [vmem:[#allocation12_spill] sm:$0xff]  ;;  %v6384_v14 = vld [vmem:[#allocation18_spill] sm:$0xff] }
 0x2f8   : > { %4445 = vmatpush3.bf16.xpose.msra.mxu1 %v4442_v6  ;;  %4469 = vmatpush3.bf16.xpose.msra.mxu0 %v4466_v53  ;;  %v6040_v6 = vld [vmem:[#allocation2 + $0x68] sm:$0xff] }
 0x2f9   : > { %4447 = vmatprep.subr.bf16.mxu1 %v4446_v19  ;;  %4471 = vmatprep.subr.bf16.mxu0 %v4470_v39 }
 0x2fa   : > { %3940 = vmatmul.mubr.f32.gmra.mrb[110].mxu1 %v6364_v57  ;;  %3984 = vmatmul.mubr.f32.gmra.mrb[102].mxu0 %v6344_v7  ;;  %v6381_v7 = vld [vmem:[#allocation17_spill] sm:$0xff]  ;;  %v6385_v57 = vld [vmem:[#allocation6_spill] sm:$0xff] }
 0x2fb   : > { %3986 = vmatprep.mubr.f32.mxu0 %v5658_v27  ;;  %4030 = vmatprep.mubr.f32.mxu1 %v5688_v23  ;;  %v4454_v27 = vpack.c.bf16 %v5740_v33, %v5736_v20  ;;  %v6379_v23 = vld [vmem:[#allocation31_spill] sm:$0xff]  ;;  %v4498_v60 = vpack.c.bf16 %v6385_v57, %v6384_v14 }
 0x2fe   : > { %3987 = vmatmul.mubr.f32.gmra.mrb[104].mxu0 %v6358_v45  ;;  %v4494_v45 = vpack.c.bf16 %v6381_v7, %v6380_v34 }
 0x2ff   : > { %3989 = vmatprep.mubr.f32.mxu0 %v6365_v51  ;;  %v5962_v51 = vld [vmem:[#allocation2] sm:$0xff] }
 0x300   : > { %4449 = vmatpush3.bf16.xpose.msra.mxu1 %v4446_v19  ;;  %4473 = vmatpush3.bf16.xpose.msra.mxu0 %v4470_v39  ;;  %v6046_v19 = vld [vmem:[#allocation2 + $0x78] sm:$0xff] }
 0x301   : > { %4451 = vmatprep.subr.bf16.mxu1 %v4450_v17  ;;  %4475 = vmatprep.subr.bf16.mxu0 %v4474_v8 }
 0x302   : > { %3990 = vmatmul.mubr.f32.gmra.mrb[106].mxu0 %v5666_v11  ;;  %v6376_v11 = vld [vmem:[#allocation28_spill] sm:$0xff] }
 0x303   : > { %3992 = vmatprep.mubr.f32.mxu0 %v5672_v30  ;;  %v6377_v30 = vld [vmem:[#allocation29_spill] sm:$0xff] }
 0x306   : > { %3993 = vmatmul.mubr.f32.gmra.mrb[108].mxu0 %v5677_v46  ;;  %v4482_v46 = vpack.c.bf16 %v6377_v30, %v6376_v11 }
 0x307   : > { %3995 = vmatprep.mubr.f32.mxu0 %v5681_v29  ;;  %v6378_v29 = vld [vmem:[#allocation30_spill] sm:$0xff] }
 0x308   : > { %4453 = vmatpush3.bf16.xpose.msra.mxu1 %v4450_v17  ;;  %4477 = vmatpush3.bf16.xpose.msra.mxu0 %v4474_v8  ;;  %v4486_v58 = vpack.c.bf16 %v6379_v23, %v6378_v29 }
 0x309   : > { %4455 = vmatprep.subr.bf16.mxu1 %v4454_v27  ;;  %4479 = vmatprep.subr.bf16.mxu0 %v4478_v63 }
 0x30a   : > { %3996 = vmatmul.mubr.f32.gmra.mrb[110].mxu0 %v6367_v35  ;;  %v6389_v35 = vld [vmem:[#allocation35_spill] sm:$0xff] }
 0x30b   : > { %4086 = vmatprep.mubr.f32.mxu0 %v5754_v38  ;;  %v6382_v38 = vld [vmem:[#allocation32_spill] sm:$0xff] }
 0x30c   : > { %v4490_v55 = vpack.c.bf16 %v6383_v2, %v6382_v38 }
 0x310   : > { %4457 = vmatpush3.bf16.xpose.msra.mxu1 %v4454_v27  ;;  %4481 = vmatpush3.bf16.xpose.msra.mxu0 %v4478_v63 }
 0x311   : > { %4459 = vmatprep.subr.bf16.mxu1 %v4458_v44  ;;  %4483 = vmatprep.subr.bf16.mxu0 %v4482_v46 }
 0x318   : > { %4461 = vmatpush3.bf16.xpose.msra.mxu1 %v4458_v44  ;;  %4485 = vmatpush3.bf16.xpose.msra.mxu0 %v4482_v46 }
 0x319   : > { %4487 = vmatprep.subr.bf16.mxu0 %v4486_v58  ;;  %4495 = vmatprep.subr.bf16.mxu1 %v4494_v45 }
 0x31f   : > { %4031 = vmatmul.mubr.f32.vlgmr.msra.gmra.mrb[112].mxu1 %v5693_v32  ;;  %v4526_v32 = vpack.c.bf16 %v5964_v37, %v5962_v51 }
 0x320   : > { %4033 = vmatprep.mubr.f32.mxu1 %v5697_v10  ;;  %4489 = vmatpush3.bf16.xpose.msra.mxu0 %v4486_v58  ;;  %v6386_v10 = vld [vmem:[#allocation7_spill] sm:$0xff] }
 0x321   : > { %4497 = vmatpush3.bf16.xpose.msra.mxu1 %v4494_v45  ;;  %4491 = vmatprep.subr.bf16.mxu0 %v4490_v55  ;;  %v4502_v42 = vpack.c.bf16 %v6387_v40, %v6386_v10 }
 0x322   : > { %4499 = vmatprep.subr.bf16.mxu1 %v4498_v60 }
 0x323   : > { %4034 = vmatmul.mubr.f32.gmra.mrb[114].mxu1 %v6369_v47 }
 0x324   : > { %4036 = vmatprep.mubr.f32.mxu1 %v5702_v48  ;;  %v5974_v48 = vld [vmem:[#allocation2 + $0x10] sm:$0xff] }
 0x325   : > { %v4530_v49 = vpack.c.bf16 %v5976_v22, %v5974_v48 }
 0x327   : > { %4037 = vmatmul.mubr.f32.gmra.mrb[116].mxu1 %v5709_v24  ;;  %v6388_v24 = vld [vmem:[#allocation34_spill] sm:$0xff] }
 0x328   : > { %4039 = vmatprep.mubr.f32.mxu1 %v6371_v43  ;;  %4493 = vmatpush3.bf16.xpose.msra.mxu0 %v4490_v55  ;;  %v4506_v21 = vpack.c.bf16 %v6389_v35, %v6388_v24  ;;  %v4546_v43 = vpack.c.bf16 %v6032_v31, %v6030_v15 }
 0x329   : > { %4501 = vmatpush3.bf16.xpose.msra.mxu1 %v4498_v60  ;;  %4527 = vmatprep.subr.bf16.mxu0 %v4526_v32 }
 0x32a   : > { %4503 = vmatprep.subr.bf16.mxu1 %v4502_v42 }
 0x32b   : > { %4040 = vmatmul.mubr.f32.gmra.mrb[118].mxu1 %v6372_v1  ;;  %v6038_v1 = vld [vmem:[#allocation2 + $0x60] sm:$0xff] }
 0x32c   : > { %4042 = vmatprep.mubr.f32.mxu1 %v5720_v4  ;;  %v5990_v4 = vld [vmem:[#allocation2 + $0x20] sm:$0xff]  ;;  %v4550_v53 = vpack.c.bf16 %v6040_v6, %v6038_v1 }
 0x32f   : > { %4043 = vmatmul.mubr.f32.gmra.mrb[120].mxu1 %v6373_v9  ;;  %4087 = vmatmul.mubr.f32.vlgmr.msra.gmra.mrb[112].mxu0 %v5760_v13  ;;  %v6390_v13 = vld [vmem:[#allocation13_spill] sm:$0xff]  ;;  %v6044_v9 = vld [vmem:[#allocation2 + $0x70] sm:$0xff] }
 0x330   : > { %4045 = vmatprep.mubr.f32.mxu1 %v5729_v5  ;;  %4089 = vmatprep.mubr.f32.mxu0 %v5762_v0  ;;  %v5992_v5 = vld [vmem:[#allocation2 + $0x28] sm:$0xff]  ;;  %v6391_v0 = vld [vmem:[#allocation14_spill] sm:$0xff]  ;;  %v4554_v39 = vpack.c.bf16 %v6046_v19, %v6044_v9 }
 0x331   : > { %4505 = vmatpush3.bf16.xpose.msra.mxu1 %v4502_v42  ;;  %4529 = vmatpush3.bf16.xpose.msra.mxu0 %v4526_v32  ;;  %v4510_v47 = vpack.c.bf16 %v6391_v0, %v6390_v13 }
 0x332   : > { %4507 = vmatprep.subr.bf16.mxu1 %v4506_v21  ;;  %4531 = vmatprep.subr.bf16.mxu0 %v4530_v49 }
 0x333   : > { %4046 = vmatmul.mubr.f32.gmra.mrb[122].mxu1 %v6374_v16  ;;  %4090 = vmatmul.mubr.f32.gmra.mrb[114].mxu0 %v5764_v50  ;;  %v6392_v50 = vld [vmem:[#allocation19_spill] sm:$0xff] }
 0x334   : > { %4048 = vmatprep.mubr.f32.mxu1 %v5736_v20  ;;  %4092 = vmatprep.mubr.f32.mxu0 %v5770_v52  ;;  %v4534_v20 = vpack.c.bf16 %v5992_v5, %v5990_v4  ;;  %v6393_v52 = vld [vmem:[#allocation36_spill] sm:$0xff] }
 0x337   : > { %4049 = vmatmul.mubr.f32.gmra.mrb[124].mxu1 %v5740_v33  ;;  %4093 = vmatmul.mubr.f32.gmra.mrb[116].mxu0 %v5776_v61  ;;  %v6006_v33 = vld [vmem:[#allocation2 + $0x30] sm:$0xff]  ;;  %v4514_v61 = vpack.c.bf16 %v6393_v52, %v6392_v50 }
 0x338   : > { %4051 = vmatprep.mubr.f32.mxu1 %v5744_v12  ;;  %4095 = vmatprep.mubr.f32.mxu0 %v5778_v26  ;;  %v6008_v12 = vld [vmem:[#allocation2 + $0x38] sm:$0xff] }
 0x339   : > { %4509 = vmatpush3.bf16.xpose.msra.mxu1 %v4506_v21  ;;  %4533 = vmatpush3.bf16.xpose.msra.mxu0 %v4530_v49  ;;  %v4538_v26 = vpack.c.bf16 %v6008_v12, %v6006_v33 }
 0x33a   : > { %4511 = vmatprep.subr.bf16.mxu1 %v4510_v47  ;;  %4535 = vmatprep.subr.bf16.mxu0 %v4534_v20 }
 0x33b   : > { %4052 = vmatmul.mubr.f32.gmra.mrb[126].mxu1 %v6375_v25  ;;  %4096 = vmatmul.mubr.f32.gmra.mrb[118].mxu0 %v5780_v62  ;;  %v6018_v62 = vld [vmem:[#allocation2 + $0x40] sm:$0xff] }
 0x33c   : > { %4098 = vmatprep.mubr.f32.mxu0 %v5790_v41  ;;  %4142 = vmatprep.mubr.f32.mxu1 %v6380_v34  ;;  %v6020_v41 = vld [vmem:[#allocation2 + $0x48] sm:$0xff] }
 0x33d   : > { %v4542_v59 = vpack.c.bf16 %v6020_v41, %v6018_v62 }
 0x33f   : > { %4099 = vmatmul.mubr.f32.gmra.mrb[120].mxu0 %v5796_v18  ;;  %v4518_v18 = vpack.c.bf16 %v5876_v54, %v5872_v56 }
 0x340   : > { %4101 = vmatprep.mubr.f32.mxu0 %v6376_v11 }
 0x341   : > { %4513 = vmatpush3.bf16.xpose.msra.mxu1 %v4510_v47  ;;  %4537 = vmatpush3.bf16.xpose.msra.mxu0 %v4534_v20 }
 0x342   : > { %4515 = vmatprep.subr.bf16.mxu1 %v4514_v61  ;;  %4539 = vmatprep.subr.bf16.mxu0 %v4538_v26 }
 0x343   : > { %4102 = vmatmul.mubr.f32.gmra.mrb[122].mxu0 %v6377_v30 }
 0x344   : > { %4104 = vmatprep.mubr.f32.mxu0 %v6378_v29 }
 0x347   : > { %4105 = vmatmul.mubr.f32.gmra.mrb[124].mxu0 %v6379_v23 }
 0x348   : > { %4107 = vmatprep.mubr.f32.mxu0 %v6382_v38 }
 0x349   : > { %4517 = vmatpush3.bf16.xpose.msra.mxu1 %v4514_v61  ;;  %4541 = vmatpush3.bf16.xpose.msra.mxu0 %v4538_v26 }
 0x34a   : > { %4519 = vmatprep.subr.bf16.mxu1 %v4518_v18  ;;  %4543 = vmatprep.subr.bf16.mxu0 %v4542_v59 }
 0x34b   : > { %4108 = vmatmul.mubr.f32.gmra.mrb[126].mxu0 %v6383_v2 }
 0x34c   : > { %4198 = vmatprep.mubr.f32.mxu0 %v5962_v51 }
 0x351   : > { %4521 = vmatpush3.bf16.xpose.msra.mxu1 %v4518_v18  ;;  %4545 = vmatpush3.bf16.xpose.msra.mxu0 %v4542_v59 }
 0x352   : > { %4523 = vmatprep.subr.bf16.mxu1 %v4522_v28  ;;  %4547 = vmatprep.subr.bf16.mxu0 %v4546_v43 }
 0x359   : > { %4525 = vmatpush3.bf16.xpose.msra.mxu1 %v4522_v28  ;;  %4549 = vmatpush3.bf16.xpose.msra.mxu0 %v4546_v43 }
 0x35a   : > { %4551 = vmatprep.subr.bf16.mxu0 %v4550_v53 }
 0x360   : > { %4143 = vmatmul.mubr.f32.vlgmr.msra.gmra.mrb[128].mxu1 %v6381_v7 }
 0x361   : > { %4145 = vmatprep.mubr.f32.mxu1 %v6384_v14  ;;  %4553 = vmatpush3.bf16.xpose.msra.mxu0 %v4550_v53 }
 0x362   : > { %4555 = vmatprep.subr.bf16.mxu0 %v4554_v39 }
 0x364   : > { %4146 = vmatmul.mubr.f32.gmra.mrb[130].mxu1 %v6385_v57 }
 0x365   : > { %4148 = vmatprep.mubr.f32.mxu1 %v6386_v10 }
 0x368   : > { %4149 = vmatmul.mubr.f32.gmra.mrb[132].mxu1 %v6387_v40 }
 0x369   : > { %4151 = vmatprep.mubr.f32.mxu1 %v6388_v24  ;;  %4557 = vmatpush3.bf16.xpose.msra.mxu0 %v4554_v39 }
 0x36c   : > { %4152 = vmatmul.mubr.f32.gmra.mrb[134].mxu1 %v6389_v35 }
 0x36d   : > { %4154 = vmatprep.mubr.f32.mxu1 %v6390_v13 }
 0x370   : > { %4155 = vmatmul.mubr.f32.gmra.mrb[136].mxu1 %v6391_v0  ;;  %4199 = vmatmul.mubr.f32.vlgmr.msra.gmra.mrb[128].mxu0 %v5964_v37  ;;  %v3808_v16 = vpop.f32.mrb[80].mxu1 }
 0x371   : > { %4157 = vmatprep.mubr.f32.mxu1 %v6392_v50  ;;  %4201 = vmatprep.mubr.f32.mxu0 %v5974_v48  ;;  %1790 = vst [vmem:[%s6065_s26 + $0x8] sm:$0xff] %v3808_v16  ;;  %v1710_v17 = vpop.f32.mrb[81].mxu1 }
 0x372   : > { %1789 = vst [vmem:[%s6065_s26] sm:$0xff] %v1710_v17 }
 0x374   : > { %4158 = vmatmul.mubr.f32.gmra.mrb[138].mxu1 %v6393_v52  ;;  %4202 = vmatmul.mubr.f32.gmra.mrb[130].mxu0 %v5976_v22  ;;  %v3811_v8 = vpop.f32.mrb[82].mxu1 }
 0x375   : > { %4160 = vmatprep.mubr.f32.mxu1 %v5872_v56  ;;  %4204 = vmatprep.mubr.f32.mxu0 %v5990_v4  ;;  %1792 = vst [vmem:[%s6065_s26 + $0x18] sm:$0xff] %v3811_v8  ;;  %v1720_v27 = vpop.f32.mrb[83].mxu1 }
 0x376   : > { %1791 = vst [vmem:[%s6065_s26 + $0x10] sm:$0xff] %v1720_v27 }
 0x378   : > { %4161 = vmatmul.mubr.f32.gmra.mrb[140].mxu1 %v5876_v54  ;;  %4205 = vmatmul.mubr.f32.gmra.mrb[132].mxu0 %v5992_v5  ;;  %v3814_v63 = vpop.f32.mrb[84].mxu1 }
 0x379   : > { %4163 = vmatprep.mubr.f32.mxu1 %v5878_v36  ;;  %4207 = vmatprep.mubr.f32.mxu0 %v6006_v33  ;;  %1794 = vst [vmem:[%s6065_s26 + $0x28] sm:$0xff] %v3814_v63  ;;  %v1730_v56 = vpop.f32.mrb[85].mxu1 }
 0x37a   : > { %1793 = vst [vmem:[%s6065_s26 + $0x20] sm:$0xff] %v1730_v56 }
 0x37c   : > { %4164 = vmatmul.mubr.f32.gmra.mrb[142].mxu1 %v5880_v3  ;;  %4208 = vmatmul.mubr.f32.gmra.mrb[134].mxu0 %v6008_v12  ;;  %v3817_v25 = vpop.f32.mrb[86].mxu1 }
 0x37d   : > { %4210 = vmatprep.mubr.f32.mxu0 %v6018_v62  ;;  %1796 = vst [vmem:[%s6065_s26 + $0x38] sm:$0xff] %v3817_v25  ;;  %v1740_v54 = vpop.f32.mrb[87].mxu1 }
 0x37e   : > { %1795 = vst [vmem:[%s6065_s26 + $0x30] sm:$0xff] %v1740_v54 }
 0x380   : > { %4211 = vmatmul.mubr.f32.gmra.mrb[136].mxu0 %v6020_v41  ;;  %v3820_v36 = vpop.f32.mrb[88].mxu1  ;;  %v3864_v44 = vpop.f32.mrb[80].mxu0 }
 0x381   : > { %4213 = vmatprep.mubr.f32.mxu0 %v6030_v15  ;;  %1798 = vst [vmem:[%s6065_s26 + $0x48] sm:$0xff] %v3820_v36  ;;  %3295 = vst [vmem:[%s6065_s26 + $0x88] sm:$0xff] %v3864_v44  ;;  %v1750_v3 = vpop.f32.mrb[89].mxu1  ;;  %v1903_v11 = vpop.f32.mrb[81].mxu0 }
 0x382   : > { %1797 = vst [vmem:[%s6065_s26 + $0x40] sm:$0xff] %v1750_v3  ;;  %3294 = vst [vmem:[%s6065_s26 + $0x80] sm:$0xff] %v1903_v11 }
 0x384   : > { %4214 = vmatmul.mubr.f32.gmra.mrb[138].mxu0 %v6032_v31  ;;  %v3823_v30 = vpop.f32.mrb[90].mxu1  ;;  %v3867_v46 = vpop.f32.mrb[82].mxu0 }
 0x385   : > { %4216 = vmatprep.mubr.f32.mxu0 %v6038_v1  ;;  %1800 = vst [vmem:[%s6065_s26 + $0x58] sm:$0xff] %v3823_v30  ;;  %3297 = vst [vmem:[%s6065_s26 + $0x98] sm:$0xff] %v3867_v46  ;;  %v1760_v29 = vpop.f32.mrb[91].mxu1  ;;  %v1913_v23 = vpop.f32.mrb[83].mxu0 }
 0x386   : > { %1799 = vst [vmem:[%s6065_s26 + $0x50] sm:$0xff] %v1760_v29  ;;  %3296 = vst [vmem:[%s6065_s26 + $0x90] sm:$0xff] %v1913_v23 }
 0x388   : > { %4217 = vmatmul.mubr.f32.gmra.mrb[140].mxu0 %v6040_v6  ;;  %v3826_v58 = vpop.f32.mrb[92].mxu1  ;;  %v3870_v34 = vpop.f32.mrb[84].mxu0 }
 0x389   : > { %4219 = vmatprep.mubr.f32.mxu0 %v6044_v9  ;;  %1802 = vst [vmem:[%s6065_s26 + $0x68] sm:$0xff] %v3826_v58  ;;  %3299 = vst [vmem:[%s6065_s26 + $0xa8] sm:$0xff] %v3870_v34  ;;  %v1770_v7 = vpop.f32.mrb[93].mxu1  ;;  %v1923_v45 = vpop.f32.mrb[85].mxu0 }
 0x38a   : > { %1801 = vst [vmem:[%s6065_s26 + $0x60] sm:$0xff] %v1770_v7  ;;  %3298 = vst [vmem:[%s6065_s26 + $0xa0] sm:$0xff] %v1923_v45 }
 0x38c   : > { %4220 = vmatmul.mubr.f32.gmra.mrb[142].mxu0 %v6046_v19  ;;  %v3829_v38 = vpop.f32.mrb[94].mxu1  ;;  %v3873_v2 = vpop.f32.mrb[86].mxu0 }
 0x38d   : > { %1804 = vst [vmem:[%s6065_s26 + $0x78] sm:$0xff] %v3829_v38  ;;  %3301 = vst [vmem:[%s6065_s26 + $0xb8] sm:$0xff] %v3873_v2  ;;  %v1780_v55 = vpop.f32.mrb[95].mxu1  ;;  %v1933_v14 = vpop.f32.mrb[87].mxu0 }
 0x38e   : > { %1803 = vst [vmem:[%s6065_s26 + $0x70] sm:$0xff] %v1780_v55  ;;  %3300 = vst [vmem:[%s6065_s26 + $0xb0] sm:$0xff] %v1933_v14 }
 0x390   : > { %v3876_v57 = vpop.f32.mrb[88].mxu0 }
 0x391   : > { %3303 = vst [vmem:[%s6065_s26 + $0xc8] sm:$0xff] %v3876_v57  ;;  %v1943_v60 = vpop.f32.mrb[89].mxu0 }
 0x392   : > { %3302 = vst [vmem:[%s6065_s26 + $0xc0] sm:$0xff] %v1943_v60 }
 0x394   : > { %v3879_v51 = vpop.f32.mrb[90].mxu0 }
 0x395   : > { %3305 = vst [vmem:[%s6065_s26 + $0xd8] sm:$0xff] %v3879_v51  ;;  %v1953_v37 = vpop.f32.mrb[91].mxu0 }
 0x396   : > { %3304 = vst [vmem:[%s6065_s26 + $0xd0] sm:$0xff] %v1953_v37 }
 0x398   : > { %v3882_v32 = vpop.f32.mrb[92].mxu0 }
 0x399   : > { %3307 = vst [vmem:[%s6065_s26 + $0xe8] sm:$0xff] %v3882_v32  ;;  %v1963_v10 = vpop.f32.mrb[93].mxu0 }
 0x39a   : > { %3306 = vst [vmem:[%s6065_s26 + $0xe0] sm:$0xff] %v1963_v10 }
 0x39c   : > { %v3885_v40 = vpop.f32.mrb[94].mxu0 }
 0x39d   : > { %3309 = vst [vmem:[%s6065_s26 + $0xf8] sm:$0xff] %v3885_v40  ;;  %v1973_v42 = vpop.f32.mrb[95].mxu0 }
 0x39e   : > { %3308 = vst [vmem:[%s6065_s26 + $0xf0] sm:$0xff] %v1973_v42 }
 0x3b1   : > { %v3920_v48 = vpop.f32.mrb[96].mxu1 }
 0x3b2   : > { %3311 = vst [vmem:[%s6065_s26 + $0x108] sm:$0xff] %v3920_v48  ;;  %v2097_v22 = vpop.f32.mrb[97].mxu1 }
 0x3b3   : > { %3310 = vst [vmem:[%s6065_s26 + $0x100] sm:$0xff] %v2097_v22 }
 0x3b5   : > { %v3923_v24 = vpop.f32.mrb[98].mxu1 }
 0x3b6   : > { %3313 = vst [vmem:[%s6065_s26 + $0x118] sm:$0xff] %v3923_v24  ;;  %v2107_v35 = vpop.f32.mrb[99].mxu1 }
 0x3b7   : > { %3312 = vst [vmem:[%s6065_s26 + $0x110] sm:$0xff] %v2107_v35 }
 0x3b9   : > { %v3926_v21 = vpop.f32.mrb[100].mxu1 }
 0x3ba   : > { %3315 = vst [vmem:[%s6065_s26 + $0x128] sm:$0xff] %v3926_v21  ;;  %v2117_v49 = vpop.f32.mrb[101].mxu1 }
 0x3bb   : > { %3314 = vst [vmem:[%s6065_s26 + $0x120] sm:$0xff] %v2117_v49 }
 0x3bd   : > { %v3929_v4 = vpop.f32.mrb[102].mxu1 }
 0x3be   : > { %3317 = vst [vmem:[%s6065_s26 + $0x138] sm:$0xff] %v3929_v4  ;;  %v2127_v5 = vpop.f32.mrb[103].mxu1 }
 0x3bf   : > { %3316 = vst [vmem:[%s6065_s26 + $0x130] sm:$0xff] %v2127_v5 }
 0x3c1   : > { %v3932_v13 = vpop.f32.mrb[104].mxu1  ;;  %v3976_v0 = vpop.f32.mrb[96].mxu0 }
 0x3c2   : > { %3319 = vst [vmem:[%s6065_s26 + $0x148] sm:$0xff] %v3932_v13  ;;  %3327 = vst [vmem:[%s6065_s26 + $0x188] sm:$0xff] %v3976_v0  ;;  %v2137_v47 = vpop.f32.mrb[105].mxu1  ;;  %v2291_v20 = vpop.f32.mrb[97].mxu0 }
 0x3c3   : > { %3318 = vst [vmem:[%s6065_s26 + $0x140] sm:$0xff] %v2137_v47  ;;  %3326 = vst [vmem:[%s6065_s26 + $0x180] sm:$0xff] %v2291_v20 }
 0x3c5   : > { %v3935_v33 = vpop.f32.mrb[106].mxu1  ;;  %v3979_v12 = vpop.f32.mrb[98].mxu0 }
 0x3c6   : > { %3321 = vst [vmem:[%s6065_s26 + $0x158] sm:$0xff] %v3935_v33  ;;  %3329 = vst [vmem:[%s6065_s26 + $0x198] sm:$0xff] %v3979_v12  ;;  %v2147_v50 = vpop.f32.mrb[107].mxu1  ;;  %v2301_v52 = vpop.f32.mrb[99].mxu0 }
 0x3c7   : > { %3320 = vst [vmem:[%s6065_s26 + $0x150] sm:$0xff] %v2147_v50  ;;  %3328 = vst [vmem:[%s6065_s26 + $0x190] sm:$0xff] %v2301_v52 }
 0x3c9   : > { %v3938_v61 = vpop.f32.mrb[108].mxu1  ;;  %v3982_v26 = vpop.f32.mrb[100].mxu0 }
 0x3ca   : > { %3323 = vst [vmem:[%s6065_s26 + $0x168] sm:$0xff] %v3938_v61  ;;  %3331 = vst [vmem:[%s6065_s26 + $0x1a8] sm:$0xff] %v3982_v26  ;;  %v2157_v62 = vpop.f32.mrb[109].mxu1  ;;  %v2311_v41 = vpop.f32.mrb[101].mxu0 }
 0x3cb   : > { %3322 = vst [vmem:[%s6065_s26 + $0x160] sm:$0xff] %v2157_v62  ;;  %3330 = vst [vmem:[%s6065_s26 + $0x1a0] sm:$0xff] %v2311_v41 }
 0x3cd   : > { %v3941_v18 = vpop.f32.mrb[110].mxu1  ;;  %v3985_v59 = vpop.f32.mrb[102].mxu0 }
 0x3ce   : > { %3325 = vst [vmem:[%s6065_s26 + $0x178] sm:$0xff] %v3941_v18  ;;  %3333 = vst [vmem:[%s6065_s26 + $0x1b8] sm:$0xff] %v3985_v59  ;;  %v2167_v15 = vpop.f32.mrb[111].mxu1  ;;  %v2321_v31 = vpop.f32.mrb[103].mxu0 }
 0x3cf   : > { %3324 = vst [vmem:[%s6065_s26 + $0x170] sm:$0xff] %v2167_v15  ;;  %3332 = vst [vmem:[%s6065_s26 + $0x1b0] sm:$0xff] %v2321_v31 }
 0x3d1   : > { %v3988_v28 = vpop.f32.mrb[104].mxu0 }
 0x3d2   : > { %3335 = vst [vmem:[%s6065_s26 + $0x1c8] sm:$0xff] %v3988_v28  ;;  %v2331_v43 = vpop.f32.mrb[105].mxu0 }
 0x3d3   : > { %3334 = vst [vmem:[%s6065_s26 + $0x1c0] sm:$0xff] %v2331_v43 }
 0x3d5   : > { %v3991_v1 = vpop.f32.mrb[106].mxu0 }
 0x3d6   : > { %3337 = vst [vmem:[%s6065_s26 + $0x1d8] sm:$0xff] %v3991_v1  ;;  %v2341_v6 = vpop.f32.mrb[107].mxu0 }
 0x3d7   : > { %3336 = vst [vmem:[%s6065_s26 + $0x1d0] sm:$0xff] %v2341_v6 }
 0x3d9   : > { %v3994_v53 = vpop.f32.mrb[108].mxu0 }
 0x3da   : > { %3339 = vst [vmem:[%s6065_s26 + $0x1e8] sm:$0xff] %v3994_v53  ;;  %v2351_v9 = vpop.f32.mrb[109].mxu0 }
 0x3db   : > { %3338 = vst [vmem:[%s6065_s26 + $0x1e0] sm:$0xff] %v2351_v9 }
 0x3dd   : > { %v3997_v19 = vpop.f32.mrb[110].mxu0 }
 0x3de   : > { %3341 = vst [vmem:[%s6065_s26 + $0x1f8] sm:$0xff] %v3997_v19  ;;  %v2361_v39 = vpop.f32.mrb[111].mxu0 }
 0x3df   : > { %3340 = vst [vmem:[%s6065_s26 + $0x1f0] sm:$0xff] %v2361_v39 }
 0x3f2   : > { %v4032_v16 = vpop.f32.mrb[112].mxu1 }
 0x3f3   : > { %3343 = vst [vmem:[%s6065_s26 + $0x208] sm:$0xff] %v4032_v16  ;;  %v2485_v17 = vpop.f32.mrb[113].mxu1 }
 0x3f4   : > { %3342 = vst [vmem:[%s6065_s26 + $0x200] sm:$0xff] %v2485_v17 }
 0x3f6   : > { %v4035_v8 = vpop.f32.mrb[114].mxu1 }
 0x3f7   : > { %3345 = vst [vmem:[%s6065_s26 + $0x218] sm:$0xff] %v4035_v8  ;;  %v2495_v27 = vpop.f32.mrb[115].mxu1 }
 0x3f8   : > { %3344 = vst [vmem:[%s6065_s26 + $0x210] sm:$0xff] %v2495_v27 }
 0x3fa   : > { %v4038_v63 = vpop.f32.mrb[116].mxu1 }
 0x3fb   : > { %3347 = vst [vmem:[%s6065_s26 + $0x228] sm:$0xff] %v4038_v63  ;;  %v2505_v56 = vpop.f32.mrb[117].mxu1 }
 0x3fc   : > { %3346 = vst [vmem:[%s6065_s26 + $0x220] sm:$0xff] %v2505_v56 }
 0x3fe   : > { %v4041_v25 = vpop.f32.mrb[118].mxu1 }
 0x3ff   : > { %3349 = vst [vmem:[%s6065_s26 + $0x238] sm:$0xff] %v4041_v25  ;;  %v2515_v54 = vpop.f32.mrb[119].mxu1 }
 0x400   : > { %3348 = vst [vmem:[%s6065_s26 + $0x230] sm:$0xff] %v2515_v54 }
 0x402   : > { %v4044_v36 = vpop.f32.mrb[120].mxu1  ;;  %v4088_v44 = vpop.f32.mrb[112].mxu0 }
 0x403   : > { %3351 = vst [vmem:[%s6065_s26 + $0x248] sm:$0xff] %v4044_v36  ;;  %3359 = vst [vmem:[%s6065_s26 + $0x288] sm:$0xff] %v4088_v44  ;;  %v2525_v3 = vpop.f32.mrb[121].mxu1  ;;  %v2679_v11 = vpop.f32.mrb[113].mxu0 }
 0x404   : > { %3350 = vst [vmem:[%s6065_s26 + $0x240] sm:$0xff] %v2525_v3  ;;  %3358 = vst [vmem:[%s6065_s26 + $0x280] sm:$0xff] %v2679_v11 }
 0x406   : > { %v4047_v30 = vpop.f32.mrb[122].mxu1  ;;  %v4091_v46 = vpop.f32.mrb[114].mxu0 }
 0x407   : > { %3353 = vst [vmem:[%s6065_s26 + $0x258] sm:$0xff] %v4047_v30  ;;  %3361 = vst [vmem:[%s6065_s26 + $0x298] sm:$0xff] %v4091_v46  ;;  %v2535_v29 = vpop.f32.mrb[123].mxu1  ;;  %v2689_v23 = vpop.f32.mrb[115].mxu0 }
 0x408   : > { %3352 = vst [vmem:[%s6065_s26 + $0x250] sm:$0xff] %v2535_v29  ;;  %3360 = vst [vmem:[%s6065_s26 + $0x290] sm:$0xff] %v2689_v23 }
 0x40a   : > { %v4050_v58 = vpop.f32.mrb[124].mxu1  ;;  %v4094_v34 = vpop.f32.mrb[116].mxu0 }
 0x40b   : > { %3355 = vst [vmem:[%s6065_s26 + $0x268] sm:$0xff] %v4050_v58  ;;  %3363 = vst [vmem:[%s6065_s26 + $0x2a8] sm:$0xff] %v4094_v34  ;;  %v2545_v7 = vpop.f32.mrb[125].mxu1  ;;  %v2699_v45 = vpop.f32.mrb[117].mxu0 }
 0x40c   : > { %3354 = vst [vmem:[%s6065_s26 + $0x260] sm:$0xff] %v2545_v7  ;;  %3362 = vst [vmem:[%s6065_s26 + $0x2a0] sm:$0xff] %v2699_v45 }
 0x40e   : > { %v4053_v38 = vpop.f32.mrb[126].mxu1  ;;  %v4097_v2 = vpop.f32.mrb[118].mxu0 }
 0x40f   : > { %3357 = vst [vmem:[%s6065_s26 + $0x278] sm:$0xff] %v4053_v38  ;;  %3365 = vst [vmem:[%s6065_s26 + $0x2b8] sm:$0xff] %v4097_v2  ;;  %v2555_v55 = vpop.f32.mrb[127].mxu1  ;;  %v2709_v14 = vpop.f32.mrb[119].mxu0 }
 0x410   : > { %3356 = vst [vmem:[%s6065_s26 + $0x270] sm:$0xff] %v2555_v55  ;;  %3364 = vst [vmem:[%s6065_s26 + $0x2b0] sm:$0xff] %v2709_v14 }
 0x412   : > { %v4100_v57 = vpop.f32.mrb[120].mxu0 }
 0x413   : > { %3367 = vst [vmem:[%s6065_s26 + $0x2c8] sm:$0xff] %v4100_v57  ;;  %v2719_v60 = vpop.f32.mrb[121].mxu0 }
 0x414   : > { %3366 = vst [vmem:[%s6065_s26 + $0x2c0] sm:$0xff] %v2719_v60 }
 0x416   : > { %v4103_v51 = vpop.f32.mrb[122].mxu0 }
 0x417   : > { %3369 = vst [vmem:[%s6065_s26 + $0x2d8] sm:$0xff] %v4103_v51  ;;  %v2729_v37 = vpop.f32.mrb[123].mxu0 }
 0x418   : > { %3368 = vst [vmem:[%s6065_s26 + $0x2d0] sm:$0xff] %v2729_v37 }
 0x41a   : > { %v4106_v32 = vpop.f32.mrb[124].mxu0 }
 0x41b   : > { %3371 = vst [vmem:[%s6065_s26 + $0x2e8] sm:$0xff] %v4106_v32  ;;  %v2739_v10 = vpop.f32.mrb[125].mxu0 }
 0x41c   : > { %3370 = vst [vmem:[%s6065_s26 + $0x2e0] sm:$0xff] %v2739_v10 }
 0x41e   : > { %v4109_v40 = vpop.f32.mrb[126].mxu0 }
 0x41f   : > { %3373 = vst [vmem:[%s6065_s26 + $0x2f8] sm:$0xff] %v4109_v40  ;;  %v2749_v42 = vpop.f32.mrb[127].mxu0 }
 0x420   : > { %3372 = vst [vmem:[%s6065_s26 + $0x2f0] sm:$0xff] %v2749_v42 }
 0x433   : > { %v4144_v48 = vpop.f32.mrb[128].mxu1 }
 0x434   : > { %3375 = vst [vmem:[%s6065_s26 + $0x308] sm:$0xff] %v4144_v48  ;;  %v2873_v22 = vpop.f32.mrb[129].mxu1 }
 0x435   : > { %3374 = vst [vmem:[%s6065_s26 + $0x300] sm:$0xff] %v2873_v22 }
 0x437   : > { %v4147_v24 = vpop.f32.mrb[130].mxu1 }
 0x438   : > { %3377 = vst [vmem:[%s6065_s26 + $0x318] sm:$0xff] %v4147_v24  ;;  %v2883_v35 = vpop.f32.mrb[131].mxu1 }
 0x439   : > { %3376 = vst [vmem:[%s6065_s26 + $0x310] sm:$0xff] %v2883_v35 }
 0x43b   : > { %v4150_v21 = vpop.f32.mrb[132].mxu1 }
 0x43c   : > { %3379 = vst [vmem:[%s6065_s26 + $0x328] sm:$0xff] %v4150_v21  ;;  %v2893_v49 = vpop.f32.mrb[133].mxu1 }
 0x43d   : > { %3378 = vst [vmem:[%s6065_s26 + $0x320] sm:$0xff] %v2893_v49 }
 0x43f   : > { %v4153_v4 = vpop.f32.mrb[134].mxu1 }
 0x440   : > { %3381 = vst [vmem:[%s6065_s26 + $0x338] sm:$0xff] %v4153_v4  ;;  %v2903_v5 = vpop.f32.mrb[135].mxu1 }
 0x441   : > { %3380 = vst [vmem:[%s6065_s26 + $0x330] sm:$0xff] %v2903_v5 }
 0x443   : > { %v4156_v13 = vpop.f32.mrb[136].mxu1  ;;  %v4200_v0 = vpop.f32.mrb[128].mxu0 }
 0x444   : > { %3383 = vst [vmem:[%s6065_s26 + $0x348] sm:$0xff] %v4156_v13  ;;  %3391 = vst [vmem:[%s6065_s26 + $0x388] sm:$0xff] %v4200_v0  ;;  %v2913_v47 = vpop.f32.mrb[137].mxu1  ;;  %v3067_v20 = vpop.f32.mrb[129].mxu0 }
 0x445   : > { %3382 = vst [vmem:[%s6065_s26 + $0x340] sm:$0xff] %v2913_v47  ;;  %3390 = vst [vmem:[%s6065_s26 + $0x380] sm:$0xff] %v3067_v20 }
 0x447   : > { %v4159_v33 = vpop.f32.mrb[138].mxu1  ;;  %v4203_v12 = vpop.f32.mrb[130].mxu0 }
 0x448   : > { %3385 = vst [vmem:[%s6065_s26 + $0x358] sm:$0xff] %v4159_v33  ;;  %3393 = vst [vmem:[%s6065_s26 + $0x398] sm:$0xff] %v4203_v12  ;;  %v2923_v50 = vpop.f32.mrb[139].mxu1  ;;  %v3077_v52 = vpop.f32.mrb[131].mxu0 }
 0x449   : > { %3384 = vst [vmem:[%s6065_s26 + $0x350] sm:$0xff] %v2923_v50  ;;  %3392 = vst [vmem:[%s6065_s26 + $0x390] sm:$0xff] %v3077_v52 }
 0x44b   : > { %v4162_v61 = vpop.f32.mrb[140].mxu1  ;;  %v4206_v26 = vpop.f32.mrb[132].mxu0 }
 0x44c   : > { %3387 = vst [vmem:[%s6065_s26 + $0x368] sm:$0xff] %v4162_v61  ;;  %3395 = vst [vmem:[%s6065_s26 + $0x3a8] sm:$0xff] %v4206_v26  ;;  %v2933_v62 = vpop.f32.mrb[141].mxu1  ;;  %v3087_v41 = vpop.f32.mrb[133].mxu0 }
 0x44d   : > { %3386 = vst [vmem:[%s6065_s26 + $0x360] sm:$0xff] %v2933_v62  ;;  %3394 = vst [vmem:[%s6065_s26 + $0x3a0] sm:$0xff] %v3087_v41 }
 0x44f   : > { %v4165_v18 = vpop.f32.mrb[142].mxu1  ;;  %v4209_v59 = vpop.f32.mrb[134].mxu0 }
 0x450   : > { %3389 = vst [vmem:[%s6065_s26 + $0x378] sm:$0xff] %v4165_v18  ;;  %3397 = vst [vmem:[%s6065_s26 + $0x3b8] sm:$0xff] %v4209_v59  ;;  %v2943_v15 = vpop.f32.mrb[143].mxu1  ;;  %v3097_v31 = vpop.f32.mrb[135].mxu0 }
 0x451   : > { %3388 = vst [vmem:[%s6065_s26 + $0x370] sm:$0xff] %v2943_v15  ;;  %3396 = vst [vmem:[%s6065_s26 + $0x3b0] sm:$0xff] %v3097_v31 }
 0x453   : > { %v4212_v28 = vpop.f32.mrb[136].mxu0 }
 0x454   : > { %3399 = vst [vmem:[%s6065_s26 + $0x3c8] sm:$0xff] %v4212_v28  ;;  %v3107_v43 = vpop.f32.mrb[137].mxu0 }
 0x455   : > { %3398 = vst [vmem:[%s6065_s26 + $0x3c0] sm:$0xff] %v3107_v43 }
 0x457   : > { %v4215_v1 = vpop.f32.mrb[138].mxu0 }
 0x458   : > { %3401 = vst [vmem:[%s6065_s26 + $0x3d8] sm:$0xff] %v4215_v1  ;;  %v3117_v6 = vpop.f32.mrb[139].mxu0 }
 0x459   : > { %3400 = vst [vmem:[%s6065_s26 + $0x3d0] sm:$0xff] %v3117_v6 }
 0x45b   : > { %v4218_v53 = vpop.f32.mrb[140].mxu0 }
 0x45c   : > { %3403 = vst [vmem:[%s6065_s26 + $0x3e8] sm:$0xff] %v4218_v53  ;;  %v3127_v9 = vpop.f32.mrb[141].mxu0 }
 0x45d   : > { %3402 = vst [vmem:[%s6065_s26 + $0x3e0] sm:$0xff] %v3127_v9 }
 0x45f   : > { %v4221_v19 = vpop.f32.mrb[142].mxu0 }
 0x460   : > { %3405 = vst [vmem:[%s6065_s26 + $0x3f8] sm:$0xff] %v4221_v19  ;;  %v3137_v39 = vpop.f32.mrb[143].mxu0 }
 0x461   : > { %3404 = vst [vmem:[%s6065_s26 + $0x3f0] sm:$0xff] %v3137_v39 }
 0x462   : > { %4686 = shalt.err (!%p4683_p3)
}
 0x463   : > { %s4687_s9 = scalar_lea.hbm %s6216_s14, 16384  ;;  %s4691_s19 = scalar_lea.hbm %s6271_s6, 32768 }
 0x464   : > { %p4688_p4 = scmp.ne.s32.totalorder %s6216_s14, %s4687_s9  ;;  %p4692_p9 = scmp.lt.u32.totalorder %s6216_s14, %s6271_s6 }
 0x465   : > { %p4693_p10 = scmp.lt.u32.totalorder %s4691_s19, %s4687_s9  ;;  %p4695_p12 = scmp.lt.u32.totalorder %s4687_s9, %s6216_s14 }
 0x466   : > { %p4689_p7 = pnand %p4688_p4, %p4815_p5 }
 0x467   : > { %p4694_p11 = por %p4693_p10, %p4692_p9 }
 0x468   : > { %p4690_p8 = pneg %p4689_p7 }
 0x469   : > { %p4696_p13 = por %p4695_p12, %p4694_p11 }
 0x46b   : > { %p4697_p0 = pnand %p4696_p13, %p4690_p8 }
 0x46d   : > { %4700 = shalt.err (!%p4697_p0)
}
 0x46e   : > { %s4740_s29 = smov 128   ;;  %s4741_s12 = smov 8  }
 0x46f   : > { %4566 = dma.vmem_to_hbm [thread:$0]  (%p4815_p5), %s6218_s10, 16384, %s6216_s14, %s6224_s25, %s4740_s29, %s4740_s29, %s4741_s12  }
 0x470 PF: > { %p4572_p1 = scmp.ge.s32.totalorder %s4735_s24, 2  ;;  %s3193_s13 = sand.u32 1, %s4723_s21  }
 0x471   : > { %s3194_s11 = scalar_lea.sflag [#allocation4], %s3193_s13 }
 0x472   : > { %p4569_p2 = pnand %p4572_p1, %p4819_p6 }
 0x474   : > { %4718 = dma.done.wait (!%p4569_p2), %s3194_s11, 16384  }
 0x475   : > { %4720 = vsyncadd (!%p4569_p2), %s3194_s11, 4294950912  ;;  %p16_p3 = scmp.ge.s32.totalorder %s4802_s27, 4   ;;  %s6394_s21 = smov %s4727_s22 }
 0x476   : > { %s6395_s22 = smov %s4731_s23  ;;  %s6396_s23 = smov %s4813_s30 }
 0x477   : > { %s6397_s24 = smov %s4802_s27  ;;  %18 = sbr.rel (!%p16_p3) target bundleno = 3 (0x3), region = 104 }
 0x47e   :  { %3199 = vsyncpa [#allocation4], 1 }
 0x47f   :  { %3201 = vsyncpa [#allocation4 + $0x1], 1 }

</bundles_post_ra>
